<compile_context>
chip_gen: v5e
topology: v5e:2x2
jax: 0.10.0
libtpu: 0.0.40
codegen_flags: <defaults>
</compile_context>

<pallas_src>
import jax
import jax.numpy as jnp
from jax.experimental import pallas as pl
from jax.experimental.pallas import tpu as pltpu

C_SE = 40     # conv2d67 input channels  (x214)
C_MID = 960   # conv2d67 output / conv2d68 input channels (x211)
C_OUT = 160   # conv2d68 output channels
H = 14
W = 14
HW = H * W
EPS = 1e-3    # BatchNorm2d eps


def _se_conv_bn_kernel(xse_ref, w1_ref, b1_ref, x_ref, w2_ref, gb_ref, o_ref):
    # ---- SE gate, lane-dense: [1,40] . [960,40]^T + [1,960] -> sigmoid.
    #      w1 arrives untransposed; Mosaic handles the transposed contraction.
    pre = jax.lax.dot_general(
        xse_ref[...], w1_ref[...],
        dimension_numbers=(((1,), (1,)), ((), ())),
        preferred_element_type=jnp.float32) + b1_ref[...]
    s_row = jax.nn.sigmoid(pre)                                   # [1, C_MID] f32

    # ---- Fold the gate into conv2d68's weights: z = (w2 * s_row) @ x
    #      (gate acts on the contraction axis, so this equals w2 @ (s * x)).
    #      bf16 MXU operands, f32 accumulation; casts happen in-kernel only.
    w2s = (w2_ref[...] * s_row).astype(jnp.bfloat16)              # [C_OUT, C_MID]
    xb = x_ref[...].astype(jnp.bfloat16)                          # [C_MID, HW]
    z = jnp.dot(w2s, xb, preferred_element_type=jnp.float32)      # [C_OUT, HW] f32

    # ---- BatchNorm2d (train mode -> biased batch stats over HW per channel),
    #      single-pass sum / sum-of-squares, variance clamped at 0.
    inv_hw = jnp.float32(1.0 / HW)
    zsum = jnp.sum(z, axis=1, keepdims=True)
    zsq = jnp.sum(z * z, axis=1, keepdims=True)
    mean = zsum * inv_hw
    var = jnp.maximum(zsq * inv_hw - mean * mean, 0.0)

    # gamma/beta arrive lane-dense as [2, C_OUT]; small XLU transpose -> columns.
    gbt = jnp.transpose(gb_ref[...])                              # [C_OUT, 2]
    gamma = gbt[:, 0:1]
    beta = gbt[:, 1:2]
    scale = gamma * jax.lax.rsqrt(var + EPS)
    o_ref[...] = z * scale + (beta - mean * scale)


def se_conv_bn(x214, x211, w1, b1, w2, gamma, beta):
    """x214: [1, C_SE, 1, 1], x211: [1, C_MID, H, W]  (NCHW, N=1, f32)."""
    # Only free (contiguous) reshapes here -- no dtype converts, no transposes
    # of large operands outside the kernel.
    xse_row = x214.reshape(1, C_SE)                               # [1, 40]
    w1_m = w1.reshape(C_MID, C_SE)                                # [960, 40]
    b1_row = b1.reshape(1, C_MID)                                 # [1, 960]
    x = x211.reshape(C_MID, HW)                                   # [960, 196]
    w2_m = w2.reshape(C_OUT, C_MID)                               # [160, 960]
    gb = jnp.stack([gamma, beta], axis=0)                         # [2, 160] lane-dense

    out = pl.pallas_call(
        _se_conv_bn_kernel,
        out_shape=jax.ShapeDtypeStruct((C_OUT, HW), jnp.float32),
        grid=(1,),
        in_specs=[
            pl.BlockSpec((1, C_SE), lambda i: (0, 0)),
            pl.BlockSpec((C_MID, C_SE), lambda i: (0, 0)),
            pl.BlockSpec((1, C_MID), lambda i: (0, 0)),
            pl.BlockSpec((C_MID, HW), lambda i: (0, 0)),
            pl.BlockSpec((C_OUT, C_MID), lambda i: (0, 0)),
            pl.BlockSpec((2, C_OUT), lambda i: (0, 0)),
        ],
        out_specs=pl.BlockSpec((C_OUT, HW), lambda i: (0, 0)),
        compiler_params=pltpu.CompilerParams(
            dimension_semantics=("arbitrary",)),
    )(xse_row, w1_m, b1_row, x, w2_m, gb)

    return out.reshape(1, C_OUT, H, W)


def _reference(x214, x211, w1, b1, w2, gamma, beta):
    # Pure-JAX f32 reference of the same math (for sanity check).
    s = jax.nn.sigmoid(
        jnp.dot(w1.reshape(C_MID, C_SE), x214.reshape(C_SE, 1)) + b1.reshape(C_MID, 1))
    y = x211.reshape(C_MID, HW) * s
    z = jnp.dot(w2.reshape(C_OUT, C_MID), y)
    mean = jnp.mean(z, axis=1, keepdims=True)
    var = jnp.mean(jnp.square(z - mean), axis=1, keepdims=True)
    zn = (z - mean) / jnp.sqrt(var + EPS)
    out = zn * gamma.reshape(C_OUT, 1) + beta.reshape(C_OUT, 1)
    return out.reshape(1, C_OUT, H, W)


if __name__ == "__main__":
    key = jax.random.PRNGKey(0)
    k1, k2, k3, k4, k5, k6, k7 = jax.random.split(key, 7)

    # Inputs (shapes from the PyTorch module's forward).
    x211 = jax.random.normal(k1, (1, C_MID, H, W), dtype=jnp.float32)
    x214 = jax.random.normal(k2, (1, C_SE, 1, 1), dtype=jnp.float32)

    # Deterministic parameter init (shapes from __init__; synthetic values).
    w1 = 0.1 * jax.random.normal(k3, (C_MID, C_SE, 1, 1), dtype=jnp.float32)
    b1 = 0.1 * jax.random.normal(k4, (C_MID,), dtype=jnp.float32)
    w2 = 0.05 * jax.random.normal(k5, (C_OUT, C_MID, 1, 1), dtype=jnp.float32)
    gamma = 1.0 + 0.1 * jax.random.normal(k6, (C_OUT,), dtype=jnp.float32)
    beta = 0.1 * jax.random.normal(k7, (C_OUT,), dtype=jnp.float32)

    out = se_conv_bn(x214, x211, w1, b1, w2, gamma, beta)
    out = jax.block_until_ready(out)

    ref = _reference(x214, x211, w1, b1, w2, gamma, beta)
    assert out.shape == (1, C_OUT, H, W)
    # bf16 MXU operands (f32 accumulation) vs. an f32 reference: tolerance is
    # slightly loosened relative to a pure-f32 kernel.
    assert jnp.allclose(out, ref, rtol=3e-2, atol=3e-2), "mismatch vs reference"

    print("KERNEL_OK")
</pallas_src>

<mosaic_0001>
module attributes {stable_mosaic.version = 11 : i64} {
  func.func @_se_conv_bn_kernel(%arg0: i32, %arg1: memref<1x40xf32, #tpu.memory_space<vmem>>, %arg2: memref<960x40xf32, #tpu.memory_space<vmem>>, %arg3: memref<1x960xf32, #tpu.memory_space<vmem>>, %arg4: memref<960x196xf32, #tpu.memory_space<vmem>>, %arg5: memref<160x960xf32, #tpu.memory_space<vmem>>, %arg6: memref<2x160xf32, #tpu.memory_space<vmem>>, %arg7: memref<160x196xf32, #tpu.memory_space<vmem>>) attributes {dimension_semantics = [#tpu.dimension_semantics<arbitrary>], iteration_bounds = array<i64: 1>, scalar_prefetch = 0 : i64, scratch_operands = 0 : i64, tpu.core_type = #tpu.core_type<tc>, window_params = [{pipeline_mode = #tpu.pipeline_mode<synchronous>, transform_indices = @transform_0, window_bounds = array<i64: 1, 40>}, {pipeline_mode = #tpu.pipeline_mode<synchronous>, transform_indices = @transform_1, window_bounds = array<i64: 960, 40>}, {pipeline_mode = #tpu.pipeline_mode<synchronous>, transform_indices = @transform_2, window_bounds = array<i64: 1, 960>}, {pipeline_mode = #tpu.pipeline_mode<synchronous>, transform_indices = @transform_3, window_bounds = array<i64: 960, 196>}, {pipeline_mode = #tpu.pipeline_mode<synchronous>, transform_indices = @transform_4, window_bounds = array<i64: 160, 960>}, {pipeline_mode = #tpu.pipeline_mode<synchronous>, transform_indices = @transform_5, window_bounds = array<i64: 2, 160>}, {pipeline_mode = #tpu.pipeline_mode<synchronous>, transform_indices = @transform_6, window_bounds = array<i64: 160, 196>}]} {
    %c0 = arith.constant 0 : index
    %c0_0 = arith.constant 0 : index
    %0 = vector.load %arg1[%c0, %c0_0] : memref<1x40xf32, #tpu.memory_space<vmem>>, vector<1x40xf32>
    %c0_1 = arith.constant 0 : index
    %c0_2 = arith.constant 0 : index
    %1 = vector.load %arg2[%c0_1, %c0_2] : memref<960x40xf32, #tpu.memory_space<vmem>>, vector<960x40xf32>
    %cst = arith.constant dense<0.000000e+00> : vector<1x960xf32>
    %2 = tpu.matmul %0, %1, %cst {dimension_numbers = #tpu.dot_dimension_numbers<[1], [1], [0], [0], [0, 0, 1, 0], [], []>} : vector<1x40xf32>, vector<960x40xf32>, vector<1x960xf32> -> vector<1x960xf32>
    %c0_3 = arith.constant 0 : index
    %c0_4 = arith.constant 0 : index
    %3 = vector.load %arg3[%c0_3, %c0_4] : memref<1x960xf32, #tpu.memory_space<vmem>>, vector<1x960xf32>
    %4 = arith.addf %2, %3 : vector<1x960xf32>
    %5 = arith.negf %4 : vector<1x960xf32>
    %6 = math.exp %5 : vector<1x960xf32>
    %cst_5 = arith.constant 1.000000e+00 : f32
    %7 = vector.broadcast %cst_5 : f32 to vector<1x960xf32>
    %8 = arith.addf %7, %6 : vector<1x960xf32>
    %9 = arith.divf %7, %8 : vector<1x960xf32>
    %c0_6 = arith.constant 0 : index
    %c0_7 = arith.constant 0 : index
    %10 = vector.load %arg5[%c0_6, %c0_7] : memref<160x960xf32, #tpu.memory_space<vmem>>, vector<160x960xf32>
    %11 = vector.broadcast %9 : vector<1x960xf32> to vector<160x960xf32>
    %12 = arith.mulf %10, %11 : vector<160x960xf32>
    %13 = arith.truncf %12 : vector<160x960xf32> to vector<160x960xbf16>
    %c0_8 = arith.constant 0 : index
    %c0_9 = arith.constant 0 : index
    %14 = vector.load %arg4[%c0_8, %c0_9] : memref<960x196xf32, #tpu.memory_space<vmem>>, vector<960x196xf32>
    %15 = arith.truncf %14 : vector<960x196xf32> to vector<960x196xbf16>
    %cst_10 = arith.constant dense<0.000000e+00> : vector<160x196xf32>
    %16 = tpu.matmul %13, %15, %cst_10 {dimension_numbers = #tpu.dot_dimension_numbers<[1], [0], [0], [1], [0, 0, 1, 1], [], []>} : vector<160x960xbf16>, vector<960x196xbf16>, vector<160x196xf32> -> vector<160x196xf32>
    %cst_11 = arith.constant dense<0.000000e+00> : vector<160xf32>
    %17 = vector.multi_reduction <add>, %16, %cst_11 [1] : vector<160x196xf32> to vector<160xf32>
    %18 = vector.shape_cast %17 : vector<160xf32> to vector<160x1xf32>
    %19 = arith.mulf %16, %16 : vector<160x196xf32>
    %cst_12 = arith.constant dense<0.000000e+00> : vector<160xf32>
    %20 = vector.multi_reduction <add>, %19, %cst_12 [1] : vector<160x196xf32> to vector<160xf32>
    %21 = vector.shape_cast %20 : vector<160xf32> to vector<160x1xf32>
    %cst_13 = arith.constant 0.00510204071 : f32
    %22 = vector.broadcast %cst_13 : f32 to vector<160x1xf32>
    %23 = arith.mulf %18, %22 : vector<160x1xf32>
    %cst_14 = arith.constant 0.00510204071 : f32
    %24 = vector.broadcast %cst_14 : f32 to vector<160x1xf32>
    %25 = arith.mulf %21, %24 : vector<160x1xf32>
    %26 = arith.mulf %23, %23 : vector<160x1xf32>
    %27 = arith.subf %25, %26 : vector<160x1xf32>
    %cst_15 = arith.constant 0.000000e+00 : f32
    %28 = vector.broadcast %cst_15 : f32 to vector<160x1xf32>
    %29 = arith.maximumf %27, %28 : vector<160x1xf32>
    %c0_16 = arith.constant 0 : index
    %c0_17 = arith.constant 0 : index
    %30 = vector.load %arg6[%c0_16, %c0_17] : memref<2x160xf32, #tpu.memory_space<vmem>>, vector<2x160xf32>
    %31 = tpu.transpose %30, [1, 0] : vector<2x160xf32> -> vector<160x2xf32>
    %32 = vector.extract_strided_slice %31 {offsets = [0, 0], sizes = [160, 1], strides = [1, 1]} : vector<160x2xf32> to vector<160x1xf32>
    %33 = vector.extract_strided_slice %31 {offsets = [0, 1], sizes = [160, 1], strides = [1, 1]} : vector<160x2xf32> to vector<160x1xf32>
    %cst_18 = arith.constant 1.000000e-03 : f32
    %34 = vector.broadcast %cst_18 : f32 to vector<160x1xf32>
    %35 = arith.addf %29, %34 : vector<160x1xf32>
    %36 = math.rsqrt %35 : vector<160x1xf32>
    %37 = arith.mulf %32, %36 : vector<160x1xf32>
    %38 = vector.broadcast %37 : vector<160x1xf32> to vector<160x196xf32>
    %39 = arith.mulf %16, %38 : vector<160x196xf32>
    %40 = arith.mulf %23, %37 : vector<160x1xf32>
    %41 = arith.subf %33, %40 : vector<160x1xf32>
    %42 = vector.broadcast %41 : vector<160x1xf32> to vector<160x196xf32>
    %43 = arith.addf %39, %42 : vector<160x196xf32>
    %c0_19 = arith.constant 0 : index
    %c0_20 = arith.constant 0 : index
    %44 = vector.load %arg7[%c0_19, %c0_20] : memref<160x196xf32, #tpu.memory_space<vmem>>, vector<160x196xf32>
    tpu.vector_store %arg7[%c0_19, %c0_20], %43 {strides = array<i32>} : memref<160x196xf32, #tpu.memory_space<vmem>>, vector<160x196xf32>,
    return
  }
  func.func @transform_0(%arg0: i32) -> (i32, i32) {
    %c0_i32 = arith.constant 0 : i32
    %c0_i32_0 = arith.constant 0 : i32
    %c0_i32_1 = arith.constant 0 : i32
    return %c0_i32, %c0_i32_0 : i32, i32
  }
  func.func @transform_1(%arg0: i32) -> (i32, i32) {
    %c0_i32 = arith.constant 0 : i32
    %c0_i32_0 = arith.constant 0 : i32
    %c0_i32_1 = arith.constant 0 : i32
    return %c0_i32, %c0_i32_0 : i32, i32
  }
  func.func @transform_2(%arg0: i32) -> (i32, i32) {
    %c0_i32 = arith.constant 0 : i32
    %c0_i32_0 = arith.constant 0 : i32
    %c0_i32_1 = arith.constant 0 : i32
    return %c0_i32, %c0_i32_0 : i32, i32
  }
  func.func @transform_3(%arg0: i32) -> (i32, i32) {
    %c0_i32 = arith.constant 0 : i32
    %c0_i32_0 = arith.constant 0 : i32
    %c0_i32_1 = arith.constant 0 : i32
    return %c0_i32, %c0_i32_0 : i32, i32
  }
  func.func @transform_4(%arg0: i32) -> (i32, i32) {
    %c0_i32 = arith.constant 0 : i32
    %c0_i32_0 = arith.constant 0 : i32
    %c0_i32_1 = arith.constant 0 : i32
    return %c0_i32, %c0_i32_0 : i32, i32
  }
  func.func @transform_5(%arg0: i32) -> (i32, i32) {
    %c0_i32 = arith.constant 0 : i32
    %c0_i32_0 = arith.constant 0 : i32
    %c0_i32_1 = arith.constant 0 : i32
    return %c0_i32, %c0_i32_0 : i32, i32
  }
  func.func @transform_6(%arg0: i32) -> (i32, i32) {
    %c0_i32 = arith.constant 0 : i32
    %c0_i32_0 = arith.constant 0 : i32
    %c0_i32_1 = arith.constant 0 : i32
    return %c0_i32, %c0_i32_0 : i32, i32
  }
}

</mosaic_0001>

<bundles_post_ra>
// kernel: tpu_custom_call.1
= control target key start
LH: loop header
LB: loop body
LE: loop exit
PB: predicated region body
PF: predicated region fallthrough
CT: control target
= control target key end

     0   :  { %vm164_vm0 = vcmask 326656   ;;  %s7359_s0 = inlined_call_operand.vmem [shape: f32[1,40], index: 0, kind: input, shape index: {}]   ;;  %s7360_s1 = inlined_call_operand.vmem [shape: f32[960,40], index: 1, kind: input, shape index: {}]   ;;  %s7361_s2 = inlined_call_operand.vmem [shape: f32[1,960], index: 2, kind: input, shape index: {}]   ;;  %s7362_s3 = inlined_call_operand.vmem [shape: f32[960,196], index: 3, kind: input, shape index: {}]   ;;  %s7363_s4 = inlined_call_operand.vmem [shape: f32[160,960], index: 4, kind: input, shape index: {}]   ;;  %s7364_s5 = inlined_call_operand.vmem [shape: f32[2,160], index: 5, kind: input, shape index: {}]   ;;  %s7365_s6 = inlined_call_operand.hbm [shape: f32[160,196], index: 6, kind: output, shape index: {}]  }
   0x1   :  { %v41_v0 = vld [vmem:[%s7360_s1 + $0x78] sm:$0xff]  ;;  %v40_v4 = vld [vmem:[%s7360_s1 + $0x70] sm:$0xff]  ;;  %v39_v8 = vld [vmem:[%s7360_s1 + $0x68] sm:$0xff] }
   0x2   :  { %v57_v1 = vld [vmem:[%s7360_s1 + $0xf8] sm:$0xff]  ;;  %3653 = vmatpush.xpose.msk.msra.mxu0 %vm164_vm0, %v41_v0  ;;  %v56_v5 = vld [vmem:[%s7360_s1 + $0xf0] sm:$0xff]  ;;  %v55_v9 = vld [vmem:[%s7360_s1 + $0xe8] sm:$0xff] }
   0x3   :  { %v73_v2 = vld [vmem:[%s7360_s1 + $0x178] sm:$0xff]  ;;  %3670 = vmatpush.xpose.msk.msra.mxu1 %vm164_vm0, %v57_v1  ;;  %v72_v6 = vld [vmem:[%s7360_s1 + $0x170] sm:$0xff]  ;;  %v71_v10 = vld [vmem:[%s7360_s1 + $0x168] sm:$0xff] }
   0x4   :  { %v89_v3 = vld [vmem:[%s7360_s1 + $0x1f8] sm:$0xff]  ;;  %3687 = vmatpush.xpose.msk.msra.mxu2 %vm164_vm0, %v73_v2  ;;  %v88_v7 = vld [vmem:[%s7360_s1 + $0x1f0] sm:$0xff]  ;;  %v87_v11 = vld [vmem:[%s7360_s1 + $0x1e8] sm:$0xff] }
   0x5   :  { %3704 = vmatpush.xpose.msk.msra.mxu3 %vm164_vm0, %v89_v3  ;;  %v38_v12 = vld [vmem:[%s7360_s1 + $0x60] sm:$0xff]  ;;  %v37_v16 = vld [vmem:[%s7360_s1 + $0x58] sm:$0xff] }
   0x6   :  { %3654 = vmatpush.xpose.msk.msra.mxu0 %vm164_vm0, %v40_v4  ;;  %v54_v13 = vld [vmem:[%s7360_s1 + $0xe0] sm:$0xff]  ;;  %v53_v17 = vld [vmem:[%s7360_s1 + $0xd8] sm:$0xff] }
   0x7   :  { %3671 = vmatpush.xpose.msk.msra.mxu1 %vm164_vm0, %v56_v5  ;;  %v70_v14 = vld [vmem:[%s7360_s1 + $0x160] sm:$0xff]  ;;  %v69_v18 = vld [vmem:[%s7360_s1 + $0x158] sm:$0xff] }
   0x8   :  { %3688 = vmatpush.xpose.msk.msra.mxu2 %vm164_vm0, %v72_v6  ;;  %v86_v15 = vld [vmem:[%s7360_s1 + $0x1e0] sm:$0xff]  ;;  %v85_v19 = vld [vmem:[%s7360_s1 + $0x1d8] sm:$0xff] }
   0x9   :  { %3705 = vmatpush.xpose.msk.msra.mxu3 %vm164_vm0, %v88_v7 }
   0xa   :  { %3655 = vmatpush.xpose.msk.msra.mxu0 %vm164_vm0, %v39_v8 }
   0xb   :  { %3672 = vmatpush.xpose.msk.msra.mxu1 %vm164_vm0, %v55_v9 }
   0xc   :  { %3689 = vmatpush.xpose.msk.msra.mxu2 %vm164_vm0, %v71_v10 }
   0xd   :  { %3706 = vmatpush.xpose.msk.msra.mxu3 %vm164_vm0, %v87_v11 }
   0xe   :  { %3656 = vmatpush.xpose.msk.msra.mxu0 %vm164_vm0, %v38_v12 }
   0xf   :  { %3673 = vmatpush.xpose.msk.msra.mxu1 %vm164_vm0, %v54_v13 }
  0x10   :  { %3690 = vmatpush.xpose.msk.msra.mxu2 %vm164_vm0, %v70_v14 }
  0x11   :  { %3707 = vmatpush.xpose.msk.msra.mxu3 %vm164_vm0, %v86_v15 }
  0x12   :  { %11 = vsyncpa [#allocation3], 0  ;;  %3657 = vmatpush.xpose.msk.msra.mxu0 %vm164_vm0, %v37_v16  ;;  %v36_v20 = vld [vmem:[%s7360_s1 + $0x50] sm:$0xff]  ;;  %v35_v24 = vld [vmem:[%s7360_s1 + $0x48] sm:$0xff]  ;;  %s3927_s12 = smov [#allocation2]   ;;  %s3641_s15 = sshll.u32 %s7365_s6, 4  ;;  %s3642_s15 = int_to_ptr.hbm [resolvable:$true] %s3641_s15 }
  0x13   :  { %3674 = vmatpush.xpose.msk.msra.mxu1 %vm164_vm0, %v53_v17  ;;  %v52_v21 = vld [vmem:[%s7360_s1 + $0xd0] sm:$0xff]  ;;  %v51_v25 = vld [vmem:[%s7360_s1 + $0xc8] sm:$0xff]  ;;  %v34_v28 = vld [vmem:[%s7360_s1 + $0x40] sm:$0xff]  ;;  %s3639_s13 = sshll.u32 %s3927_s12, 4  ;;  %s3928_s16 = smov 256   ;;  %s3640_s13 = int_to_ptr.vmem [resolvable:$true] %s3639_s13 }
  0x14   :  { %3691 = vmatpush.xpose.msk.msra.mxu2 %vm164_vm0, %v69_v18  ;;  %v68_v22 = vld [vmem:[%s7360_s1 + $0x150] sm:$0xff]  ;;  %v67_v26 = vld [vmem:[%s7360_s1 + $0x148] sm:$0xff]  ;;  %v50_v29 = vld [vmem:[%s7360_s1 + $0xc0] sm:$0xff]  ;;  %s3929_s17 = smov 16  }
  0x15   :  { %3708 = vmatpush.xpose.msk.msra.mxu3 %vm164_vm0, %v85_v19  ;;  %v84_v23 = vld [vmem:[%s7360_s1 + $0x1d0] sm:$0xff]  ;;  %v83_v27 = vld [vmem:[%s7360_s1 + $0x1c8] sm:$0xff]  ;;  %v66_v30 = vld [vmem:[%s7360_s1 + $0x140] sm:$0xff] }
  0x16   :  { %3658 = vmatpush.xpose.msk.msra.mxu0 %vm164_vm0, %v36_v20  ;;  %v82_v31 = vld [vmem:[%s7360_s1 + $0x1c0] sm:$0xff]  ;;  %v33_v32 = vld [vmem:[%s7360_s1 + $0x38] sm:$0xff]  ;;  %v32_v36 = vld [vmem:[%s7360_s1 + $0x30] sm:$0xff] }
  0x17   :  { %3675 = vmatpush.xpose.msk.msra.mxu1 %vm164_vm0, %v52_v21  ;;  %v49_v33 = vld [vmem:[%s7360_s1 + $0xb8] sm:$0xff]  ;;  %v48_v37 = vld [vmem:[%s7360_s1 + $0xb0] sm:$0xff]  ;;  %v31_v40 = vld [vmem:[%s7360_s1 + $0x28] sm:$0xff] }
  0x18   :  { %3692 = vmatpush.xpose.msk.msra.mxu2 %vm164_vm0, %v68_v22  ;;  %v65_v34 = vld [vmem:[%s7360_s1 + $0x138] sm:$0xff]  ;;  %v64_v38 = vld [vmem:[%s7360_s1 + $0x130] sm:$0xff]  ;;  %v47_v41 = vld [vmem:[%s7360_s1 + $0xa8] sm:$0xff] }
  0x19   :  { %3709 = vmatpush.xpose.msk.msra.mxu3 %vm164_vm0, %v84_v23  ;;  %v81_v35 = vld [vmem:[%s7360_s1 + $0x1b8] sm:$0xff]  ;;  %v80_v39 = vld [vmem:[%s7360_s1 + $0x1b0] sm:$0xff]  ;;  %v63_v42 = vld [vmem:[%s7360_s1 + $0x128] sm:$0xff] }
  0x1a   :  { %3659 = vmatpush.xpose.msk.msra.mxu0 %vm164_vm0, %v35_v24  ;;  %v79_v43 = vld [vmem:[%s7360_s1 + $0x1a8] sm:$0xff]  ;;  %v30_v44 = vld [vmem:[%s7360_s1 + $0x20] sm:$0xff]  ;;  %v29_v48 = vld [vmem:[%s7360_s1 + $0x18] sm:$0xff] }
  0x1b   :  { %3676 = vmatpush.xpose.msk.msra.mxu1 %vm164_vm0, %v51_v25  ;;  %v46_v45 = vld [vmem:[%s7360_s1 + $0xa0] sm:$0xff]  ;;  %v45_v49 = vld [vmem:[%s7360_s1 + $0x98] sm:$0xff]  ;;  %v28_v52 = vld [vmem:[%s7360_s1 + $0x10] sm:$0xff] }
  0x1c   :  { %3693 = vmatpush.xpose.msk.msra.mxu2 %vm164_vm0, %v67_v26  ;;  %v62_v46 = vld [vmem:[%s7360_s1 + $0x120] sm:$0xff]  ;;  %v61_v50 = vld [vmem:[%s7360_s1 + $0x118] sm:$0xff]  ;;  %v44_v53 = vld [vmem:[%s7360_s1 + $0x90] sm:$0xff] }
  0x1d   :  { %3710 = vmatpush.xpose.msk.msra.mxu3 %vm164_vm0, %v83_v27  ;;  %v78_v47 = vld [vmem:[%s7360_s1 + $0x1a0] sm:$0xff]  ;;  %v77_v51 = vld [vmem:[%s7360_s1 + $0x198] sm:$0xff]  ;;  %v60_v54 = vld [vmem:[%s7360_s1 + $0x110] sm:$0xff] }
  0x1e   :  { %3660 = vmatpush.xpose.msk.msra.mxu0 %vm164_vm0, %v34_v28  ;;  %v76_v55 = vld [vmem:[%s7360_s1 + $0x190] sm:$0xff]  ;;  %v27_v56 = vld [vmem:[%s7360_s1 + $0x8] sm:$0xff]  ;;  %v26_v60 = vld [vmem:[%s7360_s1] sm:$0xff] }
  0x1f   :  { %3677 = vmatpush.xpose.msk.msra.mxu1 %vm164_vm0, %v50_v29  ;;  %v43_v57 = vld [vmem:[%s7360_s1 + $0x88] sm:$0xff]  ;;  %v42_v61 = vld [vmem:[%s7360_s1 + $0x80] sm:$0xff]  ;;  %v105_v0 = vld [vmem:[%s7360_s1 + $0x278] sm:$0xff] }
  0x20   :  { %3694 = vmatpush.xpose.msk.msra.mxu2 %vm164_vm0, %v66_v30  ;;  %v59_v58 = vld [vmem:[%s7360_s1 + $0x108] sm:$0xff]  ;;  %v58_v62 = vld [vmem:[%s7360_s1 + $0x100] sm:$0xff]  ;;  %v121_v1 = vld [vmem:[%s7360_s1 + $0x2f8] sm:$0xff] }
  0x21   :  { %3711 = vmatpush.xpose.msk.msra.mxu3 %vm164_vm0, %v82_v31  ;;  %v75_v59 = vld [vmem:[%s7360_s1 + $0x188] sm:$0xff]  ;;  %v74_v63 = vld [vmem:[%s7360_s1 + $0x180] sm:$0xff]  ;;  %v137_v3 = vld [vmem:[%s7360_s1 + $0x378] sm:$0xff] }
  0x22   :  { %3661 = vmatpush.xpose.msk.msra.mxu0 %vm164_vm0, %v33_v32  ;;  %v4228_v2 = vld [vmem:[%s7359_s0] sm:$0x1]  ;;  %v145_v4 = vld [vmem:[%s7360_s1 + $0x3b8] sm:$0xff]  ;;  %v104_v5 = vld [vmem:[%s7360_s1 + $0x270] sm:$0xff] }
  0x23   :  { %3678 = vmatpush.xpose.msk.msra.mxu1 %vm164_vm0, %v49_v33  ;;  %v120_v6 = vld [vmem:[%s7360_s1 + $0x2f0] sm:$0xff]  ;;  %v103_v9 = vld [vmem:[%s7360_s1 + $0x268] sm:$0xff]  ;;  %v102_v13 = vld [vmem:[%s7360_s1 + $0x260] sm:$0xff] }
  0x24   :  { %3695 = vmatpush.xpose.msk.msra.mxu2 %vm164_vm0, %v65_v34  ;;  %v136_v7 = vld [vmem:[%s7360_s1 + $0x370] sm:$0xff]  ;;  %v119_v10 = vld [vmem:[%s7360_s1 + $0x2e8] sm:$0xff]  ;;  %v118_v14 = vld [vmem:[%s7360_s1 + $0x2e0] sm:$0xff] }
  0x25   :  { %3712 = vmatpush.xpose.msk.msra.mxu3 %vm164_vm0, %v81_v35  ;;  %v144_v8 = vld [vmem:[%s7360_s1 + $0x3b0] sm:$0xff]  ;;  %v135_v11 = vld [vmem:[%s7360_s1 + $0x368] sm:$0xff]  ;;  %v134_v15 = vld [vmem:[%s7360_s1 + $0x360] sm:$0xff] }
  0x26   :  { %3662 = vmatpush.xpose.msk.msra.mxu0 %vm164_vm0, %v32_v36  ;;  %v143_v12 = vld [vmem:[%s7360_s1 + $0x3a8] sm:$0xff]  ;;  %v142_v16 = vld [vmem:[%s7360_s1 + $0x3a0] sm:$0xff]  ;;  %v101_v17 = vld [vmem:[%s7360_s1 + $0x258] sm:$0xff] }
  0x27   :  { %3679 = vmatpush.xpose.msk.msra.mxu1 %vm164_vm0, %v48_v37  ;;  %v117_v18 = vld [vmem:[%s7360_s1 + $0x2d8] sm:$0xff]  ;;  %v100_v21 = vld [vmem:[%s7360_s1 + $0x250] sm:$0xff]  ;;  %v99_v25 = vld [vmem:[%s7360_s1 + $0x248] sm:$0xff] }
  0x28   :  { %3696 = vmatpush.xpose.msk.msra.mxu2 %vm164_vm0, %v64_v38  ;;  %v133_v19 = vld [vmem:[%s7360_s1 + $0x358] sm:$0xff]  ;;  %v116_v22 = vld [vmem:[%s7360_s1 + $0x2d0] sm:$0xff]  ;;  %v115_v26 = vld [vmem:[%s7360_s1 + $0x2c8] sm:$0xff] }
  0x29   :  { %3713 = vmatpush.xpose.msk.msra.mxu3 %vm164_vm0, %v80_v39  ;;  %v141_v20 = vld [vmem:[%s7360_s1 + $0x398] sm:$0xff]  ;;  %v132_v23 = vld [vmem:[%s7360_s1 + $0x350] sm:$0xff]  ;;  %v131_v27 = vld [vmem:[%s7360_s1 + $0x348] sm:$0xff] }
  0x2a   :  { %3663 = vmatpush.xpose.msk.msra.mxu0 %vm164_vm0, %v31_v40  ;;  %v140_v24 = vld [vmem:[%s7360_s1 + $0x390] sm:$0xff]  ;;  %v98_v28 = vld [vmem:[%s7360_s1 + $0x240] sm:$0xff]  ;;  %v97_v31 = vld [vmem:[%s7360_s1 + $0x238] sm:$0xff] }
  0x2b   :  { %3680 = vmatpush.xpose.msk.msra.mxu1 %vm164_vm0, %v47_v41  ;;  %v114_v29 = vld [vmem:[%s7360_s1 + $0x2c0] sm:$0xff]  ;;  %v113_v32 = vld [vmem:[%s7360_s1 + $0x2b8] sm:$0xff]  ;;  %v96_v34 = vld [vmem:[%s7360_s1 + $0x230] sm:$0xff] }
  0x2c   :  { %3697 = vmatpush.xpose.msk.msra.mxu2 %vm164_vm0, %v63_v42  ;;  %v130_v30 = vld [vmem:[%s7360_s1 + $0x340] sm:$0xff]  ;;  %v129_v33 = vld [vmem:[%s7360_s1 + $0x338] sm:$0xff]  ;;  %v112_v35 = vld [vmem:[%s7360_s1 + $0x2b0] sm:$0xff] }
  0x2d   :  { %3714 = vmatpush.xpose.msk.msra.mxu3 %vm164_vm0, %v79_v43  ;;  %v128_v36 = vld [vmem:[%s7360_s1 + $0x330] sm:$0xff]  ;;  %v95_v37 = vld [vmem:[%s7360_s1 + $0x228] sm:$0xff]  ;;  %v94_v40 = vld [vmem:[%s7360_s1 + $0x220] sm:$0xff] }
  0x2e   :  { %3664 = vmatpush.xpose.msk.msra.mxu0 %vm164_vm0, %v30_v44  ;;  %v111_v38 = vld [vmem:[%s7360_s1 + $0x2a8] sm:$0xff]  ;;  %v110_v41 = vld [vmem:[%s7360_s1 + $0x2a0] sm:$0xff]  ;;  %v93_v43 = vld [vmem:[%s7360_s1 + $0x218] sm:$0xff] }
  0x2f   :  { %3681 = vmatpush.xpose.msk.msra.mxu1 %vm164_vm0, %v46_v45  ;;  %v127_v39 = vld [vmem:[%s7360_s1 + $0x328] sm:$0xff]  ;;  %v126_v42 = vld [vmem:[%s7360_s1 + $0x320] sm:$0xff]  ;;  %v109_v44 = vld [vmem:[%s7360_s1 + $0x298] sm:$0xff] }
  0x30   :  { %3698 = vmatpush.xpose.msk.msra.mxu2 %vm164_vm0, %v62_v46  ;;  %v125_v45 = vld [vmem:[%s7360_s1 + $0x318] sm:$0xff]  ;;  %v92_v46 = vld [vmem:[%s7360_s1 + $0x210] sm:$0xff] }
  0x31   :  { %3715 = vmatpush.xpose.msk.msra.mxu3 %vm164_vm0, %v78_v47  ;;  %v91_v47 = vld [vmem:[%s7360_s1 + $0x208] sm:$0xff] }
  0x32   :  { %3665 = vmatpush.xpose.msk.msra.mxu0 %vm164_vm0, %v29_v48  ;;  %v139_v48 = vld [vmem:[%s7360_s1 + $0x388] sm:$0xff] }
  0x33   :  { %3682 = vmatpush.xpose.msk.msra.mxu1 %vm164_vm0, %v45_v49  ;;  %v108_v49 = vld [vmem:[%s7360_s1 + $0x290] sm:$0xff] }
  0x34   :  { %3699 = vmatpush.xpose.msk.msra.mxu2 %vm164_vm0, %v61_v50  ;;  %v124_v50 = vld [vmem:[%s7360_s1 + $0x310] sm:$0xff] }
  0x35   :  { %3716 = vmatpush.xpose.msk.msra.mxu3 %vm164_vm0, %v77_v51  ;;  %v90_v51 = vld [vmem:[%s7360_s1 + $0x200] sm:$0xff] }
  0x36   :  { %3666 = vmatpush.xpose.msk.msra.mxu0 %vm164_vm0, %v28_v52  ;;  %v138_v52 = vld [vmem:[%s7360_s1 + $0x380] sm:$0xff] }
  0x37   :  { %3683 = vmatpush.xpose.msk.msra.mxu1 %vm164_vm0, %v44_v53  ;;  %v1276_v53 = vld [vmem:[%s7362_s3 + $0xe0] sm:$0xff] }
  0x38   :  { %3700 = vmatpush.xpose.msk.msra.mxu2 %vm164_vm0, %v60_v54  ;;  %v1278_v54 = vld [vmem:[%s7362_s3 + $0xf0] sm:$0xff] }
  0x39   :  { %3717 = vmatpush.xpose.msk.msra.mxu3 %vm164_vm0, %v76_v55  ;;  %v1308_v55 = vld [vmem:[%s7362_s3 + $0x1e0] sm:$0xff] }
  0x3a   :  { %3667 = vmatpush.xpose.msk.msra.mxu0 %vm164_vm0, %v27_v56  ;;  %v1502_v56 = vpack.c.bf16 %v1278_v54, %v1276_v53 }
  0x3b   :  { %3684 = vmatpush.xpose.msk.msra.mxu1 %vm164_vm0, %v43_v57  ;;  %v1310_v57 = vld [vmem:[%s7362_s3 + $0x1f0] sm:$0xff] }
  0x3c   :  { %3701 = vmatpush.xpose.msk.msra.mxu2 %vm164_vm0, %v59_v58  ;;  %v1518_v58 = vpack.c.bf16 %v1310_v57, %v1308_v55  ;;  %v1326_v57 = vld [vmem:[%s7362_s3 + $0x270] sm:$0xff] }
  0x3d   :  { %3718 = vmatpush.xpose.msk.msra.mxu3 %vm164_vm0, %v75_v59  ;;  %v107_v59 = vld [vmem:[%s7360_s1 + $0x288] sm:$0xff] }
  0x3e   :  { %3668 = vmatpush.xpose.msk.msra.mxu0 %vm164_vm0, %v26_v60  ;;  %v123_v60 = vld [vmem:[%s7360_s1 + $0x308] sm:$0xff] }
  0x3f   :  { %3685 = vmatpush.xpose.msk.msra.mxu1 %vm164_vm0, %v42_v61  ;;  %v1272_v61 = vld [vmem:[%s7362_s3 + $0xc0] sm:$0xff] }
  0x40   :  { %3702 = vmatpush.xpose.msk.msra.mxu2 %vm164_vm0, %v58_v62  ;;  %v1274_v62 = vld [vmem:[%s7362_s3 + $0xd0] sm:$0xff] }
  0x41   :  { %3719 = vmatpush.xpose.msk.msra.mxu3 %vm164_vm0, %v74_v63  ;;  %3669 = vmatmul.msk.f32.vlgmr.msra.gmra.mxu0 %vm164_vm0, %v4228_v2  ;;  %v1304_v63 = vld [vmem:[%s7362_s3 + $0x1c0] sm:$0xff] }
  0x42   :  { %3721 = vmatpush.xpose.msk.msrb.mxu0 %vm164_vm0, %v105_v0  ;;  %3686 = vmatmul.msk.f32.vlgmr.msra.gmra.mxu1 %vm164_vm0, %v4228_v2  ;;  %v1500_v0 = vpack.c.bf16 %v1274_v62, %v1272_v61  ;;  %v1252_v62 = vld [vmem:[%s7362_s3 + $0x20] sm:$0xff] }
  0x43   :  { %3738 = vmatpush.xpose.msk.msrb.mxu1 %vm164_vm0, %v121_v1  ;;  %3703 = vmatmul.msk.f32.vlgmr.msra.gmra.mxu2 %vm164_vm0, %v4228_v2  ;;  %v1306_v1 = vld [vmem:[%s7362_s3 + $0x1d0] sm:$0xff] }
  0x44   :  { %3720 = vmatmul.msk.f32.vlgmr.msra.gmra.mxu3 %vm164_vm0, %v4228_v2  ;;  %3755 = vmatpush.xpose.msk.msrb.mxu2 %vm164_vm0, %v137_v3  ;;  %v1516_v3 = vpack.c.bf16 %v1306_v1, %v1304_v63  ;;  %v1254_v63 = vld [vmem:[%s7362_s3 + $0x30] sm:$0xff] }
  0x45   :  { %3772 = vmatpush.xpose.msk.msrb.mxu3 %vm164_vm0, %v145_v4  ;;  %v1340_v4 = vld [vmem:[%s7362_s3 + $0x2e0] sm:$0xff] }
  0x46   :  { %3722 = vmatpush.xpose.msk.msrb.mxu0 %vm164_vm0, %v104_v5  ;;  %v1342_v5 = vld [vmem:[%s7362_s3 + $0x2f0] sm:$0xff] }
  0x47   :  { %3739 = vmatpush.xpose.msk.msrb.mxu1 %vm164_vm0, %v120_v6  ;;  %v1372_v6 = vld [vmem:[%s7362_s3 + $0x3e0] sm:$0xff] }
  0x48   :  { %3756 = vmatpush.xpose.msk.msrb.mxu2 %vm164_vm0, %v136_v7  ;;  %v106_v7 = vld [vmem:[%s7360_s1 + $0x280] sm:$0xff] }
  0x49   :  { %3773 = vmatpush.xpose.msk.msrb.mxu3 %vm164_vm0, %v144_v8  ;;  %v122_v8 = vld [vmem:[%s7360_s1 + $0x300] sm:$0xff] }
  0x4a   :  { %3723 = vmatpush.xpose.msk.msrb.mxu0 %vm164_vm0, %v103_v9  ;;  %v1534_v9 = vpack.c.bf16 %v1342_v5, %v1340_v4  ;;  %v1490_v4 = vpack.c.bf16 %v1254_v63, %v1252_v62  ;;  %v1286_v5 = vld [vmem:[%s7362_s3 + $0x130] sm:$0xff] }
  0x4b   :  { %3740 = vmatpush.xpose.msk.msrb.mxu1 %vm164_vm0, %v119_v10  ;;  %v1374_v10 = vld [vmem:[%s7362_s3 + $0x3f0] sm:$0xff] }
  0x4c   :  { %3757 = vmatpush.xpose.msk.msrb.mxu2 %vm164_vm0, %v135_v11  ;;  %v1550_v11 = vpack.c.bf16 %v1374_v10, %v1372_v6  ;;  %v1322_v10 = vld [vmem:[%s7362_s3 + $0x250] sm:$0xff] }
  0x4d   :  { %3774 = vmatpush.xpose.msk.msrb.mxu3 %vm164_vm0, %v143_v12  ;;  %v1268_v12 = vld [vmem:[%s7362_s3 + $0xa0] sm:$0xff] }
  0x4e   :  { %3724 = vmatpush.xpose.msk.msrb.mxu0 %vm164_vm0, %v102_v13  ;;  %v1270_v13 = vld [vmem:[%s7362_s3 + $0xb0] sm:$0xff] }
  0x4f   :  { %3741 = vmatpush.xpose.msk.msrb.mxu1 %vm164_vm0, %v118_v14  ;;  %v1300_v14 = vld [vmem:[%s7362_s3 + $0x1a0] sm:$0xff] }
  0x50   :  { %3758 = vmatpush.xpose.msk.msrb.mxu2 %vm164_vm0, %v134_v15  ;;  %v1498_v15 = vpack.c.bf16 %v1270_v13, %v1268_v12  ;;  %v1354_v13 = vld [vmem:[%s7362_s3 + $0x350] sm:$0xff] }
  0x51   :  { %3775 = vmatpush.xpose.msk.msrb.mxu3 %vm164_vm0, %v142_v16  ;;  %v1302_v16 = vld [vmem:[%s7362_s3 + $0x1b0] sm:$0xff] }
  0x52   :  { %3725 = vmatpush.xpose.msk.msrb.mxu0 %vm164_vm0, %v101_v17  ;;  %v1514_v17 = vpack.c.bf16 %v1302_v16, %v1300_v14 }
  0x53   :  { %3742 = vmatpush.xpose.msk.msrb.mxu1 %vm164_vm0, %v117_v18  ;;  %v1336_v18 = vld [vmem:[%s7362_s3 + $0x2c0] sm:$0xff] }
  0x54   :  { %3759 = vmatpush.xpose.msk.msrb.mxu2 %vm164_vm0, %v133_v19  ;;  %v1338_v19 = vld [vmem:[%s7362_s3 + $0x2d0] sm:$0xff] }
  0x55   :  { %3776 = vmatpush.xpose.msk.msrb.mxu3 %vm164_vm0, %v141_v20  ;;  %v1368_v20 = vld [vmem:[%s7362_s3 + $0x3c0] sm:$0xff] }
  0x56   :  { %3726 = vmatpush.xpose.msk.msrb.mxu0 %vm164_vm0, %v100_v21  ;;  %v1532_v21 = vpack.c.bf16 %v1338_v19, %v1336_v18  ;;  %v1250_v18 = vld [vmem:[%s7362_s3 + $0x10] sm:$0xff] }
  0x57   :  { %3743 = vmatpush.xpose.msk.msrb.mxu1 %vm164_vm0, %v116_v22  ;;  %v1370_v22 = vld [vmem:[%s7362_s3 + $0x3d0] sm:$0xff] }
  0x58   :  { %3760 = vmatpush.xpose.msk.msrb.mxu2 %vm164_vm0, %v132_v23  ;;  %v1548_v23 = vpack.c.bf16 %v1370_v22, %v1368_v20  ;;  %v1280_v22 = vld [vmem:[%s7362_s3 + $0x100] sm:$0xff] }
  0x59   :  { %3777 = vmatpush.xpose.msk.msrb.mxu3 %vm164_vm0, %v140_v24  ;;  %v1264_v24 = vld [vmem:[%s7362_s3 + $0x80] sm:$0xff] }
  0x5a   :  { %3727 = vmatpush.xpose.msk.msrb.mxu0 %vm164_vm0, %v99_v25  ;;  %v1266_v25 = vld [vmem:[%s7362_s3 + $0x90] sm:$0xff] }
  0x5b   :  { %3744 = vmatpush.xpose.msk.msrb.mxu1 %vm164_vm0, %v115_v26  ;;  %v1296_v26 = vld [vmem:[%s7362_s3 + $0x180] sm:$0xff] }
  0x5c   :  { %3761 = vmatpush.xpose.msk.msrb.mxu2 %vm164_vm0, %v131_v27  ;;  %v1496_v27 = vpack.c.bf16 %v1266_v25, %v1264_v24  ;;  %v1316_v25 = vld [vmem:[%s7362_s3 + $0x220] sm:$0xff] }
  0x5d   :  { %3778 = vmatpush.xpose.msk.msrb.mxu3 %vm164_vm0, %v139_v48  ;;  %v1256_v48 = vld [vmem:[%s7362_s3 + $0x40] sm:$0xff] }
  0x5e   :  { %3728 = vmatpush.xpose.msk.msrb.mxu0 %vm164_vm0, %v98_v28  ;;  %v1298_v28 = vld [vmem:[%s7362_s3 + $0x190] sm:$0xff] }
  0x5f   :  { %3745 = vmatpush.xpose.msk.msrb.mxu1 %vm164_vm0, %v114_v29  ;;  %v1512_v29 = vpack.c.bf16 %v1298_v28, %v1296_v26  ;;  %v1318_v26 = vld [vmem:[%s7362_s3 + $0x230] sm:$0xff] }
  0x60   :  { %3762 = vmatpush.xpose.msk.msrb.mxu2 %vm164_vm0, %v130_v30  ;;  %v1332_v30 = vld [vmem:[%s7362_s3 + $0x2a0] sm:$0xff]  ;;  %v1522_v28 = vpack.c.bf16 %v1318_v26, %v1316_v25 }
  0x61   :  { %3779 = vmatpush.xpose.msk.msrb.mxu3 %vm164_vm0, %v138_v52  ;;  %v1290_v52 = vld [vmem:[%s7362_s3 + $0x150] sm:$0xff] }
  0x62   :  { %3729 = vmatpush.xpose.msk.msrb.mxu0 %vm164_vm0, %v97_v31  ;;  %v1334_v31 = vld [vmem:[%s7362_s3 + $0x2b0] sm:$0xff] }
  0x63   :  { %3746 = vmatpush.xpose.msk.msrb.mxu1 %vm164_vm0, %v113_v32  ;;  %v1530_v32 = vpack.c.bf16 %v1334_v31, %v1332_v30 }
  0x64   :  { %3763 = vmatpush.xpose.msk.msrb.mxu2 %vm164_vm0, %v129_v33  ;;  %3780 = vmatmul.msk.f32.vlgmr.msrb.gmra.mxu3 %vm164_vm0, %v4228_v2  ;;  %v1366_v33 = vld [vmem:[%s7362_s3 + $0x3b0] sm:$0xff] }
  0x65   :  { %1639 = vmatpush.bf16.msra.mxu3 %v1502_v56  ;;  %v1324_v56 = vld [vmem:[%s7362_s3 + $0x260] sm:$0xff] }
  0x66   :  { %3730 = vmatpush.xpose.msk.msrb.mxu0 %vm164_vm0, %v96_v34 }
  0x67   :  { %3747 = vmatpush.xpose.msk.msrb.mxu1 %vm164_vm0, %v112_v35  ;;  %v1260_v35 = vld [vmem:[%s7362_s3 + $0x60] sm:$0xff] }
  0x68   :  { %3764 = vmatpush.xpose.msk.msrb.mxu2 %vm164_vm0, %v128_v36  ;;  %v1262_v36 = vld [vmem:[%s7362_s3 + $0x70] sm:$0xff] }
  0x69   :  { %1640 = vmatpush.bf16.msra.mxu3 %v1500_v0  ;;  %v1284_v0 = vld [vmem:[%s7362_s3 + $0x120] sm:$0xff] }
  0x6a   :  { %3731 = vmatpush.xpose.msk.msrb.mxu0 %vm164_vm0, %v95_v37  ;;  %v1292_v37 = vld [vmem:[%s7362_s3 + $0x160] sm:$0xff] }
  0x6b   :  { %3748 = vmatpush.xpose.msk.msrb.mxu1 %vm164_vm0, %v111_v38  ;;  %v1494_v38 = vpack.c.bf16 %v1262_v36, %v1260_v35  ;;  %v1406_v35 = vld [vmem:[%s7362_s3 + $0x4f0] sm:$0xff]  ;;  %v1312_v36 = vld [vmem:[%s7362_s3 + $0x200] sm:$0xff] }
  0x6c   :  { %3765 = vmatpush.xpose.msk.msrb.mxu2 %vm164_vm0, %v127_v39  ;;  %v1294_v39 = vld [vmem:[%s7362_s3 + $0x170] sm:$0xff] }
  0x6d   :  { %1641 = vmatpush.bf16.msra.mxu3 %v1498_v15 }
  0x6e   :  { %3732 = vmatpush.xpose.msk.msrb.mxu0 %vm164_vm0, %v94_v40  ;;  %v1510_v40 = vpack.c.bf16 %v1294_v39, %v1292_v37  ;;  %v1344_v39 = vld [vmem:[%s7362_s3 + $0x300] sm:$0xff] }
  0x6f   :  { %3749 = vmatpush.xpose.msk.msrb.mxu1 %vm164_vm0, %v110_v41  ;;  %v1328_v41 = vld [vmem:[%s7362_s3 + $0x280] sm:$0xff] }
  0x70   :  { %3766 = vmatpush.xpose.msk.msrb.mxu2 %vm164_vm0, %v126_v42  ;;  %v1330_v42 = vld [vmem:[%s7362_s3 + $0x290] sm:$0xff] }
  0x71   :  { %1642 = vmatpush.bf16.msra.mxu3 %v1496_v27  ;;  %v1348_v27 = vld [vmem:[%s7362_s3 + $0x320] sm:$0xff] }
  0x72   :  { %3733 = vmatpush.xpose.msk.msrb.mxu0 %vm164_vm0, %v93_v43  ;;  %v1360_v43 = vld [vmem:[%s7362_s3 + $0x380] sm:$0xff] }
  0x73   :  { %3750 = vmatpush.xpose.msk.msrb.mxu1 %vm164_vm0, %v109_v44  ;;  %v4574_v44 = vld [vmem:[%s7361_s2] sm:$0xff] }
  0x74   :  { %3767 = vmatpush.xpose.msk.msrb.mxu2 %vm164_vm0, %v125_v45  ;;  %v1528_v45 = vpack.c.bf16 %v1330_v42, %v1328_v41  ;;  %v148_v53 = vperm.slane %v4574_v44, 0  ;;  %v149_v54 = vperm.slane %v4574_v44, 1  ;;  %v150_v19 = vperm.slane %v4574_v44, 2 }
  0x75   :  { %1643 = vmatpush.bf16.msra.mxu3 %v1494_v38  ;;  %v151_v20 = vperm.slane %v4574_v44, 3  ;;  %v1314_v38 = vld [vmem:[%s7362_s3 + $0x210] sm:$0xff] }
  0x76   :  { %3734 = vmatpush.xpose.msk.msrb.mxu0 %vm164_vm0, %v92_v46  ;;  %v1362_v46 = vld [vmem:[%s7362_s3 + $0x390] sm:$0xff] }
  0x77   :  { %3751 = vmatpush.xpose.msk.msrb.mxu1 %vm164_vm0, %v108_v49  ;;  %v1258_v49 = vld [vmem:[%s7362_s3 + $0x50] sm:$0xff] }
  0x78   :  { %3768 = vmatpush.xpose.msk.msrb.mxu2 %vm164_vm0, %v124_v50  ;;  %v1288_v50 = vld [vmem:[%s7362_s3 + $0x140] sm:$0xff] }
  0x79   :  { %v1508_v55 = vpack.c.bf16 %v1290_v52, %v1288_v50  ;;  %v1484_v50 = vld [vmem:[%s7362_s3 + $0x760] sm:$0xff] }
  0x7a   :  { %3735 = vmatpush.xpose.msk.msrb.mxu0 %vm164_vm0, %v91_v47  ;;  %v1544_v47 = vpack.c.bf16 %v1362_v46, %v1360_v43  ;;  %v1520_v43 = vpack.c.bf16 %v1314_v38, %v1312_v36  ;;  %v1436_v52 = vld [vmem:[%s7362_s3 + $0x5e0] sm:$0xff]  ;;  %v841_v38 = vld [vmem:[%s7363_s4 + $0x8] sm:$0xff] }
  0x7b   :  { %3752 = vmatpush.xpose.msk.msrb.mxu1 %vm164_vm0, %v107_v59  ;;  %v1526_v59 = vpack.c.bf16 %v1326_v57, %v1324_v56 }
  0x7c   :  { %3769 = vmatpush.xpose.msk.msrb.mxu2 %vm164_vm0, %v123_v60  ;;  %v1358_v60 = vld [vmem:[%s7362_s3 + $0x370] sm:$0xff] }
  0x7e   :  { %3736 = vmatpush.xpose.msk.msrb.mxu0 %vm164_vm0, %v90_v51  ;;  %v1492_v51 = vpack.c.bf16 %v1258_v49, %v1256_v48 }
  0x7f   :  { %3753 = vmatpush.xpose.msk.msrb.mxu1 %vm164_vm0, %v106_v7 }
  0x80   :  { %3770 = vmatpush.xpose.msk.msrb.mxu2 %vm164_vm0, %v122_v8  ;;  %1644 = vmatpush.bf16.msra.mxu3 %v1492_v51  ;;  %v1506_v8 = vpack.c.bf16 %v1286_v5, %v1284_v0  ;;  %v1486_v51 = vld [vmem:[%s7362_s3 + $0x770] sm:$0xff]  ;;  %v1400_v5 = vld [vmem:[%s7362_s3 + $0x4c0] sm:$0xff] }
  0x81   :  { %3737 = vmatmul.msk.f32.vlgmr.msrb.gmra.mxu0 %vm164_vm0, %v4228_v2  ;;  %v1606_v56 = vpack.c.bf16 %v1486_v51, %v1484_v50 }
  0x82   :  { %1698 = vmatpush.bf16.msra.mxu0 %v1518_v58  ;;  %3754 = vmatmul.msk.f32.vlgmr.msrb.gmra.mxu1 %vm164_vm0, %v4228_v2  ;;  %v1356_v58 = vld [vmem:[%s7362_s3 + $0x360] sm:$0xff] }
  0x83   :  { %1757 = vmatpush.bf16.msra.mxu1 %v1534_v9  ;;  %3771 = vmatmul.msk.f32.vlgmr.msrb.gmra.mxu2 %vm164_vm0, %v4228_v2  ;;  %v1364_v2 = vld [vmem:[%s7362_s3 + $0x3a0] sm:$0xff]  ;;  %v1542_v61 = vpack.c.bf16 %v1358_v60, %v1356_v58 }
  0x84   :  { %1816 = vmatpush.bf16.msra.mxu2 %v1550_v11  ;;  %v1546_v34 = vpack.c.bf16 %v1366_v33, %v1364_v2  ;;  %v1320_v9 = vld [vmem:[%s7362_s3 + $0x240] sm:$0xff]  ;;  %1645 = vmatpush.bf16.msra.mxu3 %v1490_v4 }
  0x85   :  { %v1352_v11 = vld [vmem:[%s7362_s3 + $0x340] sm:$0xff]  ;;  %v1524_v12 = vpack.c.bf16 %v1322_v10, %v1320_v9 }
  0x86   :  { %1699 = vmatpush.bf16.msra.mxu0 %v1516_v3  ;;  %v1540_v16 = vpack.c.bf16 %v1354_v13, %v1352_v11 }
  0x87   :  { %1758 = vmatpush.bf16.msra.mxu1 %v1532_v21 }
  0x88   :  { %1817 = vmatpush.bf16.msra.mxu2 %v1548_v23  ;;  %v1282_v23 = vld [vmem:[%s7362_s3 + $0x110] sm:$0xff] }
  0x89   :  { %v1504_v24 = vpack.c.bf16 %v1282_v23, %v1280_v22  ;;  %v840_v23 = vld [vmem:[%s7363_s4] sm:$0xff] }
  0x8a   :  { %1700 = vmatpush.bf16.msra.mxu0 %v1514_v17  ;;  %v1248_v17 = vld [vmem:[%s7362_s3] sm:$0xff] }
  0x8b   :  { %1759 = vmatpush.bf16.msra.mxu1 %v1530_v32  ;;  %v1488_v21 = vpack.c.bf16 %v1250_v18, %v1248_v17  ;;  %v1398_v17 = vld [vmem:[%s7362_s3 + $0x4b0] sm:$0xff] }
  0x8c   :  { %1818 = vmatpush.bf16.msra.mxu2 %v1546_v34  ;;  %v1404_v34 = vld [vmem:[%s7362_s3 + $0x4e0] sm:$0xff] }
  0x8d   :  { %1646 = vmatpush.bf16.msra.mxu3 %v1488_v21  ;;  %v1566_v37 = vpack.c.bf16 %v1406_v35, %v1404_v34  ;;  %v1434_v34 = vld [vmem:[%s7362_s3 + $0x5d0] sm:$0xff]  ;;  %v1464_v35 = vld [vmem:[%s7362_s3 + $0x6c0] sm:$0xff] }
  0x8e   :  { %1701 = vmatpush.bf16.msra.mxu0 %v1512_v29  ;;  %v1350_v29 = vld [vmem:[%s7362_s3 + $0x330] sm:$0xff] }
  0x8f   :  { %1760 = vmatpush.bf16.msra.mxu1 %v1528_v45  ;;  %v1538_v2 = vpack.c.bf16 %v1350_v29, %v1348_v27  ;;  %v848_v29 = vld [vmem:[%s7363_s4 + $0x40] sm:$0xff] }
  0x90   :  { %1819 = vmatpush.bf16.msra.mxu2 %v1544_v47 }
  0x91   :  { %1875 = vmatpush.bf16.msrb.mxu3 %v1566_v37 }
  0x92   :  { %1702 = vmatpush.bf16.msra.mxu0 %v1510_v40  ;;  %v1346_v40 = vld [vmem:[%s7362_s3 + $0x310] sm:$0xff] }
  0x93   :  { %1761 = vmatpush.bf16.msra.mxu1 %v1526_v59  ;;  %v1536_v45 = vpack.c.bf16 %v1346_v40, %v1344_v39  ;;  %v849_v39 = vld [vmem:[%s7363_s4 + $0x48] sm:$0xff] }
  0x94   :  { %1820 = vmatpush.bf16.msra.mxu2 %v1542_v61 }
  0x96   :  { %1703 = vmatpush.bf16.msra.mxu0 %v1508_v55  ;;  %v1470_v55 = vld [vmem:[%s7362_s3 + $0x6f0] sm:$0xff] }
  0x97   :  { %1762 = vmatpush.bf16.msra.mxu1 %v1524_v12 }
  0x98   :  { %1821 = vmatpush.bf16.msra.mxu2 %v1540_v16 }
  0x9a   :  { %1704 = vmatpush.bf16.msra.mxu0 %v1506_v8 }
  0x9b   :  { %1763 = vmatpush.bf16.msra.mxu1 %v1522_v28 }
  0x9c   :  { %1822 = vmatpush.bf16.msra.mxu2 %v1538_v2 }
  0x9e   :  { %1705 = vmatpush.bf16.msra.mxu0 %v1504_v24 }
  0x9f   :  { %1764 = vmatpush.bf16.msra.mxu1 %v1520_v43 }
  0xa0   :  { %1823 = vmatpush.bf16.msra.mxu2 %v1536_v45 }
  0xa4   :  { %2056 = vmatpush.bf16.msrb.mxu2 %v1606_v56 }
  0xbe   :  { %v545_v1 = vpop.f32.mrf.mxu0 }
  0xbf   :  { %v565_v3 = vpop.f32.mrf.mxu1  ;;  %v546_v6 = vadd.f32 %v545_v1, %v148_v53  ;;  %v1438_v53 = vld [vmem:[%s7362_s3 + $0x5f0] sm:$0xff] }
  0xc0   :  { %v566_v7 = vadd.f32 %v565_v3, %v149_v54  ;;  %v1468_v54 = vld [vmem:[%s7362_s3 + $0x6e0] sm:$0xff]  ;;  %v1582_v57 = vpack.c.bf16 %v1438_v53, %v1436_v52 }
  0xc1   :  { %v3781_v14 = vmul.f32 -1.442695, %v546_v6  ;;  %v1598_v58 = vpack.c.bf16 %v1470_v55, %v1468_v54  ;;  %v1402_v6 = vld [vmem:[%s7362_s3 + $0x4d0] sm:$0xff] }
  0xc2   :  { %v3782_v15 = vmul.f32 -1.442695, %v566_v7  ;;  %1934 = vmatpush.bf16.msrb.mxu0 %v1582_v57  ;;  %v1564_v13 = vpack.c.bf16 %v1402_v6, %v1400_v5 }
  0xc3   :  { %3826 = vpow2.f32 %v3781_v14  ;;  %1993 = vmatpush.bf16.msrb.mxu1 %v1598_v58 }
  0xc4   :  { %3828 = vpow2.f32 %v3782_v15  ;;  %1876 = vmatpush.bf16.msrb.mxu3 %v1564_v13  ;;  %v864_v13 = vld [vmem:[%s7363_s4 + $0xc0] sm:$0xff] }
  0xc6   :  { %v585_v30 = vpop.f32.mrf.mxu2 }
  0xc7   :  { %v605_v31 = vpop.f32.mrf.mxu3  ;;  %v586_v32 = vadd.f32 %v585_v30, %v150_v19 }
  0xc8   :  { %v606_v33 = vadd.f32 %v605_v31, %v151_v20 }
  0xc9   :  { %v3783_v41 = vmul.f32 -1.442695, %v586_v32  ;;  %v3827_v46 = vpop.eup %3826 }
  0xca   :  { %v3784_v42 = vmul.f32 -1.442695, %v606_v33  ;;  %v3829_v47 = vpop.eup %3828  ;;  %v712_v48 = vadd.f32 1.0, %v3827_v46  ;;  %v1432_v33 = vld [vmem:[%s7362_s3 + $0x5c0] sm:$0xff] }
  0xcb   :  { %3830 = vpow2.f32 %v3783_v41  ;;  %v713_v49 = vadd.f32 1.0, %v3829_v47  ;;  %v1580_v40 = vpack.c.bf16 %v1434_v34, %v1432_v33  ;;  %v1466_v41 = vld [vmem:[%s7362_s3 + $0x6d0] sm:$0xff]  ;;  %v1428_v33 = vld [vmem:[%s7362_s3 + $0x5a0] sm:$0xff] }
  0xcc   :  { %3832 = vpow2.f32 %v3784_v42  ;;  %v729_v3 = vand.u32 2147483647, %v712_v48  ;;  %v731_v8 = vand.u32 2147483648, %v712_v48  ;;  %vm725_vm2 = vweird.f32 %v712_v48  ;;  %v1430_v34 = vld [vmem:[%s7362_s3 + $0x5b0] sm:$0xff] }
  0xcd   :  { %3834 = vrcp.f32 %v712_v48  ;;  %v744_v9 = vand.u32 2147483647, %v713_v49  ;;  %v746_v11 = vand.u32 2147483648, %v713_v49  ;;  %vm740_vm3 = vweird.f32 %v713_v49  ;;  %1935 = vmatpush.bf16.msrb.mxu0 %v1580_v40 }
  0xce   :  { %3836 = vrcp.f32 %v713_v49  ;;  %vm4703_vm5 = vcmp.eq.f32.partialorder %v729_v3, 8.507059e+37  ;;  %v732_v18 = vor.u32 1.1754944e-38, %v731_v8  ;;  %v1596_v46 = vpack.c.bf16 %v1466_v41, %v1464_v35  ;;  %v843_v3 = vld [vmem:[%s7363_s4 + $0x18] sm:$0xff]  ;;  %v1460_v35 = vld [vmem:[%s7362_s3 + $0x6a0] sm:$0xff] }
  0xcf   :  { %vm4707_vm6 = vcmp.eq.f32.partialorder %v744_v9, 8.507059e+37  ;;  %v747_v21 = vor.u32 1.1754944e-38, %v746_v11 }
  0xd0   :  { %1994 = vmatpush.bf16.msrb.mxu1 %v1596_v46  ;;  %v872_v46 = vld [vmem:[%s7363_s4 + $0x100] sm:$0xff] }
  0xd1   :  { %v3831_v59 = vpop.eup %3830 }
  0xd2   :  { %v3833_v60 = vpop.eup %3832  ;;  %v4691_v61 = vadd.f32 1.0, %v3831_v59 }
  0xd3   :  { %v3835_v62 = vpop.eup %3834  ;;  %v4693_v63 = vadd.f32 1.0, %v3833_v60 }
  0xd4   :  { %v3837_v0 = vpop.eup %3836  ;;  %v721_v1 = vmul.f32 %v3835_v62, %v712_v48  ;;  %3838 = vrcp.f32 %v4691_v61  ;;  %vm726_vm1 = vweird.f32 %v3835_v62  ;;  %vm755_vm8 = vweird.f32 %v4691_v61 }
  0xd5   :  { %v736_v4 = vmul.f32 %v3837_v0, %v713_v49  ;;  %3840 = vrcp.f32 %v4693_v63  ;;  %vm741_vm4 = vweird.f32 %v3837_v0  ;;  %vm727_vm7 = vmor %vm725_vm2, %vm726_vm1  ;;  %v759_v26 = vand.u32 2147483647, %v4691_v61 }
  0xd6   :  { %v722_v7 = vsub.f32 1.0, %v721_v1  ;;  %vm742_vm9 = vmor %vm740_vm3, %vm741_vm4  ;;  %v761_v27 = vand.u32 2147483648, %v4691_v61  ;;  %v774_v28 = vand.u32 2147483647, %v4693_v63  ;;  %v776_v47 = vand.u32 2147483648, %v4693_v63 }
  0xd7   :  { %v737_v10 = vsub.f32 1.0, %v736_v4  ;;  %vm770_vm13 = vweird.f32 %v4693_v63  ;;  %vm760_vm14 = vcmp.eq.f32.partialorder %v759_v26, 8.507059e+37  ;;  %v851_v4 = vld [vmem:[%s7363_s4 + $0x58] sm:$0xff] }
  0xd8   :  { %v723_v12 = vmul.f32 %v3835_v62, %v722_v7  ;;  %v762_v54 = vor.u32 1.1754944e-38, %v761_v27  ;;  %v777_v60 = vor.u32 1.1754944e-38, %v776_v47  ;;  %vm775_vm0 = vcmp.eq.f32.partialorder %v774_v28, 8.507059e+37  ;;  %v858_v27 = vld [vmem:[%s7363_s4 + $0x90] sm:$0xff]  ;;  %v880_v47 = vld [vmem:[%s7363_s4 + $0x140] sm:$0xff] }
  0xd9   :  { %v738_v14 = vmul.f32 %v3837_v0, %v737_v10  ;;  %v866_v28 = vld [vmem:[%s7363_s4 + $0xd0] sm:$0xff] }
  0xda   :  { %v3839_v15 = vpop.eup %3838  ;;  %v724_v16 = vadd.f32 %v3835_v62, %v723_v12  ;;  %v856_v12 = vld [vmem:[%s7363_s4 + $0x80] sm:$0xff] }
  0xdb   :  { %v739_v20 = vadd.f32 %v3837_v0, %v738_v14  ;;  %v751_v22 = vmul.f32 %v3839_v15, %v4691_v61  ;;  %v3841_v24 = vpop.eup %3840  ;;  %vm756_vm10 = vweird.f32 %v3839_v15  ;;  %v842_v61 = vld [vmem:[%s7363_s4 + $0x10] sm:$0xff]  ;;  %v857_v14 = vld [vmem:[%s7363_s4 + $0x88] sm:$0xff] }
  0xdc   :  { %v728_v25 = vsel %vm727_vm7, %v3835_v62, %v724_v16  ;;  %v766_v32 = vmul.f32 %v3841_v24, %v4693_v63  ;;  %vm771_vm11 = vweird.f32 %v3841_v24  ;;  %vm757_vm12 = vmor %vm755_vm8, %vm756_vm10  ;;  %v850_v62 = vld [vmem:[%s7363_s4 + $0x50] sm:$0xff]  ;;  %v1396_v16 = vld [vmem:[%s7362_s3 + $0x4a0] sm:$0xff] }
  0xdd   :  { %v733_v30 = vsel %vm4703_vm5, %v732_v18, %v728_v25  ;;  %v743_v31 = vsel %vm742_vm9, %v3837_v0, %v739_v20  ;;  %v752_v2 = vsub.f32 1.0, %v751_v22  ;;  %vm772_vm15 = vmor %vm770_vm13, %vm771_vm11  ;;  %v1480_v18 = vld [vmem:[%s7362_s3 + $0x740] sm:$0xff]  ;;  %v1482_v22 = vld [vmem:[%s7362_s3 + $0x750] sm:$0xff] }
  0xde   :  { %v4736_v36 = vperm.slane %v733_v30, 0  ;;  %v748_v37 = vsel %vm4707_vm6, %v747_v21, %v743_v31  ;;  %v767_v45 = vsub.f32 1.0, %v766_v32  ;;  %v1562_v21 = vpack.c.bf16 %v1398_v17, %v1396_v16  ;;  %v859_v30 = vld [vmem:[%s7363_s4 + $0x98] sm:$0xff]  ;;  %v896_v16 = vld [vmem:[%s7363_s4 + $0x1c0] sm:$0xff]  ;;  %v889_v17 = vld [vmem:[%s7363_s4 + $0x188] sm:$0xff] }
  0xdf   :  { %v4749_v42 = vperm.slane %v748_v37, 0  ;;  %v753_v43 = vmul.f32 %v3839_v15, %v752_v2  ;;  %v1604_v25 = vpack.c.bf16 %v1482_v22, %v1480_v18  ;;  %v867_v31 = vld [vmem:[%s7363_s4 + $0xd8] sm:$0xff]  ;;  %v1578_v37 = vpack.c.bf16 %v1430_v34, %v1428_v33  ;;  %v897_v18 = vld [vmem:[%s7363_s4 + $0x1c8] sm:$0xff] }
  0xe0   :  { %v1008_v48 = vmul.f32 %v4736_v36, %v840_v23  ;;  %v1016_v49 = vmul.f32 %v4736_v36, %v848_v29  ;;  %v768_v51 = vmul.f32 %v3841_v24, %v767_v45  ;;  %v1024_v19 = vmul.f32 %v4736_v36, %v856_v12  ;;  %1877 = vmatpush.bf16.msrb.mxu3 %v1562_v21 }
  0xe1   :  { %v754_v50 = vadd.f32 %v3839_v15, %v753_v43  ;;  %v1009_v52 = vmul.f32 %v4749_v42, %v841_v38  ;;  %v1017_v53 = vmul.f32 %v4749_v42, %v849_v39  ;;  %v1032_v20 = vmul.f32 %v4736_v36, %v864_v13  ;;  %2057 = vmatpush.bf16.msrb.mxu2 %v1604_v25  ;;  %v1462_v38 = vld [vmem:[%s7362_s3 + $0x6b0] sm:$0xff] }
  0xe2   :  { %v4760_v55 = vpack.c.bf16 %v1016_v49, %v1008_v48  ;;  %v769_v57 = vadd.f32 %v3841_v24, %v768_v51  ;;  %v1025_v23 = vmul.f32 %v4749_v42, %v857_v14  ;;  %v1594_v41 = vpack.c.bf16 %v1462_v38, %v1460_v35  ;;  %1936 = vmatpush.bf16.msrb.mxu0 %v1578_v37  ;;  %v873_v48 = vld [vmem:[%s7363_s4 + $0x108] sm:$0xff]  ;;  %v1394_v51 = vld [vmem:[%s7362_s3 + $0x490] sm:$0xff]  ;;  %v1388_v35 = vld [vmem:[%s7362_s3 + $0x460] sm:$0xff] }
  0xe3   :  { %v758_v56 = vsel %vm757_vm12, %v3839_v15, %v754_v50  ;;  %v4762_v58 = vpack.c.bf16 %v1017_v53, %v1009_v52  ;;  %v865_v15 = vld [vmem:[%s7363_s4 + $0xc8] sm:$0xff]  ;;  %v4821_v26 = vpack.c.bf16 %v1032_v20, %v1024_v19  ;;  %v1392_v50 = vld [vmem:[%s7362_s3 + $0x480] sm:$0xff]  ;;  %v1040_v52 = vmul.f32 %v4736_v36, %v872_v46  ;;  %v1458_v20 = vld [vmem:[%s7362_s3 + $0x690] sm:$0xff] }
  0xe4   :  { %v763_v59 = vsel %vm760_vm14, %v762_v54, %v758_v56  ;;  %1647 = vmatmul.bf16.vlgmr.msra.gmra.mxu3 %v4760_v55  ;;  %v773_v0 = vsel %vm772_vm15, %v3841_v24, %v769_v57  ;;  %v1033_v24 = vmul.f32 %v4749_v42, %v865_v15  ;;  %1995 = vmatpush.bf16.msrb.mxu1 %v1594_v41  ;;  %v881_v49 = vld [vmem:[%s7363_s4 + $0x148] sm:$0xff]  ;;  %v888_v15 = vld [vmem:[%s7363_s4 + $0x180] sm:$0xff]  ;;  %v1390_v37 = vld [vmem:[%s7362_s3 + $0x470] sm:$0xff] }
  0xe5   :  { %v4772_v63 = vperm.slane %v763_v59, 0  ;;  %1706 = vmatmul.bf16.vlgmr.msra.gmra.mxu0 %v4762_v58  ;;  %v778_v1 = vsel %vm775_vm0, %v777_v60, %v773_v0  ;;  %v1048_v53 = vmul.f32 %v4736_v36, %v880_v47  ;;  %v1560_v54 = vpack.c.bf16 %v1394_v51, %v1392_v50  ;;  %v874_v60 = vld [vmem:[%s7363_s4 + $0x110] sm:$0xff]  ;;  %v875_v0 = vld [vmem:[%s7363_s4 + $0x118] sm:$0xff]  ;;  %v1456_v19 = vld [vmem:[%s7362_s3 + $0x680] sm:$0xff] }
  0xe6   :  { %v4781_v5 = vperm.slane %v778_v1, 0  ;;  %v4829_v29 = vpack.c.bf16 %v1033_v24, %v1025_v23  ;;  %v1041_v56 = vmul.f32 %v4749_v42, %v873_v48  ;;  %v1049_v57 = vmul.f32 %v4749_v42, %v881_v49  ;;  %v883_v1 = vld [vmem:[%s7363_s4 + $0x158] sm:$0xff]  ;;  %v904_v47 = vld [vmem:[%s7363_s4 + $0x200] sm:$0xff]  ;;  %v905_v49 = vld [vmem:[%s7363_s4 + $0x208] sm:$0xff] }
  0xe7   :  { %v1010_v6 = vmul.f32 %v4772_v63, %v842_v61  ;;  %v1018_v7 = vmul.f32 %v4772_v63, %v850_v62  ;;  %v1026_v2 = vmul.f32 %v4772_v63, %v858_v27  ;;  %v1034_v32 = vmul.f32 %v4772_v63, %v866_v28  ;;  %1878 = vmatpush.bf16.msrb.mxu3 %v1560_v54  ;;  %v882_v61 = vld [vmem:[%s7363_s4 + $0x150] sm:$0xff]  ;;  %v912_v48 = vld [vmem:[%s7363_s4 + $0x240] sm:$0xff]  ;;  %v913_v50 = vld [vmem:[%s7363_s4 + $0x248] sm:$0xff] }
  0xe8   :  { %v1011_v9 = vmul.f32 %v4781_v5, %v843_v3  ;;  %v1019_v10 = vmul.f32 %v4781_v5, %v851_v4  ;;  %v1027_v39 = vmul.f32 %v4781_v5, %v859_v30  ;;  %v1035_v40 = vmul.f32 %v4781_v5, %v867_v31  ;;  %v890_v28 = vld [vmem:[%s7363_s4 + $0x190] sm:$0xff]  ;;  %v1476_v51 = vld [vmem:[%s7362_s3 + $0x720] sm:$0xff] }
  0xe9   :  { %v4785_v8 = vpack.c.bf16 %v1018_v7, %v1010_v6  ;;  %v4855_v43 = vpack.c.bf16 %v1034_v32, %v1026_v2  ;;  %v4883_v59 = vpack.c.bf16 %v1048_v53, %v1040_v52  ;;  %v4891_v62 = vpack.c.bf16 %v1049_v57, %v1041_v56  ;;  %v1424_v6 = vld [vmem:[%s7362_s3 + $0x580] sm:$0xff]  ;;  %v1426_v7 = vld [vmem:[%s7362_s3 + $0x590] sm:$0xff]  ;;  %v891_v2 = vld [vmem:[%s7363_s4 + $0x198] sm:$0xff] }
  0xea   :  { %v4790_v11 = vpack.c.bf16 %v1019_v10, %v1011_v9  ;;  %v4858_v45 = vpack.c.bf16 %v1035_v40, %v1027_v39  ;;  %v1042_v3 = vmul.f32 %v4772_v63, %v874_v60  ;;  %v1050_v4 = vmul.f32 %v4772_v63, %v882_v61  ;;  %v898_v30 = vld [vmem:[%s7363_s4 + $0x1d0] sm:$0xff]  ;;  %v899_v32 = vld [vmem:[%s7363_s4 + $0x1d8] sm:$0xff]  ;;  %v1420_v53 = vld [vmem:[%s7362_s3 + $0x560] sm:$0xff] }
  0xeb   :  { %1765 = vmatmul.bf16.vlgmr.msra.gmra.mxu1 %v4785_v8  ;;  %v1576_v9 = vpack.c.bf16 %v1426_v7, %v1424_v6  ;;  %v1043_v10 = vmul.f32 %v4781_v5, %v875_v0  ;;  %v1051_v12 = vmul.f32 %v4781_v5, %v883_v1  ;;  %v1056_v21 = vmul.f32 %v4736_v36, %v888_v15  ;;  %v1478_v52 = vld [vmem:[%s7362_s3 + $0x730] sm:$0xff]  ;;  %v1452_v61 = vld [vmem:[%s7362_s3 + $0x660] sm:$0xff]  ;;  %v907_v15 = vld [vmem:[%s7363_s4 + $0x218] sm:$0xff] }
  0xec   :  { %1824 = vmatmul.bf16.vlgmr.msra.gmra.mxu2 %v4790_v11  ;;  %v4911_v13 = vpack.c.bf16 %v1050_v4, %v1042_v3  ;;  %v1064_v22 = vmul.f32 %v4736_v36, %v896_v16  ;;  %v1592_v23 = vpack.c.bf16 %v1458_v20, %v1456_v19  ;;  %v1057_v24 = vmul.f32 %v4749_v42, %v889_v17  ;;  %v1422_v60 = vld [vmem:[%s7362_s3 + $0x570] sm:$0xff]  ;;  %v915_v16 = vld [vmem:[%s7363_s4 + $0x258] sm:$0xff]  ;;  %v1384_v19 = vld [vmem:[%s7362_s3 + $0x440] sm:$0xff] }
  0xed   :  { %1937 = vmatpush.bf16.msrb.mxu0 %v1576_v9  ;;  %v4914_v14 = vpack.c.bf16 %v1051_v12, %v1043_v10  ;;  %v1065_v25 = vmul.f32 %v4749_v42, %v897_v18  ;;  %v1058_v33 = vmul.f32 %v4772_v63, %v890_v28  ;;  %v1066_v34 = vmul.f32 %v4772_v63, %v898_v30  ;;  %v1454_v0 = vld [vmem:[%s7362_s3 + $0x670] sm:$0xff]  ;;  %v920_v28 = vld [vmem:[%s7363_s4 + $0x280] sm:$0xff] }
  0xee   :  { %1996 = vmatpush.bf16.msrb.mxu1 %v1592_v23  ;;  %v4939_v27 = vpack.c.bf16 %v1064_v22, %v1056_v21  ;;  %v1558_v38 = vpack.c.bf16 %v1390_v37, %v1388_v35  ;;  %v1059_v39 = vmul.f32 %v4781_v5, %v891_v2  ;;  %v1067_v40 = vmul.f32 %v4781_v5, %v899_v32  ;;  %v906_v9 = vld [vmem:[%s7363_s4 + $0x210] sm:$0xff]  ;;  %v928_v30 = vld [vmem:[%s7363_s4 + $0x2c0] sm:$0xff]  ;;  %v921_v2 = vld [vmem:[%s7363_s4 + $0x288] sm:$0xff] }
  0xef   :  { %v4947_v31 = vpack.c.bf16 %v1065_v25, %v1057_v24  ;;  %v4967_v41 = vpack.c.bf16 %v1066_v34, %v1058_v33  ;;  %v1072_v54 = vmul.f32 %v4736_v36, %v904_v47  ;;  %v1080_v56 = vmul.f32 %v4736_v36, %v912_v48  ;;  %v914_v10 = vld [vmem:[%s7363_s4 + $0x250] sm:$0xff]  ;;  %v929_v32 = vld [vmem:[%s7363_s4 + $0x2c8] sm:$0xff]  ;;  %v1416_v33 = vld [vmem:[%s7362_s3 + $0x540] sm:$0xff] }
  0xf0   :  { %1879 = vmatpush.bf16.msrb.mxu3 %v1558_v38  ;;  %v4970_v46 = vpack.c.bf16 %v1067_v40, %v1059_v39  ;;  %v1602_v57 = vpack.c.bf16 %v1478_v52, %v1476_v51  ;;  %v1073_v1 = vmul.f32 %v4749_v42, %v905_v49  ;;  %v1081_v3 = vmul.f32 %v4749_v42, %v913_v50  ;;  %v1386_v20 = vld [vmem:[%s7362_s3 + $0x450] sm:$0xff]  ;;  %v1448_v39 = vld [vmem:[%s7362_s3 + $0x640] sm:$0xff] }
  0xf1   :  { %v1574_v4 = vpack.c.bf16 %v1422_v60, %v1420_v53  ;;  %v1590_v6 = vpack.c.bf16 %v1454_v0, %v1452_v61  ;;  %v5007_v7 = vpack.c.bf16 %v1080_v56, %v1072_v54  ;;  %v1074_v17 = vmul.f32 %v4772_v63, %v906_v9  ;;  %v1418_v34 = vld [vmem:[%s7362_s3 + $0x550] sm:$0xff]  ;;  %v923_v54 = vld [vmem:[%s7363_s4 + $0x298] sm:$0xff]  ;;  %v937_v9 = vld [vmem:[%s7363_s4 + $0x308] sm:$0xff] }
  0xf2   :  { %2058 = vmatpush.bf16.msrb.mxu2 %v1602_v57  ;;  %v5015_v12 = vpack.c.bf16 %v1081_v3, %v1073_v1  ;;  %v1082_v18 = vmul.f32 %v4772_v63, %v914_v10  ;;  %v1556_v21 = vpack.c.bf16 %v1386_v20, %v1384_v19  ;;  %v1075_v22 = vmul.f32 %v4781_v5, %v907_v15  ;;  %v1450_v40 = vld [vmem:[%s7362_s3 + $0x650] sm:$0xff]  ;;  %v931_v56 = vld [vmem:[%s7363_s4 + $0x2d8] sm:$0xff]  ;;  %v945_v10 = vld [vmem:[%s7363_s4 + $0x348] sm:$0xff] }
  0xf3   :  { %1938 = vmatpush.bf16.msrb.mxu0 %v1574_v4  ;;  %1997 = vmatpush.bf16.msrb.mxu1 %v1590_v6  ;;  %v1083_v23 = vmul.f32 %v4781_v5, %v915_v16  ;;  %v1088_v35 = vmul.f32 %v4736_v36, %v920_v28  ;;  %v1096_v37 = vmul.f32 %v4736_v36, %v928_v30  ;;  %v922_v51 = vld [vmem:[%s7363_s4 + $0x290] sm:$0xff]  ;;  %v936_v4 = vld [vmem:[%s7363_s4 + $0x300] sm:$0xff]  ;;  %v152_v30 = vperm.slane %v4574_v44, 4 }
  0xf4   :  { %1652 = vmatmul.bf16.gmra.mxu3 %v4821_v26  ;;  %v5035_v24 = vpack.c.bf16 %v1082_v18, %v1074_v17  ;;  %v1572_v38 = vpack.c.bf16 %v1418_v34, %v1416_v33  ;;  %v1089_v47 = vmul.f32 %v4749_v42, %v921_v2  ;;  %v1097_v48 = vmul.f32 %v4749_v42, %v929_v32  ;;  %v930_v52 = vld [vmem:[%s7363_s4 + $0x2d0] sm:$0xff]  ;;  %v944_v6 = vld [vmem:[%s7363_s4 + $0x340] sm:$0xff] }
  0xf5   :  { %1711 = vmatmul.bf16.gmra.mxu0 %v4829_v29  ;;  %1880 = vmatpush.bf16.msrb.mxu3 %v1556_v21  ;;  %v5038_v25 = vpack.c.bf16 %v1083_v23, %v1075_v22  ;;  %v1588_v49 = vpack.c.bf16 %v1450_v40, %v1448_v39  ;;  %v5069_v50 = vpack.c.bf16 %v1096_v37, %v1088_v35  ;;  %v1380_v15 = vld [vmem:[%s7362_s3 + $0x420] sm:$0xff]  ;;  %v1382_v16 = vld [vmem:[%s7362_s3 + $0x430] sm:$0xff]  ;;  %v153_v35 = vperm.slane %v4574_v44, 5  ;;  %v947_v39 = vld [vmem:[%s7363_s4 + $0x358] sm:$0xff] }
  0xf6   :  { %v5077_v53 = vpack.c.bf16 %v1097_v48, %v1089_v47  ;;  %v1090_v57 = vmul.f32 %v4772_v63, %v922_v51  ;;  %v1098_v60 = vmul.f32 %v4772_v63, %v930_v52  ;;  %v1091_v61 = vmul.f32 %v4781_v5, %v923_v54  ;;  %v938_v22 = vld [vmem:[%s7363_s4 + $0x310] sm:$0xff]  ;;  %v1472_v2 = vld [vmem:[%s7362_s3 + $0x700] sm:$0xff] }
  0xf7   :  { %1939 = vmatpush.bf16.msrb.mxu0 %v1572_v38  ;;  %1998 = vmatpush.bf16.msrb.mxu1 %v1588_v49  ;;  %v1099_v0 = vmul.f32 %v4781_v5, %v931_v56  ;;  %v1104_v17 = vmul.f32 %v4736_v36, %v936_v4  ;;  %v1112_v18 = vmul.f32 %v4736_v36, %v944_v6  ;;  %v946_v28 = vld [vmem:[%s7363_s4 + $0x350] sm:$0xff]  ;;  %v939_v38 = vld [vmem:[%s7363_s4 + $0x318] sm:$0xff]  ;;  %v1412_v49 = vld [vmem:[%s7362_s3 + $0x520] sm:$0xff]  ;;  %v154_v4 = vperm.slane %v4574_v44, 6 }
  0xf8   :  { %v5091_v1 = vpack.c.bf16 %v1098_v60, %v1090_v57  ;;  %v1554_v19 = vpack.c.bf16 %v1382_v16, %v1380_v15  ;;  %v1105_v20 = vmul.f32 %v4749_v42, %v937_v9  ;;  %v1113_v21 = vmul.f32 %v4749_v42, %v945_v10  ;;  %v1474_v32 = vld [vmem:[%s7362_s3 + $0x710] sm:$0xff]  ;;  %v1444_v54 = vld [vmem:[%s7362_s3 + $0x620] sm:$0xff] }
  0xf9   :  { %v5094_v3 = vpack.c.bf16 %v1099_v0, %v1091_v61  ;;  %v5122_v23 = vpack.c.bf16 %v1112_v18, %v1104_v17  ;;  %v1600_v37 = vpack.c.bf16 %v1474_v32, %v1472_v2  ;;  %v1106_v47 = vmul.f32 %v4772_v63, %v938_v22  ;;  %v1414_v52 = vld [vmem:[%s7362_s3 + $0x530] sm:$0xff]  ;;  %v952_v18 = vld [vmem:[%s7363_s4 + $0x380] sm:$0xff]  ;;  %v953_v22 = vld [vmem:[%s7363_s4 + $0x388] sm:$0xff] }
  0xfa   :  { %1881 = vmatpush.bf16.msrb.mxu3 %v1554_v19  ;;  %v5134_v33 = vpack.c.bf16 %v1113_v21, %v1105_v20  ;;  %v1114_v48 = vmul.f32 %v4772_v63, %v946_v28  ;;  %v1446_v56 = vld [vmem:[%s7362_s3 + $0x630] sm:$0xff]  ;;  %v1107_v57 = vmul.f32 %v4781_v5, %v939_v38  ;;  %v1115_v60 = vmul.f32 %v4781_v5, %v947_v39  ;;  %v960_v19 = vld [vmem:[%s7363_s4 + $0x3c0] sm:$0xff]  ;;  %v685_v21 = vpop.f32.mrf.mxu3  ;;  %v961_v28 = vld [vmem:[%s7363_s4 + $0x3c8] sm:$0xff] }
  0xfb   :  { %1770 = vmatmul.bf16.gmra.mxu1 %v4855_v43  ;;  %7464 = vst [vmem:[#allocation5_spill] sm:$0xff] %v5094_v3  ;;  %2059 = vmatpush.bf16.msrb.mxu2 %v1600_v37  ;;  %v1570_v6 = vpack.c.bf16 %v1414_v52, %v1412_v49  ;;  %v1586_v9 = vpack.c.bf16 %v1446_v56, %v1444_v54  ;;  %v155_v17 = vperm.slane %v4574_v44, 7  ;;  %v954_v38 = vld [vmem:[%s7363_s4 + $0x390] sm:$0xff]  ;;  %v955_v56 = vld [vmem:[%s7363_s4 + $0x398] sm:$0xff] }
  0xfc   :  { %1829 = vmatmul.bf16.gmra.mxu2 %v4858_v45  ;;  %7465 = vst [vmem:[#allocation6_spill] sm:$0xff] %v5122_v23  ;;  %v5161_v0 = vpack.c.bf16 %v1114_v48, %v1106_v47  ;;  %v5165_v16 = vpack.c.bf16 %v1115_v60, %v1107_v57  ;;  %v1128_v2 = vmul.f32 %v4736_v36, %v960_v19  ;;  %v1376_v47 = vld [vmem:[%s7362_s3 + $0x400] sm:$0xff]  ;;  %v1378_v48 = vld [vmem:[%s7362_s3 + $0x410] sm:$0xff]  ;;  %v963_v57 = vld [vmem:[%s7363_s4 + $0x3d8] sm:$0xff] }
  0xfd   :  { %7466 = vst [vmem:[#allocation7_spill] sm:$0xff] %v5134_v33  ;;  %1940 = vmatpush.bf16.msrb.mxu0 %v1570_v6  ;;  %1999 = vmatpush.bf16.msrb.mxu1 %v1586_v9  ;;  %v686_v32 = vadd.f32 %v685_v21, %v155_v17  ;;  %v1552_v52 = vpack.c.bf16 %v1378_v48, %v1376_v47  ;;  %v1410_v19 = vld [vmem:[%s7362_s3 + $0x510] sm:$0xff] }
  0xfe   :  { %v625_v34 = vpop.f32.mrf.mxu0  ;;  %7467 = vst [vmem:[#allocation8_spill] sm:$0xff] %v5161_v0  ;;  %v1123_v9 = vmul.f32 %v4781_v5, %v955_v56 }
  0xff   :  { %v645_v40 = vpop.f32.mrf.mxu1  ;;  %v626_v51 = vadd.f32 %v625_v34, %v152_v30  ;;  %7468 = vst [vmem:[#allocation9_spill] sm:$0xff] %v5165_v16  ;;  %v1120_v30 = vmul.f32 %v4736_v36, %v952_v18  ;;  %v1121_v34 = vmul.f32 %v4749_v42, %v953_v22  ;;  %v3788_v49 = vmul.f32 -1.442695, %v686_v32  ;;  %1882 = vmatpush.bf16.msrb.mxu3 %v1552_v52  ;;  %v1408_v18 = vld [vmem:[%s7362_s3 + $0x500] sm:$0xff] }
 0x100   :  { %v646_v61 = vadd.f32 %v645_v40, %v153_v35  ;;  %v1129_v35 = vmul.f32 %v4749_v42, %v961_v28  ;;  %v962_v40 = vld [vmem:[%s7363_s4 + $0x3d0] sm:$0xff]  ;;  %v968_v22 = vld [vmem:[%s7363_s4 + $0x400] sm:$0xff] }
 0x101   :  { %v3785_v10 = vmul.f32 -1.442695, %v626_v51  ;;  %v5188_v39 = vpack.c.bf16 %v1128_v2, %v1120_v30  ;;  %v976_v28 = vld [vmem:[%s7363_s4 + $0x440] sm:$0xff]  ;;  %v969_v30 = vld [vmem:[%s7363_s4 + $0x408] sm:$0xff] }
 0x102   :  { %v3786_v20 = vmul.f32 -1.442695, %v646_v61  ;;  %v5199_v51 = vpack.c.bf16 %v1129_v35, %v1121_v34  ;;  %v1122_v61 = vmul.f32 %v4772_v63, %v954_v38  ;;  %v977_v2 = vld [vmem:[%s7363_s4 + $0x448] sm:$0xff]  ;;  %v1440_v34 = vld [vmem:[%s7362_s3 + $0x600] sm:$0xff]  ;;  %v1442_v35 = vld [vmem:[%s7362_s3 + $0x610] sm:$0xff]  ;;  %v1136_v38 = vmul.f32 %v4736_v36, %v968_v22 }
 0x103   :  { %3842 = vpow2.f32 %v3785_v10  ;;  %7469 = vst [vmem:[#allocation10_spill] sm:$0xff] %v5188_v39  ;;  %v1131_v10 = vmul.f32 %v4781_v5, %v963_v57  ;;  %v1584_v47 = vpack.c.bf16 %v1442_v35, %v1440_v34  ;;  %v1137_v48 = vmul.f32 %v4749_v42, %v969_v30  ;;  %v1279_v30 = vld [vmem:[%s7362_s3 + $0xf8] sm:$0xff] }
 0x104   :  { %1657 = vmatmul.bf16.gmra.mxu3 %v4883_v59  ;;  %3844 = vpow2.f32 %v3786_v20  ;;  %7470 = vst [vmem:[#allocation11_spill] sm:$0xff] %v5199_v51 }
 0x105   :  { %1716 = vmatmul.bf16.gmra.mxu0 %v4891_v62  ;;  %v5227_v21 = vpack.c.bf16 %v1131_v10, %v1123_v9  ;;  %2000 = vmatpush.bf16.msrb.mxu1 %v1584_v47 }
 0x106   :  { %v665_v15 = vpop.f32.mrf.mxu2 }
 0x107   :  { %v666_v44 = vadd.f32 %v665_v15, %v154_v4  ;;  %v1130_v4 = vmul.f32 %v4772_v63, %v962_v40  ;;  %7472 = vst [vmem:[#allocation13_spill] sm:$0xff] %v5227_v21  ;;  %v1144_v40 = vmul.f32 %v4736_v36, %v976_v28 }
 0x109   :  { %v3787_v37 = vmul.f32 -1.442695, %v666_v44  ;;  %v3843_v54 = vpop.eup %3842  ;;  %v5217_v17 = vpack.c.bf16 %v1130_v4, %v1122_v61  ;;  %v1568_v44 = vpack.c.bf16 %v1410_v19, %v1408_v18  ;;  %v970_v61 = vld [vmem:[%s7363_s4 + $0x410] sm:$0xff]  ;;  %v971_v18 = vld [vmem:[%s7363_s4 + $0x418] sm:$0xff] }
 0x10a   :  { %v3845_v60 = vpop.eup %3844  ;;  %v5211_v6 = vadd.f32 1.0, %v3843_v54  ;;  %v978_v4 = vld [vmem:[%s7363_s4 + $0x450] sm:$0xff]  ;;  %v979_v19 = vld [vmem:[%s7363_s4 + $0x458] sm:$0xff]  ;;  %v1138_v22 = vmul.f32 %v4772_v63, %v970_v61  ;;  %v1139_v34 = vmul.f32 %v4781_v5, %v971_v18  ;;  %v985_v18 = vld [vmem:[%s7363_s4 + $0x488] sm:$0xff] }
 0x10b   :  { %1775 = vmatmul.bf16.gmra.mxu1 %v4911_v13  ;;  %3846 = vpow2.f32 %v3787_v37  ;;  %v5215_v15 = vadd.f32 1.0, %v3845_v60  ;;  %7471 = vst [vmem:[#allocation12_spill] sm:$0xff] %v5217_v17  ;;  %1941 = vmatpush.bf16.msrb.mxu0 %v1568_v44  ;;  %v5262_v60 = vpack.c.bf16 %v1144_v40, %v1136_v38  ;;  %v1146_v28 = vmul.f32 %v4772_v63, %v978_v4  ;;  %v1277_v44 = vld [vmem:[%s7362_s3 + $0xe8] sm:$0xff]  ;;  %v984_v4 = vld [vmem:[%s7363_s4 + $0x480] sm:$0xff] }
 0x10c   :  { %1834 = vmatmul.bf16.gmra.mxu2 %v4914_v14  ;;  %3848 = vpow2.f32 %v3788_v49  ;;  %v1145_v49 = vmul.f32 %v4749_v42, %v977_v2  ;;  %v1503_v2 = vpack.c.bf16 %v1279_v30, %v1277_v44  ;;  %v1147_v35 = vmul.f32 %v4781_v5, %v979_v19  ;;  %v992_v44 = vld [vmem:[%s7363_s4 + $0x4c0] sm:$0xff] }
 0x10d   :  { %3850 = vrcp.f32 %v5211_v6  ;;  %7473 = vst [vmem:[#allocation14_spill] sm:$0xff] %v5262_v60  ;;  %v5297_v61 = vpack.c.bf16 %v1146_v28, %v1138_v22  ;;  %vm785_vm1 = vweird.f32 %v5211_v6  ;;  %vm800_vm3 = vweird.f32 %v5215_v15 }
 0x10e   :  { %3852 = vrcp.f32 %v5215_v15  ;;  %v5270_v9 = vpack.c.bf16 %v1145_v49, %v1137_v48  ;;  %2111 = vmatpush.bf16.msra.mxu3 %v1503_v2  ;;  %v5316_v28 = vpack.c.bf16 %v1147_v35, %v1139_v34  ;;  %v1152_v2 = vmul.f32 %v4736_v36, %v984_v4  ;;  %v1373_v35 = vld [vmem:[%s7362_s3 + $0x3e8] sm:$0xff] }
 0x10f   :  { %7475 = vst [vmem:[#allocation16_spill] sm:$0xff] %v5297_v61  ;;  %v791_v4 = vand.u32 2147483648, %v5211_v6 }
 0x110   :  { %7474 = vst [vmem:[#allocation15_spill] sm:$0xff] %v5270_v9 }
 0x111   :  { %v3847_v20 = vpop.eup %3846  ;;  %7476 = vst [vmem:[#allocation17_spill] sm:$0xff] %v5316_v28 }
 0x112   :  { %v3849_v32 = vpop.eup %3848  ;;  %v5249_v37 = vadd.f32 1.0, %v3847_v20 }
 0x113   :  { %v5255_v52 = vadd.f32 1.0, %v3849_v32  ;;  %v5257_v54 = vpop.eup %3850 }
 0x114   :  { %1662 = vmatmul.bf16.gmra.mxu3 %v4939_v27  ;;  %v5259_v56 = vpop.eup %3852  ;;  %3854 = vrcp.f32 %v5249_v37  ;;  %v781_v10 = vmul.f32 %v5257_v54, %v5211_v6  ;;  %vm786_vm2 = vweird.f32 %v5257_v54  ;;  %vm815_vm9 = vweird.f32 %v5249_v37 }
 0x115   :  { %1721 = vmatmul.bf16.gmra.mxu0 %v4947_v31  ;;  %3856 = vrcp.f32 %v5255_v52  ;;  %v796_v20 = vmul.f32 %v5259_v56, %v5215_v15  ;;  %vm801_vm4 = vweird.f32 %v5259_v56  ;;  %vm5358_vm5 = vmor %vm785_vm1, %vm786_vm2  ;;  %vm830_vm11 = vweird.f32 %v5255_v52 }
 0x116   :  { %v782_v40 = vsub.f32 1.0, %v781_v10  ;;  %vm5375_vm6 = vmor %vm800_vm3, %vm801_vm4  ;;  %vm1608_vm1 = vcmask 523264   ;;  %vm2583_vm2 = vcmask 556032  }
 0x117   :  { %v797_v49 = vsub.f32 1.0, %v796_v20  ;;  %v993_v20 = vld [vmem:[%s7363_s4 + $0x4c8] sm:$0xff] }
 0x118   :  { %v783_v30 = vmul.f32 %v5257_v54, %v782_v40  ;;  %v1161_v34 = vmul.f32 %v4749_v42, %v993_v20  ;;  %v1309_v40 = vld [vmem:[%s7362_s3 + $0x1e8] sm:$0xff] }
 0x11a   :  { %v5295_v38 = vpop.eup %3854 }
 0x11b   :  { %1780 = vmatmul.bf16.gmra.mxu1 %v4967_v41  ;;  %v5308_v19 = vpop.eup %3856  ;;  %v811_v22 = vmul.f32 %v5295_v38, %v5249_v37  ;;  %vm816_vm10 = vweird.f32 %v5295_v38 }
 0x11c   :  { %1839 = vmatmul.bf16.gmra.mxu2 %v4970_v46  ;;  %vm831_vm12 = vweird.f32 %v5308_v19  ;;  %vm5417_vm13 = vmor %vm815_vm9, %vm816_vm10 }
 0x11d   :  { %vm5433_vm14 = vmor %vm830_vm11, %vm831_vm12 }
 0x124   :  { %1667 = vmatmul.bf16.gmra.mxu3 %v5007_v7 }
 0x125   :  { %1726 = vmatmul.bf16.gmra.mxu0 %v5015_v12 }
 0x12b   :  { %1785 = vmatmul.bf16.gmra.mxu1 %v5035_v24 }
 0x12c   :  { %1844 = vmatmul.bf16.gmra.mxu2 %v5038_v25 }
 0x134   :  { %1672 = vmatmul.bf16.gmra.mxu3 %v5069_v50 }
 0x135   :  { %1731 = vmatmul.bf16.gmra.mxu0 %v5077_v53 }
 0x13b   :  { %1790 = vmatmul.bf16.gmra.mxu1 %v5091_v1 }
 0x13c   :  { %1849 = vmatmul.bf16.gmra.mxu2 %v5094_v3 }
 0x144   :  { %1677 = vmatmul.bf16.gmra.mxu3 %v5122_v23 }
 0x145   :  { %1736 = vmatmul.bf16.gmra.mxu0 %v5134_v33 }
 0x14b   :  { %1795 = vmatmul.bf16.gmra.mxu1 %v5161_v0 }
 0x14c   :  { %1854 = vmatmul.bf16.gmra.mxu2 %v5165_v16 }
 0x154   :  { %1682 = vmatmul.bf16.gmra.mxu3 %v5188_v39  ;;  %v994_v39 = vld [vmem:[%s7363_s4 + $0x4d0] sm:$0xff] }
 0x155   :  { %1741 = vmatmul.bf16.gmra.mxu0 %v5199_v51  ;;  %v1162_v33 = vmul.f32 %v4772_v63, %v994_v39 }
 0x15b   :  { %1800 = vmatmul.bf16.gmra.mxu1 %v5217_v17 }
 0x15c   :  { %1859 = vmatmul.bf16.gmra.mxu2 %v5227_v21  ;;  %v804_v21 = vand.u32 2147483647, %v5215_v15 }
 0x15e   :  { %vm5395_vm8 = vcmp.eq.f32.partialorder %v804_v21, 8.507059e+37  ;;  %v821_v21 = vand.u32 2147483648, %v5249_v37 }
 0x162   :  { %v1707_v57 = vpop.f32.mrf.mxu0 }
 0x164   :  { %1687 = vmatmul.bf16.gmra.mxu3 %v5262_v60  ;;  %v784_v60 = vadd.f32 %v5257_v54, %v783_v30 }
 0x165   :  { %1746 = vmatmul.bf16.gmra.mxu0 %v5270_v9  ;;  %v798_v9 = vmul.f32 %v5259_v56, %v797_v49  ;;  %v789_v49 = vand.u32 2147483647, %v5211_v6  ;;  %v822_v6 = vor.u32 1.1754944e-38, %v821_v21 }
 0x167   :  { %v1648_v32 = vpop.f32.mrf.mxu3  ;;  %vm790_vm7 = vcmp.eq.f32.partialorder %v789_v49, 8.507059e+37  ;;  %v836_v49 = vand.u32 2147483648, %v5255_v52 }
 0x168   :  { %v1708_v47 = vadd.f32 %v1707_v57, %v1648_v32  ;;  %v1766_v48 = vpop.f32.mrf.mxu1  ;;  %v1160_v32 = vmul.f32 %v4736_v36, %v992_v44  ;;  %v1375_v36 = vld [vmem:[%s7362_s3 + $0x3f8] sm:$0xff] }
 0x169   :  { %v1551_v44 = vpack.c.bf16 %v1375_v36, %v1373_v35  ;;  %v806_v35 = vand.u32 2147483648, %v5215_v15  ;;  %v987_v15 = vld [vmem:[%s7363_s4 + $0x498] sm:$0xff] }
 0x16a   :  { %v1767_v57 = vadd.f32 %v1766_v48, %v1708_v47  ;;  %v1709_v10 = vpop.f32.mrf.mxu0  ;;  %v1153_v47 = vmul.f32 %v4749_v42, %v985_v18  ;;  %v826_v48 = vmul.f32 %v5308_v19, %v5255_v52  ;;  %v1311_v42 = vld [vmem:[%s7362_s3 + $0x1f8] sm:$0xff]  ;;  %v812_v18 = vsub.f32 1.0, %v811_v22 }
 0x16b   :  { %1805 = vmatmul.bf16.gmra.mxu1 %v5297_v61  ;;  %v1519_v61 = vpack.c.bf16 %v1311_v42, %v1309_v40  ;;  %2288 = vmatpush.bf16.msra.mxu2 %v1551_v44  ;;  %v799_v40 = vadd.f32 %v5259_v56, %v798_v9  ;;  %v1343_v44 = vld [vmem:[%s7362_s3 + $0x2f8] sm:$0xff] }
 0x16c   :  { %1864 = vmatmul.bf16.gmra.mxu2 %v5316_v28  ;;  %v986_v28 = vld [vmem:[%s7363_s4 + $0x490] sm:$0xff]  ;;  %v827_v30 = vsub.f32 1.0, %v826_v48  ;;  %v5379_v48 = vpack.c.bf16 %v1160_v32, %v1152_v2  ;;  %v813_v16 = vmul.f32 %v5295_v38, %v812_v18  ;;  %v5383_v0 = vpack.c.bf16 %v1161_v34, %v1153_v47 }
 0x16d   :  { %2170 = vmatpush.bf16.msra.mxu0 %v1519_v61  ;;  %v1154_v61 = vmul.f32 %v4772_v63, %v986_v28  ;;  %v807_v2 = vor.u32 1.1754944e-38, %v806_v35  ;;  %v803_v39 = vsel %vm5375_vm6, %v5259_v56, %v799_v40  ;;  %v819_v56 = vand.u32 2147483647, %v5249_v37 }
 0x16e   :  { %7481 = vst [vmem:[#allocation18_spill] sm:$0xff] %v5379_v48  ;;  %v828_v63 = vmul.f32 %v5308_v19, %v827_v30  ;;  %v814_v47 = vadd.f32 %v5295_v38, %v813_v16  ;;  %v834_v40 = vand.u32 2147483647, %v5255_v52  ;;  %v837_v28 = vor.u32 1.1754944e-38, %v836_v49 }
 0x16f   :  { %v1650_v20 = vpop.f32.mrf.mxu3  ;;  %v1825_v36 = vpop.f32.mrf.mxu2  ;;  %7482 = vst [vmem:[#allocation19_spill] sm:$0xff] %v5383_v0  ;;  %v5425_v37 = vpack.c.bf16 %v1162_v33, %v1154_v61  ;;  %v1273_v33 = vld [vmem:[%s7362_s3 + $0xc8] sm:$0xff]  ;;  %vm820_vm15 = vcmp.eq.f32.partialorder %v819_v56, 8.507059e+37 }
 0x170   :  { %v1710_v17 = vadd.f32 %v1709_v10, %v1650_v20  ;;  %v1768_v51 = vpop.f32.mrf.mxu1  ;;  %v5363_v42 = vadd.f32 %v1825_v36, %v1767_v57  ;;  %v1341_v10 = vld [vmem:[%s7362_s3 + $0x2e8] sm:$0xff]  ;;  %v792_v36 = vor.u32 1.1754944e-38, %v791_v4  ;;  %v808_v4 = vsel %vm5395_vm8, %v807_v2, %v803_v39 }
 0x171   :  { %v1535_v20 = vpack.c.bf16 %v1343_v44, %v1341_v10  ;;  %v829_v30 = vadd.f32 %v5308_v19, %v828_v63  ;;  %7487 = vst [vmem:[#allocation20_spill] sm:$0xff] %v5425_v37  ;;  %v5445_v61 = vperm.slane %v808_v4, 0  ;;  %v818_v52 = vsel %vm5417_vm13, %v5295_v38, %v814_v47  ;;  %v845_v2 = vld [vmem:[%s7363_s4 + $0x28] sm:$0xff] }
 0x172   :  { %v1769_v9 = vadd.f32 %v1768_v51, %v1710_v17  ;;  %v1712_v57 = vpop.f32.mrf.mxu0  ;;  %v995_v51 = vld [vmem:[%s7363_s4 + $0x4d8] sm:$0xff]  ;;  %v788_v17 = vsel %vm5358_vm5, %v5257_v54, %v784_v60  ;;  %v1155_v54 = vmul.f32 %v4781_v5, %v987_v15  ;;  %v844_v15 = vld [vmem:[%s7363_s4 + $0x20] sm:$0xff]  ;;  %v853_v38 = vld [vmem:[%s7363_s4 + $0x68] sm:$0xff]  ;;  %vm835_vm0 = vcmp.eq.f32.partialorder %v834_v40, 8.507059e+37 }
 0x173   :  { %2229 = vmatpush.bf16.msra.mxu1 %v1535_v20  ;;  %v1163_v60 = vmul.f32 %v4781_v5, %v995_v51  ;;  %v793_v32 = vsel %vm790_vm7, %v792_v36, %v788_v17  ;;  %v852_v51 = vld [vmem:[%s7363_s4 + $0x60] sm:$0xff]  ;;  %v833_v63 = vsel %vm5433_vm14, %v5308_v19, %v829_v30  ;;  %v823_v39 = vsel %vm820_vm15, %v822_v6, %v818_v52  ;;  %v846_v19 = vld [vmem:[%s7363_s4 + $0x30] sm:$0xff]  ;;  %v1371_v30 = vld [vmem:[%s7362_s3 + $0x3d8] sm:$0xff] }
 0x174   :  { %1692 = vmatmul.bf16.gmra.mxu3 %v5379_v48  ;;  %v5427_v10 = vperm.slane %v793_v32, 0  ;;  %v1013_v32 = vmul.f32 %v5445_v61, %v845_v2  ;;  %v1021_v47 = vmul.f32 %v5445_v61, %v853_v38  ;;  %v838_v56 = vsel %vm835_vm0, %v837_v28, %v833_v63  ;;  %v847_v28 = vld [vmem:[%s7363_s4 + $0x38] sm:$0xff] }
 0x175   :  { %1751 = vmatmul.bf16.gmra.mxu0 %v5383_v0  ;;  %v5437_v36 = vpack.c.bf16 %v1163_v60, %v1155_v54  ;;  %v5474_v18 = vperm.slane %v823_v39, 0  ;;  %v5498_v52 = vperm.slane %v838_v56, 0  ;;  %v855_v2 = vld [vmem:[%s7363_s4 + $0x78] sm:$0xff] }
 0x176   :  { %v1012_v21 = vmul.f32 %v5427_v10, %v844_v15  ;;  %v1020_v54 = vmul.f32 %v5427_v10, %v852_v51  ;;  %v5500_v15 = vpack.c.bf16 %v1021_v47, %v1013_v32 }
 0x177   :  { %v1653_v34 = vpop.f32.mrf.mxu3  ;;  %v1827_v35 = vpop.f32.mrf.mxu2  ;;  %7490 = vst [vmem:[#allocation21_spill] sm:$0xff] %v5437_v36  ;;  %v1014_v63 = vmul.f32 %v5474_v18, %v846_v19 }
 0x178   :  { %v1713_v22 = vadd.f32 %v1712_v57, %v1653_v34  ;;  %v1771_v5 = vpop.f32.mrf.mxu1  ;;  %v5423_v16 = vadd.f32 %v1827_v35, %v1769_v9  ;;  %v1275_v9 = vld [vmem:[%s7362_s3 + $0xd8] sm:$0xff]  ;;  %v5487_v6 = vpack.c.bf16 %v1020_v54, %v1012_v21  ;;  %7492 = vst [vmem:[#allocation23_spill] sm:$0xff] %v5500_v15  ;;  %v1015_v54 = vmul.f32 %v5498_v52, %v847_v28 }
 0x179   :  { %v1501_v17 = vpack.c.bf16 %v1275_v9, %v1273_v33  ;;  %v1307_v33 = vld [vmem:[%s7362_s3 + $0x1d8] sm:$0xff]  ;;  %v1337_v9 = vld [vmem:[%s7362_s3 + $0x2c8] sm:$0xff] }
 0x17a   :  { %v1772_v57 = vadd.f32 %v1771_v5, %v1713_v22  ;;  %v1714_v20 = vpop.f32.mrf.mxu0  ;;  %v854_v22 = vld [vmem:[%s7363_s4 + $0x70] sm:$0xff]  ;;  %v1369_v5 = vld [vmem:[%s7362_s3 + $0x3c8] sm:$0xff]  ;;  %7491 = vst [vmem:[#allocation22_spill] sm:$0xff] %v5487_v6 }
 0x17b   :  { %1810 = vmatmul.bf16.gmra.mxu1 %v5425_v37  ;;  %2112 = vmatpush.bf16.msra.mxu3 %v1501_v17  ;;  %v1339_v17 = vld [vmem:[%s7362_s3 + $0x2d8] sm:$0xff]  ;;  %v1022_v39 = vmul.f32 %v5474_v18, %v854_v22  ;;  %v860_v22 = vld [vmem:[%s7363_s4 + $0xa0] sm:$0xff] }
 0x17c   :  { %1869 = vmatmul.bf16.gmra.mxu2 %v5437_v36  ;;  %v1533_v38 = vpack.c.bf16 %v1339_v17, %v1337_v9 }
 0x17e   :  { %2230 = vmatpush.bf16.msra.mxu1 %v1533_v38 }
 0x17f   :  { %v1655_v60 = vpop.f32.mrf.mxu3  ;;  %v1830_v34 = vpop.f32.mrf.mxu2 }
 0x180   :  { %v1715_v49 = vadd.f32 %v1714_v20, %v1655_v60  ;;  %v1773_v4 = vpop.f32.mrf.mxu1  ;;  %v5476_v35 = vadd.f32 %v1830_v34, %v1772_v57  ;;  %v1549_v20 = vpack.c.bf16 %v1371_v30, %v1369_v5  ;;  %v1305_v57 = vld [vmem:[%s7362_s3 + $0x1c8] sm:$0xff]  ;;  %v1023_v60 = vmul.f32 %v5498_v52, %v855_v2  ;;  %v868_v30 = vld [vmem:[%s7363_s4 + $0xe0] sm:$0xff] }
 0x181   :  { %v1517_v51 = vpack.c.bf16 %v1307_v33, %v1305_v57  ;;  %v1271_v57 = vld [vmem:[%s7362_s3 + $0xb8] sm:$0xff]  ;;  %v1028_v33 = vmul.f32 %v5427_v10, %v860_v22  ;;  %v1036_v9 = vmul.f32 %v5427_v10, %v868_v30 }
 0x182   :  { %v1774_v40 = vadd.f32 %v1773_v4, %v1715_v49  ;;  %v1717_v44 = vpop.f32.mrf.mxu0  ;;  %2289 = vmatpush.bf16.msra.mxu2 %v1549_v20  ;;  %v5519_v49 = vpack.c.bf16 %v1022_v39, %v1014_v63  ;;  %v5522_v19 = vpack.c.bf16 %v1023_v60, %v1015_v54  ;;  %v1269_v20 = vld [vmem:[%s7362_s3 + $0xa8] sm:$0xff]  ;;  %v862_v54 = vld [vmem:[%s7363_s4 + $0xb0] sm:$0xff] }
 0x183   :  { %2171 = vmatpush.bf16.msra.mxu0 %v1517_v51  ;;  %v1499_v51 = vpack.c.bf16 %v1271_v57, %v1269_v20  ;;  %v1030_v20 = vmul.f32 %v5474_v18, %v862_v54 }
 0x184   :  { %1883 = vmatmul.bf16.vlgmr.msrb.gmra.mxu3 %v5487_v6  ;;  %7493 = vst [vmem:[#allocation24_spill] sm:$0xff] %v5519_v49 }
 0x185   :  { %1942 = vmatmul.bf16.vlgmr.msrb.gmra.mxu0 %v5500_v15  ;;  %7494 = vst [vmem:[#allocation25_spill] sm:$0xff] %v5522_v19  ;;  %2113 = vmatpush.bf16.msra.mxu3 %v1499_v51 }
 0x187   :  { %v1658_v21 = vpop.f32.mrf.mxu3  ;;  %v1832_v32 = vpop.f32.mrf.mxu2 }
 0x188   :  { %v1718_v47 = vadd.f32 %v1717_v44, %v1658_v21  ;;  %v1776_v56 = vpop.f32.mrf.mxu1  ;;  %v5517_v34 = vadd.f32 %v1832_v32, %v1774_v40  ;;  %v861_v40 = vld [vmem:[%s7363_s4 + $0xa8] sm:$0xff] }
 0x189   :  { %v869_v44 = vld [vmem:[%s7363_s4 + $0xe8] sm:$0xff]  ;;  %v1029_v28 = vmul.f32 %v5445_v61, %v861_v40  ;;  %v863_v40 = vld [vmem:[%s7363_s4 + $0xb8] sm:$0xff] }
 0x18a   :  { %v1777_v4 = vadd.f32 %v1776_v56, %v1718_v47  ;;  %v1719_v5 = vpop.f32.mrf.mxu0  ;;  %v1037_v2 = vmul.f32 %v5445_v61, %v869_v44  ;;  %v5553_v47 = vpack.c.bf16 %v1036_v9, %v1028_v33  ;;  %v870_v56 = vld [vmem:[%s7363_s4 + $0xf0] sm:$0xff]  ;;  %v871_v44 = vld [vmem:[%s7363_s4 + $0xf8] sm:$0xff]  ;;  %v1301_v33 = vld [vmem:[%s7362_s3 + $0x1a8] sm:$0xff] }
 0x18b   :  { %2001 = vmatmul.bf16.vlgmr.msrb.gmra.mxu1 %v5519_v49  ;;  %v1038_v57 = vmul.f32 %v5474_v18, %v870_v56  ;;  %v1303_v9 = vld [vmem:[%s7362_s3 + $0x1b8] sm:$0xff] }
 0x18c   :  { %3789 = vmatmul.msk.bf16.vlgmr.msrb.gmra.mxu2 %vm1608_vm1, %v5522_v19  ;;  %7495 = vst [vmem:[#allocation26_spill] sm:$0xff] %v5553_v47  ;;  %v5564_v22 = vpack.c.bf16 %v1037_v2, %v1029_v28  ;;  %v1515_v51 = vpack.c.bf16 %v1303_v9, %v1301_v33  ;;  %v1031_v28 = vmul.f32 %v5498_v52, %v863_v40 }
 0x18d   :  { %v1039_v2 = vmul.f32 %v5498_v52, %v871_v44  ;;  %v5586_v56 = vpack.c.bf16 %v1038_v57, %v1030_v20  ;;  %v884_v44 = vld [vmem:[%s7363_s4 + $0x160] sm:$0xff]  ;;  %v877_v20 = vld [vmem:[%s7363_s4 + $0x128] sm:$0xff] }
 0x18e   :  { %7496 = vst [vmem:[#allocation27_spill] sm:$0xff] %v5564_v22  ;;  %2172 = vmatpush.bf16.msra.mxu0 %v1515_v51  ;;  %v885_v57 = vld [vmem:[%s7363_s4 + $0x168] sm:$0xff]  ;;  %v1052_v51 = vmul.f32 %v5427_v10, %v884_v44 }
 0x18f   :  { %v1660_v17 = vpop.f32.mrf.mxu3  ;;  %v1835_v38 = vpop.f32.mrf.mxu2  ;;  %7497 = vst [vmem:[#allocation28_spill] sm:$0xff] %v5586_v56  ;;  %v1265_v44 = vld [vmem:[%s7362_s3 + $0x88] sm:$0xff] }
 0x190   :  { %v1720_v63 = vadd.f32 %v1719_v5, %v1660_v17  ;;  %v1778_v39 = vpop.f32.mrf.mxu1  ;;  %v5548_v21 = vadd.f32 %v1835_v38, %v1777_v4  ;;  %v1365_v5 = vld [vmem:[%s7362_s3 + $0x3a8] sm:$0xff]  ;;  %v1367_v4 = vld [vmem:[%s7362_s3 + $0x3b8] sm:$0xff] }
 0x191   :  { %v1547_v30 = vpack.c.bf16 %v1367_v4, %v1365_v5  ;;  %v1333_v5 = vld [vmem:[%s7362_s3 + $0x2a8] sm:$0xff]  ;;  %v1335_v4 = vld [vmem:[%s7362_s3 + $0x2b8] sm:$0xff] }
 0x192   :  { %v1779_v60 = vadd.f32 %v1778_v39, %v1720_v63  ;;  %v1722_v32 = vpop.f32.mrf.mxu0  ;;  %v1531_v33 = vpack.c.bf16 %v1335_v4, %v1333_v5  ;;  %v878_v4 = vld [vmem:[%s7363_s4 + $0x130] sm:$0xff] }
 0x193   :  { %2290 = vmatpush.bf16.msra.mxu2 %v1547_v30 }
 0x194   :  { %1888 = vmatmul.bf16.gmra.mxu3 %v5553_v47  ;;  %2231 = vmatpush.bf16.msra.mxu1 %v1531_v33 }
 0x195   :  { %1947 = vmatmul.bf16.gmra.mxu0 %v5564_v22 }
 0x197   :  { %v1663_v17 = vpop.f32.mrf.mxu3  ;;  %v1837_v38 = vpop.f32.mrf.mxu2 }
 0x198   :  { %v1723_v63 = vadd.f32 %v1722_v32, %v1663_v17  ;;  %v1781_v39 = vpop.f32.mrf.mxu1  ;;  %v5584_v54 = vadd.f32 %v1837_v38, %v1779_v60  ;;  %v5595_v32 = vpack.c.bf16 %v1039_v2, %v1031_v28  ;;  %v876_v60 = vld [vmem:[%s7363_s4 + $0x120] sm:$0xff]  ;;  %v1045_v28 = vmul.f32 %v5445_v61, %v877_v20 }
 0x199   :  { %v1044_v9 = vmul.f32 %v5427_v10, %v876_v60  ;;  %v1053_v2 = vmul.f32 %v5445_v61, %v885_v57  ;;  %v886_v60 = vld [vmem:[%s7363_s4 + $0x170] sm:$0xff]  ;;  %v879_v57 = vld [vmem:[%s7363_s4 + $0x138] sm:$0xff] }
 0x19a   :  { %v1782_v30 = vadd.f32 %v1781_v39, %v1723_v63  ;;  %v1724_v40 = vpop.f32.mrf.mxu0  ;;  %7498 = vst [vmem:[#allocation29_spill] sm:$0xff] %v5595_v32 }
 0x19b   :  { %2006 = vmatmul.bf16.gmra.mxu1 %v5586_v56  ;;  %v5620_v56 = vpack.c.bf16 %v1052_v51, %v1044_v9  ;;  %v887_v9 = vld [vmem:[%s7363_s4 + $0x178] sm:$0xff]  ;;  %v1046_v51 = vmul.f32 %v5474_v18, %v878_v4 }
 0x19c   :  { %3790 = vmatmul.msk.bf16.gmra.mxu2 %vm1608_vm1, %v5595_v32  ;;  %v1363_v4 = vld [vmem:[%s7362_s3 + $0x398] sm:$0xff] }
 0x19d   :  { %7499 = vst [vmem:[#allocation30_spill] sm:$0xff] %v5620_v56 }
 0x19f   :  { %v1665_v17 = vpop.f32.mrf.mxu3  ;;  %v1840_v38 = vpop.f32.mrf.mxu2 }
 0x1a0   :  { %v1725_v63 = vadd.f32 %v1724_v40, %v1665_v17  ;;  %v1783_v39 = vpop.f32.mrf.mxu1  ;;  %v5615_v5 = vadd.f32 %v1840_v38, %v1782_v30  ;;  %v1267_v30 = vld [vmem:[%s7362_s3 + $0x98] sm:$0xff]  ;;  %v5631_v40 = vpack.c.bf16 %v1053_v2, %v1045_v28  ;;  %v1054_v17 = vmul.f32 %v5474_v18, %v886_v60 }
 0x1a1   :  { %v1497_v20 = vpack.c.bf16 %v1267_v30, %v1265_v44  ;;  %v1047_v2 = vmul.f32 %v5498_v52, %v879_v57  ;;  %v1055_v38 = vmul.f32 %v5498_v52, %v887_v9 }
 0x1a2   :  { %v1784_v33 = vadd.f32 %v1783_v39, %v1725_v63  ;;  %v1727_v32 = vpop.f32.mrf.mxu0  ;;  %7500 = vst [vmem:[#allocation31_spill] sm:$0xff] %v5631_v40 }
 0x1a3   :  { %2114 = vmatpush.bf16.msra.mxu3 %v1497_v20  ;;  %v5662_v9 = vpack.c.bf16 %v1055_v38, %v1047_v2  ;;  %v1329_v2 = vld [vmem:[%s7362_s3 + $0x288] sm:$0xff]  ;;  %v1331_v38 = vld [vmem:[%s7362_s3 + $0x298] sm:$0xff] }
 0x1a4   :  { %1893 = vmatmul.bf16.gmra.mxu3 %v5620_v56  ;;  %v5647_v56 = vpack.c.bf16 %v1054_v17, %v1046_v51  ;;  %v892_v51 = vld [vmem:[%s7363_s4 + $0x1a0] sm:$0xff] }
 0x1a5   :  { %1952 = vmatmul.bf16.gmra.mxu0 %v5631_v40  ;;  %v1361_v40 = vld [vmem:[%s7362_s3 + $0x388] sm:$0xff]  ;;  %7502 = vst [vmem:[#allocation33_spill] sm:$0xff] %v5662_v9 }
 0x1a6   :  { %7501 = vst [vmem:[#allocation32_spill] sm:$0xff] %v5647_v56  ;;  %v1545_v57 = vpack.c.bf16 %v1363_v4, %v1361_v40  ;;  %v900_v40 = vld [vmem:[%s7363_s4 + $0x1e0] sm:$0xff]  ;;  %v1529_v4 = vpack.c.bf16 %v1331_v38, %v1329_v2  ;;  %v1263_v2 = vld [vmem:[%s7362_s3 + $0x78] sm:$0xff] }
 0x1a7   :  { %v1668_v28 = vpop.f32.mrf.mxu3  ;;  %v1842_v63 = vpop.f32.mrf.mxu2 }
 0x1a8   :  { %v1728_v39 = vadd.f32 %v1727_v32, %v1668_v28  ;;  %v1786_v44 = vpop.f32.mrf.mxu1  ;;  %v5645_v30 = vadd.f32 %v1842_v63, %v1784_v33  ;;  %v1297_v32 = vld [vmem:[%s7362_s3 + $0x188] sm:$0xff]  ;;  %v1299_v33 = vld [vmem:[%s7362_s3 + $0x198] sm:$0xff]  ;;  %2291 = vmatpush.bf16.msra.mxu2 %v1545_v57  ;;  %2232 = vmatpush.bf16.msra.mxu1 %v1529_v4 }
 0x1a9   :  { %v1513_v17 = vpack.c.bf16 %v1299_v33, %v1297_v32  ;;  %v893_v28 = vld [vmem:[%s7363_s4 + $0x1a8] sm:$0xff] }
 0x1aa   :  { %v1787_v60 = vadd.f32 %v1786_v44, %v1728_v39  ;;  %v1729_v20 = vpop.f32.mrf.mxu0  ;;  %v901_v63 = vld [vmem:[%s7363_s4 + $0x1e8] sm:$0xff]  ;;  %v1060_v39 = vmul.f32 %v5427_v10, %v892_v51  ;;  %v1068_v44 = vmul.f32 %v5427_v10, %v900_v40  ;;  %v1061_v57 = vmul.f32 %v5445_v61, %v893_v28  ;;  %v894_v51 = vld [vmem:[%s7363_s4 + $0x1b0] sm:$0xff] }
 0x1ab   :  { %2011 = vmatmul.bf16.gmra.mxu1 %v5647_v56  ;;  %2173 = vmatpush.bf16.msra.mxu0 %v1513_v17  ;;  %v1069_v33 = vmul.f32 %v5445_v61, %v901_v63  ;;  %v902_v40 = vld [vmem:[%s7363_s4 + $0x1f0] sm:$0xff]  ;;  %v1261_v63 = vld [vmem:[%s7362_s3 + $0x68] sm:$0xff] }
 0x1ac   :  { %3791 = vmatmul.msk.bf16.gmra.mxu2 %vm1608_vm1, %v5662_v9  ;;  %v5690_v49 = vpack.c.bf16 %v1068_v44, %v1060_v39  ;;  %v1495_v38 = vpack.c.bf16 %v1263_v2, %v1261_v63  ;;  %v1293_v63 = vld [vmem:[%s7362_s3 + $0x168] sm:$0xff] }
 0x1ad   :  { %v5698_v28 = vpack.c.bf16 %v1069_v33, %v1061_v57 }
 0x1ae   :  { %7503 = vst [vmem:[#allocation34_spill] sm:$0xff] %v5690_v49  ;;  %2115 = vmatpush.bf16.msra.mxu3 %v1495_v38 }
 0x1af   :  { %v1670_v32 = vpop.f32.mrf.mxu3  ;;  %v1845_v9 = vpop.f32.mrf.mxu2  ;;  %7504 = vst [vmem:[#allocation35_spill] sm:$0xff] %v5698_v28 }
 0x1b0   :  { %v1730_v17 = vadd.f32 %v1729_v20, %v1670_v32  ;;  %v1788_v56 = vpop.f32.mrf.mxu1  ;;  %v5688_v22 = vadd.f32 %v1845_v9, %v1787_v60  ;;  %v895_v60 = vld [vmem:[%s7363_s4 + $0x1b8] sm:$0xff]  ;;  %v1062_v20 = vmul.f32 %v5474_v18, %v894_v51  ;;  %v1070_v9 = vmul.f32 %v5474_v18, %v902_v40 }
 0x1b1   :  { %v1063_v44 = vmul.f32 %v5498_v52, %v895_v60  ;;  %v908_v60 = vld [vmem:[%s7363_s4 + $0x220] sm:$0xff] }
 0x1b2   :  { %v1789_v47 = vadd.f32 %v1788_v56, %v1730_v17  ;;  %v1732_v19 = vpop.f32.mrf.mxu0  ;;  %v903_v56 = vld [vmem:[%s7363_s4 + $0x1f8] sm:$0xff]  ;;  %v5720_v51 = vpack.c.bf16 %v1070_v9, %v1062_v20  ;;  %v1357_v20 = vld [vmem:[%s7362_s3 + $0x368] sm:$0xff]  ;;  %v1076_v2 = vmul.f32 %v5427_v10, %v908_v60 }
 0x1b3   :  { %v1071_v4 = vmul.f32 %v5498_v52, %v903_v56  ;;  %v917_v56 = vld [vmem:[%s7363_s4 + $0x268] sm:$0xff]  ;;  %v1359_v9 = vld [vmem:[%s7362_s3 + $0x378] sm:$0xff] }
 0x1b4   :  { %1898 = vmatmul.bf16.gmra.mxu3 %v5690_v49  ;;  %7505 = vst [vmem:[#allocation36_spill] sm:$0xff] %v5720_v51  ;;  %v1325_v60 = vld [vmem:[%s7362_s3 + $0x268] sm:$0xff] }
 0x1b5   :  { %1957 = vmatmul.bf16.gmra.mxu0 %v5698_v28  ;;  %v5723_v49 = vpack.c.bf16 %v1071_v4, %v1063_v44  ;;  %v1295_v44 = vld [vmem:[%s7362_s3 + $0x178] sm:$0xff] }
 0x1b7   :  { %v1673_v39 = vpop.f32.mrf.mxu3  ;;  %v1847_v32 = vpop.f32.mrf.mxu2  ;;  %7506 = vst [vmem:[#allocation37_spill] sm:$0xff] %v5723_v49 }
 0x1b8   :  { %v1733_v57 = vadd.f32 %v1732_v19, %v1673_v39  ;;  %v1791_v33 = vpop.f32.mrf.mxu1  ;;  %v5718_v17 = vadd.f32 %v1847_v32, %v1789_v47  ;;  %v916_v19 = vld [vmem:[%s7363_s4 + $0x260] sm:$0xff]  ;;  %v909_v47 = vld [vmem:[%s7363_s4 + $0x228] sm:$0xff]  ;;  %v1543_v39 = vpack.c.bf16 %v1359_v9, %v1357_v20 }
 0x1b9   :  { %v1084_v38 = vmul.f32 %v5427_v10, %v916_v19  ;;  %v1077_v32 = vmul.f32 %v5445_v61, %v909_v47  ;;  %v1327_v19 = vld [vmem:[%s7362_s3 + $0x278] sm:$0xff] }
 0x1ba   :  { %v1792_v40 = vadd.f32 %v1791_v33, %v1733_v57  ;;  %v1734_v28 = vpop.f32.mrf.mxu0  ;;  %v1085_v57 = vmul.f32 %v5445_v61, %v917_v56  ;;  %v1511_v33 = vpack.c.bf16 %v1295_v44, %v1293_v63  ;;  %2292 = vmatpush.bf16.msra.mxu2 %v1543_v39 }
 0x1bb   :  { %2016 = vmatmul.bf16.gmra.mxu1 %v5720_v51  ;;  %v5763_v9 = vpack.c.bf16 %v1084_v38, %v1076_v2 }
 0x1bc   :  { %3792 = vmatmul.msk.bf16.gmra.mxu2 %vm1608_vm1, %v5723_v49  ;;  %2174 = vmatpush.bf16.msra.mxu0 %v1511_v33  ;;  %v5771_v56 = vpack.c.bf16 %v1085_v57, %v1077_v32 }
 0x1bd   :  { %7507 = vst [vmem:[#allocation38_spill] sm:$0xff] %v5763_v9 }
 0x1be   :  { %7508 = vst [vmem:[#allocation39_spill] sm:$0xff] %v5771_v56 }
 0x1bf   :  { %v1675_v4 = vpop.f32.mrf.mxu3  ;;  %v1850_v49 = vpop.f32.mrf.mxu2 }
 0x1c0   :  { %v1735_v51 = vadd.f32 %v1734_v28, %v1675_v4  ;;  %v1793_v15 = vpop.f32.mrf.mxu1  ;;  %v5755_v6 = vadd.f32 %v1850_v49, %v1792_v40  ;;  %v910_v28 = vld [vmem:[%s7363_s4 + $0x230] sm:$0xff]  ;;  %v1527_v40 = vpack.c.bf16 %v1327_v19, %v1325_v60 }
 0x1c1   :  { %v918_v49 = vld [vmem:[%s7363_s4 + $0x270] sm:$0xff]  ;;  %v1078_v63 = vmul.f32 %v5474_v18, %v910_v28  ;;  %v1257_v28 = vld [vmem:[%s7362_s3 + $0x48] sm:$0xff] }
 0x1c2   :  { %v1794_v20 = vadd.f32 %v1793_v15, %v1735_v51  ;;  %v1737_v47 = vpop.f32.mrf.mxu0  ;;  %v911_v15 = vld [vmem:[%s7363_s4 + $0x238] sm:$0xff]  ;;  %2233 = vmatpush.bf16.msra.mxu1 %v1527_v40  ;;  %v1086_v2 = vmul.f32 %v5474_v18, %v918_v49 }
 0x1c3   :  { %v919_v51 = vld [vmem:[%s7363_s4 + $0x278] sm:$0xff]  ;;  %v1079_v39 = vmul.f32 %v5498_v52, %v911_v15 }
 0x1c4   :  { %1903 = vmatmul.bf16.gmra.mxu3 %v5763_v9  ;;  %v1087_v44 = vmul.f32 %v5498_v52, %v919_v51  ;;  %v5787_v60 = vpack.c.bf16 %v1086_v2, %v1078_v63  ;;  %v1259_v49 = vld [vmem:[%s7362_s3 + $0x58] sm:$0xff]  ;;  %v925_v63 = vld [vmem:[%s7363_s4 + $0x2a8] sm:$0xff] }
 0x1c5   :  { %1962 = vmatmul.bf16.gmra.mxu0 %v5771_v56  ;;  %v1493_v51 = vpack.c.bf16 %v1259_v49, %v1257_v28  ;;  %v933_v2 = vld [vmem:[%s7363_s4 + $0x2e8] sm:$0xff] }
 0x1c6   :  { %7509 = vst [vmem:[#allocation40_spill] sm:$0xff] %v5787_v60  ;;  %v5796_v15 = vpack.c.bf16 %v1087_v44, %v1079_v39 }
 0x1c7   :  { %v1678_v38 = vpop.f32.mrf.mxu3  ;;  %v1852_v4 = vpop.f32.mrf.mxu2  ;;  %2116 = vmatpush.bf16.msra.mxu3 %v1493_v51  ;;  %v1355_v51 = vld [vmem:[%s7362_s3 + $0x358] sm:$0xff] }
 0x1c8   :  { %v1738_v32 = vadd.f32 %v1737_v47, %v1678_v38  ;;  %v1796_v57 = vpop.f32.mrf.mxu1  ;;  %v5785_v33 = vadd.f32 %v1852_v4, %v1794_v20  ;;  %7510 = vst [vmem:[#allocation41_spill] sm:$0xff] %v5796_v15  ;;  %v924_v20 = vld [vmem:[%s7363_s4 + $0x2a0] sm:$0xff]  ;;  %v1093_v4 = vmul.f32 %v5445_v61, %v925_v63 }
 0x1c9   :  { %v932_v47 = vld [vmem:[%s7363_s4 + $0x2e0] sm:$0xff]  ;;  %v1092_v38 = vmul.f32 %v5427_v10, %v924_v20  ;;  %v934_v20 = vld [vmem:[%s7363_s4 + $0x2f0] sm:$0xff] }
 0x1ca   :  { %v1797_v19 = vadd.f32 %v1796_v57, %v1738_v32  ;;  %v1739_v40 = vpop.f32.mrf.mxu0  ;;  %v1100_v39 = vmul.f32 %v5427_v10, %v932_v47  ;;  %v1101_v32 = vmul.f32 %v5445_v61, %v933_v2  ;;  %v1353_v47 = vld [vmem:[%s7362_s3 + $0x348] sm:$0xff] }
 0x1cb   :  { %2021 = vmatmul.bf16.gmra.mxu1 %v5787_v60  ;;  %v926_v60 = vld [vmem:[%s7363_s4 + $0x2b0] sm:$0xff] }
 0x1cc   :  { %3793 = vmatmul.msk.bf16.gmra.mxu2 %vm1608_vm1, %v5796_v15  ;;  %v5830_v2 = vpack.c.bf16 %v1100_v39, %v1092_v38  ;;  %v1321_v15 = vld [vmem:[%s7362_s3 + $0x248] sm:$0xff]  ;;  %v5841_v9 = vpack.c.bf16 %v1101_v32, %v1093_v4  ;;  %v1323_v38 = vld [vmem:[%s7362_s3 + $0x258] sm:$0xff]  ;;  %v1094_v4 = vmul.f32 %v5474_v18, %v926_v60  ;;  %v1102_v32 = vmul.f32 %v5474_v18, %v934_v20  ;;  %v948_v20 = vld [vmem:[%s7363_s4 + $0x360] sm:$0xff] }
 0x1cd   :  { %v927_v39 = vld [vmem:[%s7363_s4 + $0x2b8] sm:$0xff] }
 0x1ce   :  { %7511 = vst [vmem:[#allocation42_spill] sm:$0xff] %v5830_v2 }
 0x1cf   :  { %v1680_v44 = vpop.f32.mrf.mxu3  ;;  %v1855_v57 = vpop.f32.mrf.mxu2  ;;  %7512 = vst [vmem:[#allocation43_spill] sm:$0xff] %v5841_v9 }
 0x1d0   :  { %v1740_v28 = vadd.f32 %v1739_v40, %v1680_v44  ;;  %v1798_v49 = vpop.f32.mrf.mxu1  ;;  %v5819_v56 = vadd.f32 %v1855_v57, %v1797_v19  ;;  %v1541_v44 = vpack.c.bf16 %v1355_v51, %v1353_v47  ;;  %v1289_v19 = vld [vmem:[%s7362_s3 + $0x148] sm:$0xff]  ;;  %v1291_v57 = vld [vmem:[%s7362_s3 + $0x158] sm:$0xff]  ;;  %v1095_v51 = vmul.f32 %v5498_v52, %v927_v39 }
 0x1d1   :  { %v1509_v36 = vpack.c.bf16 %v1291_v57, %v1289_v19 }
 0x1d2   :  { %v1799_v40 = vadd.f32 %v1798_v49, %v1740_v28  ;;  %v1742_v63 = vpop.f32.mrf.mxu0  ;;  %v935_v28 = vld [vmem:[%s7363_s4 + $0x2f8] sm:$0xff]  ;;  %2293 = vmatpush.bf16.msra.mxu2 %v1541_v44  ;;  %v1525_v49 = vpack.c.bf16 %v1323_v38, %v1321_v15  ;;  %v5860_v44 = vpack.c.bf16 %v1102_v32, %v1094_v4 }
 0x1d3   :  { %2175 = vmatpush.bf16.msra.mxu0 %v1509_v36  ;;  %v1103_v19 = vmul.f32 %v5498_v52, %v935_v28  ;;  %v940_v36 = vld [vmem:[%s7363_s4 + $0x320] sm:$0xff]  ;;  %v1116_v28 = vmul.f32 %v5427_v10, %v948_v20  ;;  %v950_v20 = vld [vmem:[%s7363_s4 + $0x370] sm:$0xff] }
 0x1d4   :  { %1908 = vmatmul.bf16.gmra.mxu3 %v5830_v2  ;;  %2234 = vmatpush.bf16.msra.mxu1 %v1525_v49  ;;  %7513 = vst [vmem:[#allocation44_spill] sm:$0xff] %v5860_v44  ;;  %v1108_v39 = vmul.f32 %v5427_v10, %v940_v36 }
 0x1d5   :  { %1967 = vmatmul.bf16.gmra.mxu0 %v5841_v9  ;;  %v5863_v60 = vpack.c.bf16 %v1103_v19, %v1095_v51 }
 0x1d6   :  { %v5894_v48 = vpack.c.bf16 %v1116_v28, %v1108_v39  ;;  %v1118_v28 = vmul.f32 %v5474_v18, %v950_v20 }
 0x1d7   :  { %v1683_v47 = vpop.f32.mrf.mxu3  ;;  %v1857_v57 = vpop.f32.mrf.mxu2  ;;  %7514 = vst [vmem:[#allocation45_spill] sm:$0xff] %v5863_v60 }
 0x1d8   :  { %v1743_v2 = vadd.f32 %v1742_v63, %v1683_v47  ;;  %v1801_v37 = vpop.f32.mrf.mxu1  ;;  %v5858_v0 = vadd.f32 %v1857_v57, %v1799_v40  ;;  %v941_v40 = vld [vmem:[%s7363_s4 + $0x328] sm:$0xff]  ;;  %7515 = vst [vmem:[#allocation46_spill] sm:$0xff] %v5894_v48 }
 0x1d9   :  { %v1253_v63 = vld [vmem:[%s7362_s3 + $0x28] sm:$0xff]  ;;  %v1109_v32 = vmul.f32 %v5445_v61, %v941_v40 }
 0x1da   :  { %v1802_v15 = vadd.f32 %v1801_v37, %v1743_v2  ;;  %v1744_v38 = vpop.f32.mrf.mxu0  ;;  %v949_v37 = vld [vmem:[%s7363_s4 + $0x368] sm:$0xff]  ;;  %v1255_v2 = vld [vmem:[%s7362_s3 + $0x38] sm:$0xff] }
 0x1db   :  { %2026 = vmatmul.bf16.gmra.mxu1 %v5860_v44  ;;  %v1491_v49 = vpack.c.bf16 %v1255_v2, %v1253_v63  ;;  %v1117_v47 = vmul.f32 %v5445_v61, %v949_v37  ;;  %v942_v44 = vld [vmem:[%s7363_s4 + $0x330] sm:$0xff]  ;;  %v943_v63 = vld [vmem:[%s7363_s4 + $0x338] sm:$0xff] }
 0x1dc   :  { %3794 = vmatmul.msk.bf16.gmra.mxu2 %vm1608_vm1, %v5863_v60  ;;  %v951_v2 = vld [vmem:[%s7363_s4 + $0x378] sm:$0xff]  ;;  %v1110_v39 = vmul.f32 %v5474_v18, %v942_v44 }
 0x1dd   :  { %2117 = vmatpush.bf16.msra.mxu3 %v1491_v49  ;;  %v5905_v40 = vpack.c.bf16 %v1117_v47, %v1109_v32  ;;  %v1285_v49 = vld [vmem:[%s7362_s3 + $0x128] sm:$0xff] }
 0x1df   :  { %v1685_v4 = vpop.f32.mrf.mxu3  ;;  %v1860_v51 = vpop.f32.mrf.mxu2  ;;  %7516 = vst [vmem:[#allocation47_spill] sm:$0xff] %v5905_v40 }
 0x1e0   :  { %v1745_v19 = vadd.f32 %v1744_v38, %v1685_v4  ;;  %v1803_v57 = vpop.f32.mrf.mxu1  ;;  %v5889_v60 = vadd.f32 %v1860_v51, %v1802_v15  ;;  %v1349_v38 = vld [vmem:[%s7362_s3 + $0x328] sm:$0xff]  ;;  %v1351_v15 = vld [vmem:[%s7362_s3 + $0x338] sm:$0xff]  ;;  %v1111_v51 = vmul.f32 %v5498_v52, %v943_v63 }
 0x1e1   :  { %v1539_v37 = vpack.c.bf16 %v1351_v15, %v1349_v38  ;;  %v1287_v4 = vld [vmem:[%s7362_s3 + $0x138] sm:$0xff]  ;;  %v5927_v15 = vpack.c.bf16 %v1118_v28, %v1110_v39  ;;  %v957_v39 = vld [vmem:[%s7363_s4 + $0x3a8] sm:$0xff] }
 0x1e2   :  { %v1804_v9 = vadd.f32 %v1803_v57, %v1745_v19  ;;  %v1747_v36 = vpop.f32.mrf.mxu0  ;;  %v1507_v32 = vpack.c.bf16 %v1287_v4, %v1285_v49  ;;  %v1119_v19 = vmul.f32 %v5498_v52, %v951_v2  ;;  %v1319_v49 = vld [vmem:[%s7362_s3 + $0x238] sm:$0xff]  ;;  %v964_v2 = vld [vmem:[%s7363_s4 + $0x3e0] sm:$0xff]  ;;  %v965_v28 = vld [vmem:[%s7363_s4 + $0x3e8] sm:$0xff] }
 0x1e3   :  { %2294 = vmatpush.bf16.msra.mxu2 %v1539_v37  ;;  %7518 = vst [vmem:[#allocation49_spill] sm:$0xff] %v5927_v15  ;;  %v1317_v37 = vld [vmem:[%s7362_s3 + $0x228] sm:$0xff] }
 0x1e4   :  { %1913 = vmatmul.bf16.gmra.mxu3 %v5894_v48  ;;  %2176 = vmatpush.bf16.msra.mxu0 %v1507_v32 }
 0x1e5   :  { %1972 = vmatmul.bf16.gmra.mxu0 %v5905_v40  ;;  %v1523_v40 = vpack.c.bf16 %v1319_v49, %v1317_v37 }
 0x1e7   :  { %v1688_v47 = vpop.f32.mrf.mxu3  ;;  %v1862_v57 = vpop.f32.mrf.mxu2  ;;  %2235 = vmatpush.bf16.msra.mxu1 %v1523_v40 }
 0x1e8   :  { %v1748_v38 = vadd.f32 %v1747_v36, %v1688_v47  ;;  %v1806_v44 = vpop.f32.mrf.mxu1  ;;  %v5925_v20 = vadd.f32 %v1862_v57, %v1804_v9  ;;  %v5936_v36 = vpack.c.bf16 %v1119_v19, %v1111_v51  ;;  %v956_v9 = vld [vmem:[%s7363_s4 + $0x3a0] sm:$0xff]  ;;  %v1132_v47 = vmul.f32 %v5427_v10, %v964_v2  ;;  %v966_v2 = vld [vmem:[%s7363_s4 + $0x3f0] sm:$0xff] }
 0x1e9   :  { %v1124_v32 = vmul.f32 %v5427_v10, %v956_v9  ;;  %v1125_v19 = vmul.f32 %v5445_v61, %v957_v39  ;;  %v1133_v57 = vmul.f32 %v5445_v61, %v965_v28  ;;  %v958_v9 = vld [vmem:[%s7363_s4 + $0x3b0] sm:$0xff]  ;;  %v1249_v28 = vld [vmem:[%s7362_s3 + $0x8] sm:$0xff] }
 0x1ea   :  { %7517 = vst [vmem:[#allocation48_spill] sm:$0xff] %v5925_v20  ;;  %v1807_v4 = vadd.f32 %v1806_v44, %v1748_v38  ;;  %v1749_v63 = vpop.f32.mrf.mxu0 }
 0x1eb   :  { %2031 = vmatmul.bf16.gmra.mxu1 %v5927_v15  ;;  %7519 = vst [vmem:[#allocation50_spill] sm:$0xff] %v5936_v36  ;;  %v5958_v40 = vpack.c.bf16 %v1132_v47, %v1124_v32  ;;  %v5966_v39 = vpack.c.bf16 %v1133_v57, %v1125_v19  ;;  %v1251_v32 = vld [vmem:[%s7362_s3 + $0x18] sm:$0xff]  ;;  %v1126_v47 = vmul.f32 %v5474_v18, %v958_v9  ;;  %v1345_v9 = vld [vmem:[%s7362_s3 + $0x308] sm:$0xff] }
 0x1ec   :  { %3795 = vmatmul.msk.bf16.gmra.mxu2 %vm1608_vm1, %v5936_v36  ;;  %v1489_v19 = vpack.c.bf16 %v1251_v32, %v1249_v28 }
 0x1ed   :  { %7521 = vst [vmem:[#allocation52_spill] sm:$0xff] %v5958_v40 }
 0x1ee   :  { %7522 = vst [vmem:[#allocation53_spill] sm:$0xff] %v5966_v39  ;;  %2118 = vmatpush.bf16.msra.mxu3 %v1489_v19 }
 0x1ef   :  { %v1690_v51 = vpop.f32.mrf.mxu3  ;;  %v1865_v38 = vpop.f32.mrf.mxu2 }
 0x1f0   :  { %v1750_v44 = vadd.f32 %v1749_v63, %v1690_v51  ;;  %v1808_v37 = vpop.f32.mrf.mxu1  ;;  %v5956_v49 = vadd.f32 %v1865_v38, %v1807_v4  ;;  %v959_v63 = vld [vmem:[%s7363_s4 + $0x3b8] sm:$0xff]  ;;  %v1134_v51 = vmul.f32 %v5474_v18, %v966_v2 }
 0x1f1   :  { %v967_v4 = vld [vmem:[%s7363_s4 + $0x3f8] sm:$0xff]  ;;  %v1127_v38 = vmul.f32 %v5498_v52, %v959_v63 }
 0x1f2   :  { %7520 = vst [vmem:[#allocation51_spill] sm:$0xff] %v5956_v49  ;;  %v1809_v15 = vadd.f32 %v1808_v37, %v1750_v44  ;;  %v1752_v48 = vpop.f32.mrf.mxu0  ;;  %v1135_v44 = vmul.f32 %v5498_v52, %v967_v4  ;;  %v5988_v23 = vpack.c.bf16 %v1134_v51, %v1126_v47  ;;  %v1347_v2 = vld [vmem:[%s7362_s3 + $0x318] sm:$0xff]  ;;  %v973_v47 = vld [vmem:[%s7363_s4 + $0x428] sm:$0xff] }
 0x1f3   :  { %v1537_v32 = vpack.c.bf16 %v1347_v2, %v1345_v9  ;;  %v1283_v51 = vld [vmem:[%s7362_s3 + $0x118] sm:$0xff] }
 0x1f4   :  { %1918 = vmatmul.bf16.gmra.mxu3 %v5958_v40  ;;  %7524 = vst [vmem:[#allocation55_spill] sm:$0xff] %v5988_v23  ;;  %v5997_v4 = vpack.c.bf16 %v1135_v44, %v1127_v38  ;;  %v1315_v38 = vld [vmem:[%s7362_s3 + $0x218] sm:$0xff] }
 0x1f5   :  { %1977 = vmatmul.bf16.gmra.mxu0 %v5966_v39  ;;  %2295 = vmatpush.bf16.msra.mxu2 %v1537_v32  ;;  %v1141_v32 = vmul.f32 %v5445_v61, %v973_v47 }
 0x1f6   :  { %7525 = vst [vmem:[#allocation56_spill] sm:$0xff] %v5997_v4 }
 0x1f7   :  { %v1693_v57 = vpop.f32.mrf.mxu3  ;;  %v1867_v37 = vpop.f32.mrf.mxu2 }
 0x1f8   :  { %v1753_v40 = vadd.f32 %v1752_v48, %v1693_v57  ;;  %v1811_v36 = vpop.f32.mrf.mxu1  ;;  %v5986_v49 = vadd.f32 %v1867_v37, %v1809_v15  ;;  %v972_v48 = vld [vmem:[%s7363_s4 + $0x420] sm:$0xff]  ;;  %v1313_v57 = vld [vmem:[%s7362_s3 + $0x208] sm:$0xff] }
 0x1f9   :  { %v980_v15 = vld [vmem:[%s7363_s4 + $0x460] sm:$0xff]  ;;  %v1140_v44 = vmul.f32 %v5427_v10, %v972_v48  ;;  %v1521_v9 = vpack.c.bf16 %v1315_v38, %v1313_v57  ;;  %v974_v48 = vld [vmem:[%s7363_s4 + $0x430] sm:$0xff] }
 0x1fa   :  { %7523 = vst [vmem:[#allocation54_spill] sm:$0xff] %v5986_v49  ;;  %v1812_v28 = vadd.f32 %v1811_v36, %v1753_v40  ;;  %v1754_v63 = vpop.f32.mrf.mxu0  ;;  %v981_v36 = vld [vmem:[%s7363_s4 + $0x468] sm:$0xff]  ;;  %v1148_v37 = vmul.f32 %v5427_v10, %v980_v15  ;;  %v982_v15 = vld [vmem:[%s7363_s4 + $0x470] sm:$0xff] }
 0x1fb   :  { %2036 = vmatmul.bf16.gmra.mxu1 %v5988_v23  ;;  %v1281_v40 = vld [vmem:[%s7362_s3 + $0x108] sm:$0xff]  ;;  %v1149_v23 = vmul.f32 %v5445_v61, %v981_v36  ;;  %v1150_v36 = vmul.f32 %v5474_v18, %v982_v15 }
 0x1fc   :  { %3796 = vmatmul.msk.bf16.gmra.mxu2 %vm1608_vm1, %v5997_v4  ;;  %v1505_v19 = vpack.c.bf16 %v1283_v51, %v1281_v40  ;;  %2236 = vmatpush.bf16.msra.mxu1 %v1521_v9  ;;  %v6031_v3 = vpack.c.bf16 %v1148_v37, %v1140_v44 }
 0x1fd   :  { %v6039_v47 = vpack.c.bf16 %v1149_v23, %v1141_v32  ;;  %v1405_v23 = vld [vmem:[%s7362_s3 + $0x4e8] sm:$0xff] }
 0x1fe   :  { %2177 = vmatpush.bf16.msra.mxu0 %v1505_v19  ;;  %7526 = vst [vmem:[#allocation57_spill] sm:$0xff] %v6031_v3  ;;  %v1407_v19 = vld [vmem:[%s7362_s3 + $0x4f8] sm:$0xff] }
 0x1ff   :  { %v1695_v2 = vpop.f32.mrf.mxu3  ;;  %v1870_v40 = vpop.f32.mrf.mxu2  ;;  %7527 = vst [vmem:[#allocation58_spill] sm:$0xff] %v6039_v47  ;;  %v1567_v57 = vpack.c.bf16 %v1407_v19, %v1405_v23  ;;  %v1437_v23 = vld [vmem:[%s7362_s3 + $0x5e8] sm:$0xff] }
 0x200   :  { %v1755_v51 = vadd.f32 %v1754_v63, %v1695_v2  ;;  %v1813_v4 = vpop.f32.mrf.mxu1  ;;  %v6029_v39 = vadd.f32 %v1870_v40, %v1812_v28  ;;  %v975_v28 = vld [vmem:[%s7363_s4 + $0x438] sm:$0xff] }
 0x201   :  { %v983_v63 = vld [vmem:[%s7363_s4 + $0x478] sm:$0xff]  ;;  %v1143_v44 = vmul.f32 %v5498_v52, %v975_v28  ;;  %2347 = vmatpush.bf16.msrb.mxu3 %v1567_v57  ;;  %v988_v28 = vld [vmem:[%s7363_s4 + $0x4a0] sm:$0xff] }
 0x202   :  { %v1814_v49 = vadd.f32 %v1813_v4, %v1755_v51  ;;  %v1943_v20 = vpop.f32.mrf.mxu0  ;;  %v1142_v4 = vmul.f32 %v5474_v18, %v974_v48  ;;  %v1151_v37 = vmul.f32 %v5498_v52, %v983_v63  ;;  %v1156_v19 = vmul.f32 %v5427_v10, %v988_v28  ;;  %v1471_v28 = vld [vmem:[%s7362_s3 + $0x6f8] sm:$0xff] }
 0x204   :  { %1923 = vmatmul.bf16.gmra.mxu3 %v6031_v3  ;;  %v6062_v51 = vpack.c.bf16 %v1150_v36, %v1142_v4  ;;  %v1485_v4 = vld [vmem:[%s7362_s3 + $0x768] sm:$0xff]  ;;  %v1487_v36 = vld [vmem:[%s7362_s3 + $0x778] sm:$0xff] }
 0x205   :  { %1982 = vmatmul.bf16.gmra.mxu0 %v6039_v47  ;;  %v6065_v47 = vpack.c.bf16 %v1151_v37, %v1143_v44  ;;  %v1439_v44 = vld [vmem:[%s7362_s3 + $0x5f8] sm:$0xff] }
 0x206   :  { %7528 = vst [vmem:[#allocation59_spill] sm:$0xff] %v6062_v51 }
 0x207   :  { %v1884_v38 = vpop.f32.mrf.mxu3  ;;  %v1872_v9 = vpop.f32.mrf.mxu2  ;;  %7529 = vst [vmem:[#allocation60_spill] sm:$0xff] %v6065_v47 }
 0x208   :  { %v1885_v2 = vadd.f32 %v1884_v38, %v5363_v42  ;;  %v2002_v32 = vpop.f32.mrf.mxu1  ;;  %v6060_v40 = vadd.f32 %v1872_v9, %v1814_v49  ;;  %v996_v42 = vld [vmem:[%s7363_s4 + $0x4e0] sm:$0xff]  ;;  %v989_v49 = vld [vmem:[%s7363_s4 + $0x4a8] sm:$0xff]  ;;  %v1607_v38 = vpack.c.bf16 %v1487_v36, %v1485_v4 }
 0x209   :  { %v1164_v57 = vmul.f32 %v5427_v10, %v996_v42  ;;  %v1157_v9 = vmul.f32 %v5445_v61, %v989_v49  ;;  %v1469_v10 = vld [vmem:[%s7362_s3 + $0x6e8] sm:$0xff] }
 0x20a   :  { %v1944_v48 = vadd.f32 %v1943_v20, %v1885_v2  ;;  %v1945_v15 = vpop.f32.mrf.mxu0  ;;  %v997_v20 = vld [vmem:[%s7363_s4 + $0x4e8] sm:$0xff]  ;;  %2528 = vmatpush.bf16.msrb.mxu2 %v1607_v38 }
 0x20b   :  { %2041 = vmatmul.bf16.gmra.mxu1 %v6062_v51  ;;  %v1165_v2 = vmul.f32 %v5445_v61, %v997_v20  ;;  %v6106_v61 = vpack.c.bf16 %v1164_v57, %v1156_v19  ;;  %v1599_v20 = vpack.c.bf16 %v1471_v28, %v1469_v10 }
 0x20c   :  { %v2003_v63 = vadd.f32 %v2002_v32, %v1944_v48  ;;  %3797 = vmatmul.msk.bf16.gmra.mxu2 %vm1608_vm1, %v6065_v47  ;;  %v1583_v32 = vpack.c.bf16 %v1439_v44, %v1437_v23 }
 0x20d   :  { %v6114_v4 = vpack.c.bf16 %v1165_v2, %v1157_v9  ;;  %2465 = vmatpush.bf16.msrb.mxu1 %v1599_v20 }
 0x20e   :  { %2406 = vmatpush.bf16.msrb.mxu0 %v1583_v32 }
 0x20f   :  { %v1886_v37 = vpop.f32.mrf.mxu3  ;;  %v2061_v48 = vpop.f32.mrf.mxu2 }
 0x210   :  { %v1887_v47 = vadd.f32 %v1886_v37, %v5423_v16  ;;  %v2004_v51 = vpop.f32.mrf.mxu1  ;;  %v6098_v3 = vadd.f32 %v2061_v48, %v2003_v63  ;;  %v990_v16 = vld [vmem:[%s7363_s4 + $0x4b0] sm:$0xff] }
 0x211   :  { %v998_v63 = vld [vmem:[%s7363_s4 + $0x4f0] sm:$0xff]  ;;  %v1158_v23 = vmul.f32 %v5474_v18, %v990_v16 }
 0x212   :  { %7530 = vst [vmem:[#allocation61_spill] sm:$0xff] %v6098_v3  ;;  %v1946_v42 = vadd.f32 %v1945_v15, %v1887_v47  ;;  %v1948_v49 = vpop.f32.mrf.mxu0  ;;  %v991_v47 = vld [vmem:[%s7363_s4 + $0x4b8] sm:$0xff]  ;;  %v1166_v19 = vmul.f32 %v5474_v18, %v998_v63 }
 0x213   :  { %v999_v15 = vld [vmem:[%s7363_s4 + $0x4f8] sm:$0xff] }
 0x214   :  { %v2005_v36 = vadd.f32 %v2004_v51, %v1946_v42  ;;  %1928 = vmatmul.bf16.gmra.mxu3 %v6106_v61  ;;  %v1159_v51 = vmul.f32 %v5498_v52, %v991_v47  ;;  %v1167_v38 = vmul.f32 %v5498_v52, %v999_v15  ;;  %v6131_v32 = vpack.c.bf16 %v1166_v19, %v1158_v23  ;;  %v1401_v42 = vld [vmem:[%s7362_s3 + $0x4c8] sm:$0xff] }
 0x215   :  { %1987 = vmatmul.bf16.gmra.mxu0 %v6114_v4  ;;  %v1433_v19 = vld [vmem:[%s7362_s3 + $0x5c8] sm:$0xff] }
 0x216   :  { %v6134_v28 = vpack.c.bf16 %v1167_v38, %v1159_v51  ;;  %v1467_v38 = vld [vmem:[%s7362_s3 + $0x6d8] sm:$0xff] }
 0x217   :  { %v1889_v57 = vpop.f32.mrf.mxu3  ;;  %v2063_v44 = vpop.f32.mrf.mxu2 }
 0x218   :  { %v1890_v37 = vadd.f32 %v1889_v57, %v5476_v35  ;;  %v2007_v9 = vpop.f32.mrf.mxu1  ;;  %v6129_v2 = vadd.f32 %v2063_v44, %v2005_v36  ;;  %v1403_v35 = vld [vmem:[%s7362_s3 + $0x4d8] sm:$0xff] }
 0x219   :  { %v1565_v52 = vpack.c.bf16 %v1403_v35, %v1401_v42  ;;  %v1435_v57 = vld [vmem:[%s7362_s3 + $0x5d8] sm:$0xff]  ;;  %v1397_v35 = vld [vmem:[%s7362_s3 + $0x4a8] sm:$0xff] }
 0x21a   :  { %v1949_v48 = vadd.f32 %v1948_v49, %v1890_v37  ;;  %v1950_v10 = vpop.f32.mrf.mxu0  ;;  %v1581_v51 = vpack.c.bf16 %v1435_v57, %v1433_v19  ;;  %v1483_v19 = vld [vmem:[%s7362_s3 + $0x758] sm:$0xff]  ;;  %v1429_v57 = vld [vmem:[%s7362_s3 + $0x5a8] sm:$0xff] }
 0x21b   :  { %2046 = vmatmul.bf16.gmra.mxu1 %v6131_v32  ;;  %2348 = vmatpush.bf16.msrb.mxu3 %v1565_v52  ;;  %v1399_v52 = vld [vmem:[%s7362_s3 + $0x4b8] sm:$0xff] }
 0x21c   :  { %v2008_v18 = vadd.f32 %v2007_v9, %v1949_v48  ;;  %3798 = vmatmul.msk.bf16.gmra.mxu2 %vm1608_vm1, %v6134_v28  ;;  %2407 = vmatpush.bf16.msrb.mxu0 %v1581_v51 }
 0x21f   :  { %v1891_v16 = vpop.f32.mrf.mxu3  ;;  %v2066_v49 = vpop.f32.mrf.mxu2 }
 0x220   :  { %v1892_v63 = vadd.f32 %v1891_v16, %v5517_v34  ;;  %v2009_v20 = vpop.f32.mrf.mxu1  ;;  %v6145_v36 = vadd.f32 %v2066_v49, %v2008_v18  ;;  %v1465_v34 = vld [vmem:[%s7362_s3 + $0x6c8] sm:$0xff] }
 0x222   :  { %7531 = vst [vmem:[#allocation62_spill] sm:$0xff] %v6145_v36  ;;  %v1951_v47 = vadd.f32 %v1950_v10, %v1892_v63  ;;  %v1953_v15 = vpop.f32.mrf.mxu0 }
 0x224   :  { %v2010_v23 = vadd.f32 %v2009_v20, %v1951_v47  ;;  %2119 = vmatmul.bf16.vlgmr.msra.gmra.mxu3 %v4760_v55  ;;  %v1597_v55 = vpack.c.bf16 %v1467_v38, %v1465_v34  ;;  %v1431_v34 = vld [vmem:[%s7362_s3 + $0x5b8] sm:$0xff] }
 0x225   :  { %2178 = vmatmul.bf16.vlgmr.msra.gmra.mxu0 %v4762_v58 }
 0x226   :  { %2466 = vmatpush.bf16.msrb.mxu1 %v1597_v55 }
 0x227   :  { %v1894_v44 = vpop.f32.mrf.mxu3  ;;  %v2068_v37 = vpop.f32.mrf.mxu2 }
 0x228   :  { %v1895_v9 = vadd.f32 %v1894_v44, %v5548_v21  ;;  %v2012_v48 = vpop.f32.mrf.mxu1  ;;  %v6162_v10 = vadd.f32 %v2068_v37, %v2010_v23  ;;  %v1563_v21 = vpack.c.bf16 %v1399_v52, %v1397_v35  ;;  %v1481_v23 = vld [vmem:[%s7362_s3 + $0x748] sm:$0xff] }
 0x22a   :  { %7532 = vst [vmem:[#allocation63_spill] sm:$0xff] %v6162_v10  ;;  %v1954_v18 = vadd.f32 %v1953_v15, %v1895_v9  ;;  %v1955_v42 = vpop.f32.mrf.mxu0  ;;  %2349 = vmatpush.bf16.msrb.mxu3 %v1563_v21  ;;  %v1463_v9 = vld [vmem:[%s7362_s3 + $0x6b8] sm:$0xff] }
 0x22b   :  { %2237 = vmatmul.bf16.vlgmr.msra.gmra.mxu1 %v4785_v8 }
 0x22c   :  { %v2013_v58 = vadd.f32 %v2012_v48, %v1954_v18  ;;  %2296 = vmatmul.bf16.vlgmr.msra.gmra.mxu2 %v4790_v11 }
 0x22f   :  { %v1896_v16 = vpop.f32.mrf.mxu3  ;;  %v2071_v49 = vpop.f32.mrf.mxu2 }
 0x230   :  { %v1897_v63 = vadd.f32 %v1896_v16, %v5584_v54  ;;  %v2014_v20 = vpop.f32.mrf.mxu1  ;;  %v6173_v47 = vadd.f32 %v2071_v49, %v2013_v58  ;;  %v1605_v54 = vpack.c.bf16 %v1483_v19, %v1481_v23 }
 0x232   :  { %7533 = vst [vmem:[#allocation64_spill] sm:$0xff] %v6173_v47  ;;  %v1956_v8 = vadd.f32 %v1955_v42, %v1897_v63  ;;  %v1958_v15 = vpop.f32.mrf.mxu0  ;;  %2529 = vmatpush.bf16.msrb.mxu2 %v1605_v54 }
 0x234   :  { %v2015_v11 = vadd.f32 %v2014_v20, %v1956_v8  ;;  %2124 = vmatmul.bf16.gmra.mxu3 %v4821_v26  ;;  %v1579_v26 = vpack.c.bf16 %v1431_v34, %v1429_v57  ;;  %v1425_v34 = vld [vmem:[%s7362_s3 + $0x588] sm:$0xff] }
 0x235   :  { %2183 = vmatmul.bf16.gmra.mxu0 %v4829_v29  ;;  %v1461_v29 = vld [vmem:[%s7362_s3 + $0x6a8] sm:$0xff] }
 0x236   :  { %2408 = vmatpush.bf16.msrb.mxu0 %v1579_v26  ;;  %v1595_v42 = vpack.c.bf16 %v1463_v9, %v1461_v29 }
 0x237   :  { %v1899_v51 = vpop.f32.mrf.mxu3  ;;  %v2073_v38 = vpop.f32.mrf.mxu2 }
 0x238   :  { %v1900_v55 = vadd.f32 %v1899_v51, %v5615_v5  ;;  %v2017_v44 = vpop.f32.mrf.mxu1  ;;  %v6190_v37 = vadd.f32 %v2073_v38, %v2015_v11  ;;  %2467 = vmatpush.bf16.msrb.mxu1 %v1595_v42  ;;  %v1389_v42 = vld [vmem:[%s7362_s3 + $0x468] sm:$0xff] }
 0x23a   :  { %7534 = vst [vmem:[#allocation65_spill] sm:$0xff] %v6190_v37  ;;  %v1959_v48 = vadd.f32 %v1958_v15, %v1900_v55  ;;  %v1960_v18 = vpop.f32.mrf.mxu0 }
 0x23b   :  { %2242 = vmatmul.bf16.gmra.mxu1 %v4855_v43  ;;  %v1393_v43 = vld [vmem:[%s7362_s3 + $0x488] sm:$0xff] }
 0x23c   :  { %v2018_v58 = vadd.f32 %v2017_v44, %v1959_v48  ;;  %2301 = vmatmul.bf16.gmra.mxu2 %v4858_v45  ;;  %v1395_v45 = vld [vmem:[%s7362_s3 + $0x498] sm:$0xff] }
 0x23d   :  { %v1561_v8 = vpack.c.bf16 %v1395_v45, %v1393_v43  ;;  %v1479_v43 = vld [vmem:[%s7362_s3 + $0x738] sm:$0xff] }
 0x23f   :  { %v1901_v5 = vpop.f32.mrf.mxu3  ;;  %v2076_v35 = vpop.f32.mrf.mxu2  ;;  %2350 = vmatpush.bf16.msrb.mxu3 %v1561_v8 }
 0x240   :  { %v1902_v52 = vadd.f32 %v1901_v5, %v5645_v30  ;;  %v2019_v21 = vpop.f32.mrf.mxu1  ;;  %v6201_v16 = vadd.f32 %v2076_v35, %v2018_v58  ;;  %v1391_v58 = vld [vmem:[%s7362_s3 + $0x478] sm:$0xff] }
 0x242   :  { %7535 = vst [vmem:[#allocation66_spill] sm:$0xff] %v6201_v16  ;;  %v1961_v49 = vadd.f32 %v1960_v18, %v1902_v52  ;;  %v1963_v63 = vpop.f32.mrf.mxu0 }
 0x244   :  { %v2020_v20 = vadd.f32 %v2019_v21, %v1961_v49  ;;  %2129 = vmatmul.bf16.gmra.mxu3 %v4883_v59 }
 0x245   :  { %2188 = vmatmul.bf16.gmra.mxu0 %v4891_v62  ;;  %v1427_v62 = vld [vmem:[%s7362_s3 + $0x598] sm:$0xff] }
 0x246   :  { %v1577_v26 = vpack.c.bf16 %v1427_v62, %v1425_v34 }
 0x247   :  { %v1904_v30 = vpop.f32.mrf.mxu3  ;;  %v2078_v15 = vpop.f32.mrf.mxu2 }
 0x248   :  { %v1905_v11 = vadd.f32 %v1904_v30, %v5688_v22  ;;  %v2022_v23 = vpop.f32.mrf.mxu1  ;;  %v6212_v19 = vadd.f32 %v2078_v15, %v2020_v20  ;;  %v1457_v22 = vld [vmem:[%s7362_s3 + $0x688] sm:$0xff]  ;;  %2409 = vmatpush.bf16.msrb.mxu0 %v1577_v26 }
 0x249   :  { %v1477_v20 = vld [vmem:[%s7362_s3 + $0x728] sm:$0xff] }
 0x24a   :  { %7536 = vst [vmem:[#allocation67_spill] sm:$0xff] %v6212_v19  ;;  %v1964_v59 = vadd.f32 %v1963_v63, %v1905_v11  ;;  %v1965_v54 = vpop.f32.mrf.mxu0  ;;  %v1603_v45 = vpack.c.bf16 %v1479_v43, %v1477_v20 }
 0x24b   :  { %2247 = vmatmul.bf16.gmra.mxu1 %v4911_v13  ;;  %v1459_v13 = vld [vmem:[%s7362_s3 + $0x698] sm:$0xff] }
 0x24c   :  { %v2023_v57 = vadd.f32 %v2022_v23, %v1964_v59  ;;  %2306 = vmatmul.bf16.gmra.mxu2 %v4914_v14  ;;  %v1593_v51 = vpack.c.bf16 %v1459_v13, %v1457_v22  ;;  %v1453_v59 = vld [vmem:[%s7362_s3 + $0x668] sm:$0xff] }
 0x24d   :  { %2530 = vmatpush.bf16.msrb.mxu2 %v1603_v45 }
 0x24e   :  { %2468 = vmatpush.bf16.msrb.mxu1 %v1593_v51 }
 0x24f   :  { %v1906_v38 = vpop.f32.mrf.mxu3  ;;  %v2081_v55 = vpop.f32.mrf.mxu2 }
 0x250   :  { %v1907_v44 = vadd.f32 %v1906_v38, %v5718_v17  ;;  %v2024_v29 = vpop.f32.mrf.mxu1  ;;  %v6229_v9 = vadd.f32 %v2081_v55, %v2023_v57  ;;  %v1559_v17 = vpack.c.bf16 %v1391_v58, %v1389_v42 }
 0x252   :  { %7537 = vst [vmem:[#allocation68_spill] sm:$0xff] %v6229_v9  ;;  %v1966_v14 = vadd.f32 %v1965_v54, %v1907_v44  ;;  %v1968_v48 = vpop.f32.mrf.mxu0  ;;  %2351 = vmatpush.bf16.msrb.mxu3 %v1559_v17  ;;  %v1455_v54 = vld [vmem:[%s7362_s3 + $0x678] sm:$0xff] }
 0x253   :  { %v1591_v62 = vpack.c.bf16 %v1455_v54, %v1453_v59 }
 0x254   :  { %v2025_v18 = vadd.f32 %v2024_v29, %v1966_v14  ;;  %2134 = vmatmul.bf16.gmra.mxu3 %v4939_v27  ;;  %v1385_v14 = vld [vmem:[%s7362_s3 + $0x448] sm:$0xff] }
 0x255   :  { %2193 = vmatmul.bf16.gmra.mxu0 %v4947_v31  ;;  %2469 = vmatpush.bf16.msrb.mxu1 %v1591_v62 }
 0x257   :  { %v1909_v5 = vpop.f32.mrf.mxu3  ;;  %v2083_v35 = vpop.f32.mrf.mxu2 }
 0x258   :  { %v1910_v52 = vadd.f32 %v1909_v5, %v5755_v6  ;;  %v2027_v21 = vpop.f32.mrf.mxu1  ;;  %v6240_v49 = vadd.f32 %v2083_v35, %v2025_v18  ;;  %v1421_v6 = vld [vmem:[%s7362_s3 + $0x568] sm:$0xff] }
 0x259   :  { %v1417_v35 = vld [vmem:[%s7362_s3 + $0x548] sm:$0xff] }
 0x25a   :  { %7538 = vst [vmem:[#allocation69_spill] sm:$0xff] %v6240_v49  ;;  %v1969_v27 = vadd.f32 %v1968_v48, %v1910_v52  ;;  %v1970_v63 = vpop.f32.mrf.mxu0 }
 0x25b   :  { %2252 = vmatmul.bf16.gmra.mxu1 %v4967_v41  ;;  %v1423_v41 = vld [vmem:[%s7362_s3 + $0x578] sm:$0xff] }
 0x25c   :  { %v2028_v31 = vadd.f32 %v2027_v21, %v1969_v27  ;;  %2311 = vmatmul.bf16.gmra.mxu2 %v4970_v46  ;;  %v1575_v30 = vpack.c.bf16 %v1423_v41, %v1421_v6  ;;  %v1451_v21 = vld [vmem:[%s7362_s3 + $0x658] sm:$0xff]  ;;  %v7543_v41 = vld [vmem:[#allocation5_spill] sm:$0xff] }
 0x25e   :  { %2410 = vmatpush.bf16.msrb.mxu0 %v1575_v30  ;;  %v1383_v30 = vld [vmem:[%s7362_s3 + $0x438] sm:$0xff] }
 0x25f   :  { %v1911_v8 = vpop.f32.mrf.mxu3  ;;  %v2086_v46 = vpop.f32.mrf.mxu2 }
 0x260   :  { %v1912_v15 = vadd.f32 %v1911_v8, %v5785_v33  ;;  %v2029_v11 = vpop.f32.mrf.mxu1  ;;  %v6257_v23 = vadd.f32 %v2086_v46, %v2028_v31  ;;  %v1381_v8 = vld [vmem:[%s7362_s3 + $0x428] sm:$0xff] }
 0x262   :  { %7539 = vst [vmem:[#allocation70_spill] sm:$0xff] %v6257_v23  ;;  %v1971_v57 = vadd.f32 %v1970_v63, %v1912_v15  ;;  %v1973_v34 = vpop.f32.mrf.mxu0 }
 0x264   :  { %v2030_v26 = vadd.f32 %v2029_v11, %v1971_v57  ;;  %2139 = vmatmul.bf16.gmra.mxu3 %v5007_v7  ;;  %v1387_v7 = vld [vmem:[%s7362_s3 + $0x458] sm:$0xff]  ;;  %v7544_v11 = vld [vmem:[#allocation48_spill] sm:$0xff] }
 0x265   :  { %2198 = vmatmul.bf16.gmra.mxu0 %v5015_v12  ;;  %v1557_v12 = vpack.c.bf16 %v1387_v7, %v1385_v14 }
 0x267   :  { %v1914_v33 = vpop.f32.mrf.mxu3  ;;  %v2088_v22 = vpop.f32.mrf.mxu2  ;;  %2352 = vmatpush.bf16.msrb.mxu3 %v1557_v12  ;;  %v7548_v12 = vld [vmem:[#allocation51_spill] sm:$0xff] }
 0x268   :  { %v1915_v13 = vadd.f32 %v1914_v33, %v5819_v56  ;;  %v2032_v51 = vpop.f32.mrf.mxu1  ;;  %v6268_v38 = vadd.f32 %v2088_v22, %v2030_v26  ;;  %v7546_v26 = vld [vmem:[#allocation6_spill] sm:$0xff]  ;;  %v1473_v33 = vld [vmem:[%s7362_s3 + $0x708] sm:$0xff]  ;;  %v1475_v22 = vld [vmem:[%s7362_s3 + $0x718] sm:$0xff] }
 0x26a   :  { %7540 = vst [vmem:[#allocation71_spill] sm:$0xff] %v6268_v38  ;;  %v1974_v55 = vadd.f32 %v1973_v34, %v1915_v13  ;;  %v1975_v44 = vpop.f32.mrf.mxu0  ;;  %v7547_v13 = vld [vmem:[#allocation7_spill] sm:$0xff] }
 0x26b   :  { %2257 = vmatmul.bf16.gmra.mxu1 %v5035_v24 }
 0x26c   :  { %v2033_v29 = vadd.f32 %v2032_v51, %v1974_v55  ;;  %2316 = vmatmul.bf16.gmra.mxu2 %v5038_v25  ;;  %v1419_v25 = vld [vmem:[%s7362_s3 + $0x558] sm:$0xff]  ;;  %v1601_v51 = vpack.c.bf16 %v1475_v22, %v1473_v33  ;;  %v1413_v55 = vld [vmem:[%s7362_s3 + $0x528] sm:$0xff]  ;;  %v7557_v22 = vld [vmem:[#allocation12_spill] sm:$0xff] }
 0x26d   :  { %v1573_v52 = vpack.c.bf16 %v1419_v25, %v1417_v35  ;;  %v7550_v25 = vld [vmem:[#allocation8_spill] sm:$0xff]  ;;  %v1411_v33 = vld [vmem:[%s7362_s3 + $0x518] sm:$0xff] }
 0x26e   :  { %2531 = vmatpush.bf16.msrb.mxu2 %v1601_v51 }
 0x26f   :  { %v1916_v56 = vpop.f32.mrf.mxu3  ;;  %v2091_v48 = vpop.f32.mrf.mxu2  ;;  %2411 = vmatpush.bf16.msrb.mxu0 %v1573_v52  ;;  %v7551_v52 = vld [vmem:[#allocation9_spill] sm:$0xff] }
 0x270   :  { %v1917_v18 = vadd.f32 %v1916_v56, %v5858_v0  ;;  %v2034_v42 = vpop.f32.mrf.mxu1  ;;  %v6279_v58 = vadd.f32 %v2091_v48, %v2033_v29  ;;  %v1449_v0 = vld [vmem:[%s7362_s3 + $0x648] sm:$0xff] }
 0x272   :  { %7541 = vst [vmem:[#allocation72_spill] sm:$0xff] %v6279_v58  ;;  %v1976_v24 = vadd.f32 %v1975_v44, %v1917_v18  ;;  %v1978_v17 = vpop.f32.mrf.mxu0  ;;  %v1415_v44 = vld [vmem:[%s7362_s3 + $0x538] sm:$0xff] }
 0x273   :  { %v1571_v29 = vpack.c.bf16 %v1415_v44, %v1413_v55  ;;  %v7558_v55 = vld [vmem:[#allocation13_spill] sm:$0xff]  ;;  %v1443_v44 = vld [vmem:[%s7362_s3 + $0x618] sm:$0xff] }
 0x274   :  { %v2035_v5 = vadd.f32 %v2034_v42, %v1976_v24  ;;  %2144 = vmatmul.bf16.gmra.mxu3 %v5069_v50  ;;  %v1589_v50 = vpack.c.bf16 %v1451_v21, %v1449_v0  ;;  %v1445_v42 = vld [vmem:[%s7362_s3 + $0x628] sm:$0xff]  ;;  %v1447_v24 = vld [vmem:[%s7362_s3 + $0x638] sm:$0xff] }
 0x275   :  { %2203 = vmatmul.bf16.gmra.mxu0 %v5077_v53  ;;  %v1587_v35 = vpack.c.bf16 %v1447_v24, %v1445_v42 }
 0x276   :  { %2470 = vmatpush.bf16.msrb.mxu1 %v1589_v50  ;;  %2412 = vmatpush.bf16.msrb.mxu0 %v1571_v29 }
 0x277   :  { %v1919_v27 = vpop.f32.mrf.mxu3  ;;  %v2093_v63 = vpop.f32.mrf.mxu2 }
 0x278   :  { %v1920_v31 = vadd.f32 %v1919_v27, %v5889_v60  ;;  %v2037_v20 = vpop.f32.mrf.mxu1  ;;  %v6296_v43 = vadd.f32 %v2093_v63, %v2035_v5  ;;  %v1555_v60 = vpack.c.bf16 %v1383_v30, %v1381_v8  ;;  %v7552_v27 = vld [vmem:[#allocation54_spill] sm:$0xff] }
 0x27a   :  { %7542 = vst [vmem:[#allocation73_spill] sm:$0xff] %v6296_v43  ;;  %v1979_v6 = vadd.f32 %v1978_v17, %v1920_v31  ;;  %v1980_v45 = vpop.f32.mrf.mxu0  ;;  %2353 = vmatpush.bf16.msrb.mxu3 %v1555_v60  ;;  %2471 = vmatpush.bf16.msrb.mxu1 %v1587_v35  ;;  %v7554_v60 = vld [vmem:[#allocation10_spill] sm:$0xff]  ;;  %v7561_v35 = vld [vmem:[#allocation15_spill] sm:$0xff] }
 0x27b   :  { %2262 = vmatmul.bf16.gmra.mxu1 %v5091_v1 }
 0x27c   :  { %v2038_v53 = vadd.f32 %v2037_v20, %v1979_v6  ;;  %2321 = vmatmul.bf16.gmra.mxu2 %v7543_v41  ;;  %v1379_v41 = vld [vmem:[%s7362_s3 + $0x418] sm:$0xff] }
 0x27f   :  { %v1921_v46 = vpop.f32.mrf.mxu3  ;;  %v2096_v15 = vpop.f32.mrf.mxu2 }
 0x280   :  { %v1922_v59 = vadd.f32 %v1921_v46, %v7544_v11  ;;  %v2039_v54 = vpop.f32.mrf.mxu1  ;;  %v6307_v57 = vadd.f32 %v2096_v15, %v2038_v53  ;;  %v1377_v53 = vld [vmem:[%s7362_s3 + $0x408] sm:$0xff]  ;;  %v7555_v46 = vld [vmem:[#allocation11_spill] sm:$0xff] }
 0x281   :  { %v1553_v8 = vpack.c.bf16 %v1379_v41, %v1377_v53 }
 0x282   :  { %7545 = vst [vmem:[#allocation5_spill] sm:$0xff] %v6307_v57  ;;  %v1981_v1 = vadd.f32 %v1980_v45, %v1922_v59  ;;  %v1983_v34 = vpop.f32.mrf.mxu0 }
 0x283   :  { %2354 = vmatpush.bf16.msrb.mxu3 %v1553_v8 }
 0x284   :  { %v2040_v62 = vadd.f32 %v2039_v54, %v1981_v1  ;;  %2149 = vmatmul.bf16.gmra.mxu3 %v7546_v26  ;;  %v1409_v26 = vld [vmem:[%s7362_s3 + $0x508] sm:$0xff] }
 0x285   :  { %2208 = vmatmul.bf16.gmra.mxu0 %v7547_v13  ;;  %v1569_v13 = vpack.c.bf16 %v1411_v33, %v1409_v26 }
 0x287   :  { %v1924_v14 = vpop.f32.mrf.mxu3  ;;  %v2098_v7 = vpop.f32.mrf.mxu2  ;;  %2413 = vmatpush.bf16.msrb.mxu0 %v1569_v13  ;;  %v7567_v13 = vld [vmem:[#allocation21_spill] sm:$0xff] }
 0x288   :  { %v1925_v56 = vadd.f32 %v1924_v14, %v7548_v12  ;;  %v2042_v48 = vpop.f32.mrf.mxu1  ;;  %v6324_v18 = vadd.f32 %v2098_v7, %v2040_v62 }
 0x28a   :  { %7549 = vst [vmem:[#allocation48_spill] sm:$0xff] %v6324_v18  ;;  %v1984_v17 = vadd.f32 %v1983_v34, %v1925_v56  ;;  %v1985_v5 = vpop.f32.mrf.mxu0 }
 0x28b   :  { %2267 = vmatmul.bf16.gmra.mxu1 %v7550_v25 }
 0x28c   :  { %v2043_v0 = vadd.f32 %v2042_v48, %v1984_v17  ;;  %2326 = vmatmul.bf16.gmra.mxu2 %v7551_v52 }
 0x28f   :  { %v1926_v21 = vpop.f32.mrf.mxu3  ;;  %v2101_v50 = vpop.f32.mrf.mxu2 }
 0x290   :  { %v1927_v63 = vadd.f32 %v1926_v21, %v7552_v27  ;;  %v2044_v31 = vpop.f32.mrf.mxu1  ;;  %v6335_v20 = vadd.f32 %v2101_v50, %v2043_v0 }
 0x292   :  { %7553 = vst [vmem:[#allocation6_spill] sm:$0xff] %v6335_v20  ;;  %v1986_v6 = vadd.f32 %v1985_v5, %v1927_v63  ;;  %v1988_v45 = vpop.f32.mrf.mxu0  ;;  %v7560_v5 = vld [vmem:[#allocation14_spill] sm:$0xff] }
 0x294   :  { %v2045_v30 = vadd.f32 %v2044_v31, %v1986_v6  ;;  %2154 = vmatmul.bf16.gmra.mxu3 %v7554_v60  ;;  %v7563_v31 = vld [vmem:[#allocation17_spill] sm:$0xff] }
 0x295   :  { %2213 = vmatmul.bf16.gmra.mxu0 %v7555_v46  ;;  %v7564_v46 = vld [vmem:[#allocation18_spill] sm:$0xff] }
 0x297   :  { %v1929_v15 = vpop.f32.mrf.mxu3  ;;  %v2103_v11 = vpop.f32.mrf.mxu2 }
 0x298   :  { %v1930_v59 = vadd.f32 %v1929_v15, %v6029_v39  ;;  %v2047_v54 = vpop.f32.mrf.mxu1  ;;  %v6346_v1 = vadd.f32 %v2103_v11, %v2045_v30  ;;  %v1441_v39 = vld [vmem:[%s7362_s3 + $0x608] sm:$0xff]  ;;  %v7565_v15 = vld [vmem:[#allocation19_spill] sm:$0xff] }
 0x299   :  { %v1585_v29 = vpack.c.bf16 %v1443_v44, %v1441_v39 }
 0x29a   :  { %7556 = vst [vmem:[#allocation7_spill] sm:$0xff] %v6346_v1  ;;  %v1989_v34 = vadd.f32 %v1988_v45, %v1930_v59  ;;  %v1990_v62 = vpop.f32.mrf.mxu0 }
 0x29b   :  { %2272 = vmatmul.bf16.gmra.mxu1 %v7557_v22  ;;  %v7566_v22 = vld [vmem:[#allocation20_spill] sm:$0xff] }
 0x29c   :  { %v2048_v51 = vadd.f32 %v2047_v54, %v1989_v34  ;;  %2331 = vmatmul.bf16.gmra.mxu2 %v7558_v55  ;;  %2472 = vmatpush.bf16.msrb.mxu1 %v1585_v29 }
 0x29f   :  { %v1931_v14 = vpop.f32.mrf.mxu3  ;;  %v2106_v7 = vpop.f32.mrf.mxu2 }
 0x2a0   :  { %v1932_v12 = vadd.f32 %v1931_v14, %v6060_v40  ;;  %v2049_v56 = vpop.f32.mrf.mxu1  ;;  %v6363_v48 = vadd.f32 %v2106_v7, %v2048_v51  ;;  %v7562_v40 = vld [vmem:[#allocation16_spill] sm:$0xff] }
 0x2a2   :  { %7559 = vst [vmem:[#allocation51_spill] sm:$0xff] %v6363_v48  ;;  %v1991_v42 = vadd.f32 %v1990_v62, %v1932_v12  ;;  %v2179_v24 = vpop.f32.mrf.mxu0  ;;  %v7568_v12 = vld [vmem:[#allocation22_spill] sm:$0xff] }
 0x2a4   :  { %v2050_v17 = vadd.f32 %v2049_v56, %v1991_v42  ;;  %2159 = vmatmul.bf16.gmra.mxu3 %v7560_v5  ;;  %v7569_v56 = vld [vmem:[#allocation23_spill] sm:$0xff] }
 0x2a5   :  { %2218 = vmatmul.bf16.gmra.mxu0 %v7561_v35 }
 0x2a7   :  { %v2120_v25 = vpop.f32.mrf.mxu3  ;;  %v2108_v0 = vpop.f32.mrf.mxu2 }
 0x2a8   :  { %v2180_v52 = vadd.f32 %v2179_v24, %v2120_v25  ;;  %v2238_v21 = vpop.f32.mrf.mxu1  ;;  %v6367_v50 = vadd.f32 %v2108_v0, %v2050_v17 }
 0x2aa   :  { %v2239_v27 = vadd.f32 %v2238_v21, %v2180_v52  ;;  %v2181_v63 = vpop.f32.mrf.mxu0  ;;  %v7570_v52 = vld [vmem:[#allocation24_spill] sm:$0xff]  ;;  %v7571_v21 = vld [vmem:[#allocation25_spill] sm:$0xff] }
 0x2ab   :  { %2277 = vmatmul.bf16.gmra.mxu1 %v7562_v40 }
 0x2ac   :  { %2336 = vmatmul.bf16.gmra.mxu2 %v7563_v31 }
 0x2af   :  { %v2122_v6 = vpop.f32.mrf.mxu3  ;;  %v2297_v45 = vpop.f32.mrf.mxu2 }
 0x2b0   :  { %v2182_v53 = vadd.f32 %v2181_v63, %v2122_v6  ;;  %v2240_v41 = vpop.f32.mrf.mxu1  ;;  %v6371_v8 = vadd.f32 %v2297_v45, %v2239_v27 }
 0x2b2   :  { %v2241_v30 = vadd.f32 %v2240_v41, %v2182_v53  ;;  %v2184_v60 = vpop.f32.mrf.mxu0  ;;  %v7572_v41 = vld [vmem:[#allocation26_spill] sm:$0xff] }
 0x2b4   :  { %2164 = vmatmul.bf16.gmra.mxu3 %v7564_v46 }
 0x2b5   :  { %2223 = vmatmul.bf16.gmra.mxu0 %v7565_v15 }
 0x2b7   :  { %v2125_v11 = vpop.f32.mrf.mxu3  ;;  %v2299_v59 = vpop.f32.mrf.mxu2 }
 0x2b8   :  { %v2185_v54 = vadd.f32 %v2184_v60, %v2125_v11  ;;  %v2243_v34 = vpop.f32.mrf.mxu1  ;;  %v6375_v62 = vadd.f32 %v2299_v59, %v2241_v30  ;;  %v7573_v30 = vld [vmem:[#allocation27_spill] sm:$0xff] }
 0x2ba   :  { %v2244_v26 = vadd.f32 %v2243_v34, %v2185_v54  ;;  %v2186_v33 = vpop.f32.mrf.mxu0 }
 0x2bb   :  { %2282 = vmatmul.bf16.gmra.mxu1 %v7566_v22 }
 0x2bc   :  { %2341 = vmatmul.bf16.gmra.mxu2 %v7567_v13 }
 0x2bf   :  { %v2127_v51 = vpop.f32.mrf.mxu3  ;;  %v2302_v55 = vpop.f32.mrf.mxu2 }
 0x2c0   :  { %v2187_v39 = vadd.f32 %v2186_v33, %v2127_v51  ;;  %v2245_v44 = vpop.f32.mrf.mxu1  ;;  %v6379_v29 = vadd.f32 %v2302_v55, %v2244_v26  ;;  %v7574_v26 = vld [vmem:[#allocation28_spill] sm:$0xff]  ;;  %v7575_v33 = vld [vmem:[#allocation29_spill] sm:$0xff] }
 0x2c2   :  { %v2246_v14 = vadd.f32 %v2245_v44, %v2187_v39  ;;  %v2189_v7 = vpop.f32.mrf.mxu0 }
 0x2c4   :  { %2355 = vmatmul.bf16.vlgmr.msrb.gmra.mxu3 %v7568_v12  ;;  %v7577_v12 = vld [vmem:[#allocation31_spill] sm:$0xff] }
 0x2c5   :  { %2414 = vmatmul.bf16.vlgmr.msrb.gmra.mxu0 %v7569_v56 }
 0x2c7   :  { %v2130_v42 = vpop.f32.mrf.mxu3  ;;  %v2304_v24 = vpop.f32.mrf.mxu2 }
 0x2c8   :  { %v2190_v17 = vadd.f32 %v2189_v7, %v2130_v42  ;;  %v2248_v5 = vpop.f32.mrf.mxu1  ;;  %v6383_v35 = vadd.f32 %v2304_v24, %v2246_v14  ;;  %v7576_v7 = vld [vmem:[#allocation30_spill] sm:$0xff] }
 0x2ca   :  { %v2249_v25 = vadd.f32 %v2248_v5, %v2190_v17  ;;  %v2191_v0 = vpop.f32.mrf.mxu0 }
 0x2cb   :  { %2473 = vmatmul.bf16.vlgmr.msrb.gmra.mxu1 %v7570_v52  ;;  %v7578_v52 = vld [vmem:[#allocation32_spill] sm:$0xff] }
 0x2cc   :  { %3799 = vmatmul.msk.bf16.vlgmr.msrb.gmra.mxu2 %vm1608_vm1, %v7571_v21  ;;  %v7579_v21 = vld [vmem:[#allocation33_spill] sm:$0xff] }
 0x2cf   :  { %v2132_v27 = vpop.f32.mrf.mxu3  ;;  %v2307_v63 = vpop.f32.mrf.mxu2 }
 0x2d0   :  { %v2192_v40 = vadd.f32 %v2191_v0, %v2132_v27  ;;  %v2250_v31 = vpop.f32.mrf.mxu1  ;;  %v6388_v6 = vadd.f32 %v2307_v63, %v2249_v25 }
 0x2d2   :  { %v2251_v45 = vadd.f32 %v2250_v31, %v2192_v40  ;;  %v2194_v53 = vpop.f32.mrf.mxu0 }
 0x2d4   :  { %2360 = vmatmul.bf16.gmra.mxu3 %v7572_v41 }
 0x2d5   :  { %2419 = vmatmul.bf16.gmra.mxu0 %v7573_v30  ;;  %v7580_v30 = vld [vmem:[#allocation34_spill] sm:$0xff] }
 0x2d7   :  { %v2135_v60 = vpop.f32.mrf.mxu3  ;;  %v2309_v46 = vpop.f32.mrf.mxu2 }
 0x2d8   :  { %v2195_v15 = vadd.f32 %v2194_v53, %v2135_v60  ;;  %v2253_v11 = vpop.f32.mrf.mxu1  ;;  %v6392_v59 = vadd.f32 %v2309_v46, %v2251_v45  ;;  %v7581_v60 = vld [vmem:[#allocation35_spill] sm:$0xff] }
 0x2da   :  { %v2254_v54 = vadd.f32 %v2253_v11, %v2195_v15  ;;  %v2196_v34 = vpop.f32.mrf.mxu0 }
 0x2db   :  { %2478 = vmatmul.bf16.gmra.mxu1 %v7574_v26 }
 0x2dc   :  { %3800 = vmatmul.msk.bf16.gmra.mxu2 %vm1608_vm1, %v7575_v33 }
 0x2df   :  { %v2137_v22 = vpop.f32.mrf.mxu3  ;;  %v2312_v13 = vpop.f32.mrf.mxu2 }
 0x2e0   :  { %v2197_v51 = vadd.f32 %v2196_v34, %v2137_v22  ;;  %v2255_v55 = vpop.f32.mrf.mxu1  ;;  %v6397_v39 = vadd.f32 %v2312_v13, %v2254_v54  ;;  %v7582_v22 = vld [vmem:[#allocation36_spill] sm:$0xff]  ;;  %v7583_v13 = vld [vmem:[#allocation37_spill] sm:$0xff] }
 0x2e2   :  { %v2256_v44 = vadd.f32 %v2255_v55, %v2197_v51  ;;  %v2199_v14 = vpop.f32.mrf.mxu0 }
 0x2e4   :  { %2365 = vmatmul.bf16.gmra.mxu3 %v7576_v7 }
 0x2e5   :  { %2424 = vmatmul.bf16.gmra.mxu0 %v7577_v12 }
 0x2e7   :  { %v2140_v56 = vpop.f32.mrf.mxu3  ;;  %v2314_v42 = vpop.f32.mrf.mxu2 }
 0x2e8   :  { %v2200_v24 = vadd.f32 %v2199_v14, %v2140_v56  ;;  %v2258_v17 = vpop.f32.mrf.mxu1  ;;  %v6401_v5 = vadd.f32 %v2314_v42, %v2256_v44  ;;  %v7584_v42 = vld [vmem:[#allocation38_spill] sm:$0xff] }
 0x2ea   :  { %v2259_v25 = vadd.f32 %v2258_v17, %v2200_v24  ;;  %v2201_v0 = vpop.f32.mrf.mxu0  ;;  %v7585_v24 = vld [vmem:[#allocation39_spill] sm:$0xff] }
 0x2eb   :  { %2483 = vmatmul.bf16.gmra.mxu1 %v7578_v52 }
 0x2ec   :  { %3801 = vmatmul.msk.bf16.gmra.mxu2 %vm1608_vm1, %v7579_v21 }
 0x2ef   :  { %v2142_v27 = vpop.f32.mrf.mxu3  ;;  %v2317_v63 = vpop.f32.mrf.mxu2 }
 0x2f0   :  { %v2202_v40 = vadd.f32 %v2201_v0, %v2142_v27  ;;  %v2260_v31 = vpop.f32.mrf.mxu1  ;;  %v6406_v45 = vadd.f32 %v2317_v63, %v2259_v25 }
 0x2f2   :  { %v2261_v53 = vadd.f32 %v2260_v31, %v2202_v40  ;;  %v2204_v41 = vpop.f32.mrf.mxu0  ;;  %v7586_v40 = vld [vmem:[#allocation40_spill] sm:$0xff]  ;;  %v7587_v31 = vld [vmem:[#allocation41_spill] sm:$0xff] }
 0x2f4   :  { %2370 = vmatmul.bf16.gmra.mxu3 %v7580_v30 }
 0x2f5   :  { %2429 = vmatmul.bf16.gmra.mxu0 %v7581_v60 }
 0x2f7   :  { %v2145_v46 = vpop.f32.mrf.mxu3  ;;  %v2319_v15 = vpop.f32.mrf.mxu2 }
 0x2f8   :  { %v2205_v11 = vadd.f32 %v2204_v41, %v2145_v46  ;;  %v2263_v54 = vpop.f32.mrf.mxu1  ;;  %v6410_v34 = vadd.f32 %v2319_v15, %v2261_v53 }
 0x2fa   :  { %v2264_v26 = vadd.f32 %v2263_v54, %v2205_v11  ;;  %v2206_v33 = vpop.f32.mrf.mxu0  ;;  %v7588_v54 = vld [vmem:[#allocation42_spill] sm:$0xff] }
 0x2fb   :  { %2488 = vmatmul.bf16.gmra.mxu1 %v7582_v22 }
 0x2fc   :  { %3802 = vmatmul.msk.bf16.gmra.mxu2 %vm1608_vm1, %v7583_v13 }
 0x2ff   :  { %v2147_v51 = vpop.f32.mrf.mxu3  ;;  %v2322_v55 = vpop.f32.mrf.mxu2 }
 0x300   :  { %v2207_v44 = vadd.f32 %v2206_v33, %v2147_v51  ;;  %v2265_v14 = vpop.f32.mrf.mxu1  ;;  %v6415_v7 = vadd.f32 %v2322_v55, %v2264_v26  ;;  %v7589_v26 = vld [vmem:[#allocation43_spill] sm:$0xff] }
 0x302   :  { %v2266_v12 = vadd.f32 %v2265_v14, %v2207_v44  ;;  %v2209_v56 = vpop.f32.mrf.mxu0 }
 0x304   :  { %2375 = vmatmul.bf16.gmra.mxu3 %v7584_v42 }
 0x305   :  { %2434 = vmatmul.bf16.gmra.mxu0 %v7585_v24 }
 0x307   :  { %v2150_v17 = vpop.f32.mrf.mxu3  ;;  %v2324_v25 = vpop.f32.mrf.mxu2 }
 0x308   :  { %v2210_v0 = vadd.f32 %v2209_v56, %v2150_v17  ;;  %v2268_v52 = vpop.f32.mrf.mxu1  ;;  %v6419_v21 = vadd.f32 %v2324_v25, %v2266_v12  ;;  %v7590_v12 = vld [vmem:[#allocation44_spill] sm:$0xff]  ;;  %v7591_v56 = vld [vmem:[#allocation45_spill] sm:$0xff] }
 0x30a   :  { %v2269_v27 = vadd.f32 %v2268_v52, %v2210_v0  ;;  %v2211_v63 = vpop.f32.mrf.mxu0 }
 0x30b   :  { %2493 = vmatmul.bf16.gmra.mxu1 %v7586_v40  ;;  %v7593_v40 = vld [vmem:[#allocation47_spill] sm:$0xff] }
 0x30c   :  { %3803 = vmatmul.msk.bf16.gmra.mxu2 %vm1608_vm1, %v7587_v31 }
 0x30f   :  { %v2152_v53 = vpop.f32.mrf.mxu3  ;;  %v2327_v41 = vpop.f32.mrf.mxu2 }
 0x310   :  { %v2212_v30 = vadd.f32 %v2211_v63, %v2152_v53  ;;  %v2270_v60 = vpop.f32.mrf.mxu1  ;;  %v6424_v46 = vadd.f32 %v2327_v41, %v2269_v27  ;;  %v7592_v63 = vld [vmem:[#allocation46_spill] sm:$0xff] }
 0x312   :  { %v2271_v15 = vadd.f32 %v2270_v60, %v2212_v30  ;;  %v2214_v11 = vpop.f32.mrf.mxu0 }
 0x314   :  { %2380 = vmatmul.bf16.gmra.mxu3 %v7588_v54  ;;  %v7594_v54 = vld [vmem:[#allocation49_spill] sm:$0xff] }
 0x315   :  { %2439 = vmatmul.bf16.gmra.mxu0 %v7589_v26  ;;  %v7595_v26 = vld [vmem:[#allocation50_spill] sm:$0xff] }
 0x317   :  { %v2155_v33 = vpop.f32.mrf.mxu3  ;;  %v2329_v22 = vpop.f32.mrf.mxu2 }
 0x318   :  { %v2215_v13 = vadd.f32 %v2214_v11, %v2155_v33  ;;  %v2273_v51 = vpop.f32.mrf.mxu1  ;;  %v6428_v55 = vadd.f32 %v2329_v22, %v2271_v15 }
 0x31a   :  { %v2274_v44 = vadd.f32 %v2273_v51, %v2215_v13  ;;  %v2216_v14 = vpop.f32.mrf.mxu0 }
 0x31b   :  { %2498 = vmatmul.bf16.gmra.mxu1 %v7590_v12 }
 0x31c   :  { %3804 = vmatmul.msk.bf16.gmra.mxu2 %vm1608_vm1, %v7591_v56  ;;  %v7596_v56 = vld [vmem:[#allocation52_spill] sm:$0xff] }
 0x31f   :  { %v2157_v42 = vpop.f32.mrf.mxu3  ;;  %v2332_v24 = vpop.f32.mrf.mxu2 }
 0x320   :  { %v2217_v17 = vadd.f32 %v2216_v14, %v2157_v42  ;;  %v2275_v25 = vpop.f32.mrf.mxu1  ;;  %v6433_v0 = vadd.f32 %v2332_v24, %v2274_v44  ;;  %v7597_v42 = vld [vmem:[#allocation53_spill] sm:$0xff] }
 0x322   :  { %v2276_v52 = vadd.f32 %v2275_v25, %v2217_v17  ;;  %v2219_v27 = vpop.f32.mrf.mxu0 }
 0x324   :  { %2385 = vmatmul.bf16.gmra.mxu3 %v7592_v63 }
 0x325   :  { %2444 = vmatmul.bf16.gmra.mxu0 %v7593_v40 }
 0x327   :  { %v2160_v31 = vpop.f32.mrf.mxu3  ;;  %v2334_v53 = vpop.f32.mrf.mxu2 }
 0x328   :  { %v2220_v41 = vadd.f32 %v2219_v27, %v2160_v31  ;;  %v2278_v30 = vpop.f32.mrf.mxu1  ;;  %v6437_v60 = vadd.f32 %v2334_v53, %v2276_v52  ;;  %v7598_v31 = vld [vmem:[#allocation55_spill] sm:$0xff]  ;;  %v7599_v53 = vld [vmem:[#allocation56_spill] sm:$0xff] }
 0x32a   :  { %v2279_v15 = vadd.f32 %v2278_v30, %v2220_v41  ;;  %v2221_v11 = vpop.f32.mrf.mxu0 }
 0x32b   :  { %2503 = vmatmul.bf16.gmra.mxu1 %v7594_v54 }
 0x32c   :  { %3805 = vmatmul.msk.bf16.gmra.mxu2 %vm1608_vm1, %v7595_v26 }
 0x32f   :  { %v2162_v33 = vpop.f32.mrf.mxu3  ;;  %v2337_v22 = vpop.f32.mrf.mxu2 }
 0x330   :  { %v2222_v13 = vadd.f32 %v2221_v11, %v2162_v33  ;;  %v2280_v51 = vpop.f32.mrf.mxu1  ;;  %v6442_v44 = vadd.f32 %v2337_v22, %v2279_v15  ;;  %v7600_v22 = vld [vmem:[#allocation57_spill] sm:$0xff] }
 0x332   :  { %v2281_v14 = vadd.f32 %v2280_v51, %v2222_v13  ;;  %v2224_v12 = vpop.f32.mrf.mxu0  ;;  %v7601_v13 = vld [vmem:[#allocation58_spill] sm:$0xff] }
 0x334   :  { %2390 = vmatmul.bf16.gmra.mxu3 %v7596_v56 }
 0x335   :  { %2449 = vmatmul.bf16.gmra.mxu0 %v7597_v42 }
 0x337   :  { %v2165_v24 = vpop.f32.mrf.mxu3  ;;  %v2339_v17 = vpop.f32.mrf.mxu2 }
 0x338   :  { %v2225_v25 = vadd.f32 %v2224_v12, %v2165_v24  ;;  %v2283_v52 = vpop.f32.mrf.mxu1  ;;  %v6446_v27 = vadd.f32 %v2339_v17, %v2281_v14 }
 0x33a   :  { %v2284_v63 = vadd.f32 %v2283_v52, %v2225_v25  ;;  %v2226_v40 = vpop.f32.mrf.mxu0  ;;  %v7602_v25 = vld [vmem:[#allocation59_spill] sm:$0xff] }
 0x33b   :  { %2508 = vmatmul.bf16.gmra.mxu1 %v7598_v31 }
 0x33c   :  { %3806 = vmatmul.msk.bf16.gmra.mxu2 %vm1608_vm1, %v7599_v53 }
 0x33f   :  { %v2167_v41 = vpop.f32.mrf.mxu3  ;;  %v2342_v30 = vpop.f32.mrf.mxu2 }
 0x340   :  { %v2227_v15 = vadd.f32 %v2226_v40, %v2167_v41  ;;  %v2285_v11 = vpop.f32.mrf.mxu1  ;;  %v6451_v54 = vadd.f32 %v2342_v30, %v2284_v63  ;;  %v7603_v63 = vld [vmem:[#allocation60_spill] sm:$0xff] }
 0x342   :  { %v2286_v26 = vadd.f32 %v2285_v11, %v2227_v15  ;;  %v2415_v33 = vpop.f32.mrf.mxu0 }
 0x344   :  { %2395 = vmatmul.bf16.gmra.mxu3 %v7600_v22  ;;  %v2664_v22 = vmul.f32 %v6098_v3, %v6098_v3 }
 0x345   :  { %2454 = vmatmul.bf16.gmra.mxu0 %v7601_v13 }
 0x347   :  { %v2356_v51 = vpop.f32.mrf.mxu3  ;;  %v2344_v14 = vpop.f32.mrf.mxu2 }
 0x348   :  { %v2357_v12 = vadd.f32 %v2356_v51, %v6371_v8  ;;  %v2474_v56 = vpop.f32.mrf.mxu1  ;;  %v6456_v42 = vadd.f32 %v2344_v14, %v2286_v26 }
 0x34a   :  { %v2416_v24 = vadd.f32 %v2415_v33, %v2357_v12  ;;  %v2417_v17 = vpop.f32.mrf.mxu0 }
 0x34b   :  { %2513 = vmatmul.bf16.gmra.mxu1 %v7602_v25 }
 0x34c   :  { %v2475_v52 = vadd.f32 %v2474_v56, %v2416_v24  ;;  %3807 = vmatmul.msk.bf16.gmra.mxu2 %vm1608_vm1, %v7603_v63 }
 0x34f   :  { %v2358_v40 = vpop.f32.mrf.mxu3  ;;  %v2533_v31 = vpop.f32.mrf.mxu2 }
 0x350   :  { %v2359_v53 = vadd.f32 %v2358_v40, %v6375_v62  ;;  %v2476_v41 = vpop.f32.mrf.mxu1  ;;  %v6462_v30 = vadd.f32 %v2533_v31, %v2475_v52 }
 0x352   :  { %7604 = vst [vmem:[#allocation8_spill] sm:$0xff] %v6462_v30  ;;  %v2418_v8 = vadd.f32 %v2417_v17, %v2359_v53  ;;  %v2420_v15 = vpop.f32.mrf.mxu0  ;;  %v2584_v11 = vsel %vm2583_vm2, %v6462_v30, 0.0  ;;  %v2665_v26 = vmul.f32 %v6462_v30, %v6462_v30 }
 0x353   :  { %v2585_v33 = vadd.f32 %v2584_v11, %v6098_v3 }
 0x354   :  { %2400 = vmatmul.bf16.gmra.mxu3 %v6106_v61  ;;  %v2477_v62 = vadd.f32 %v2476_v41, %v2418_v8  ;;  %v2704_v13 = vsel %vm2583_vm2, %v2665_v26, 0.0  ;;  %v2666_v26 = vmul.f32 %v6129_v2, %v6129_v2 }
 0x355   :  { %2459 = vmatmul.bf16.gmra.mxu0 %v6114_v4  ;;  %2586 = vadd.xlane.f32.xlu0 %v2585_v33  ;;  %v2705_v51 = vadd.f32 %v2704_v13, %v2664_v22 }
 0x357   :  { %v2361_v14 = vpop.f32.mrf.mxu3  ;;  %v2535_v12 = vpop.f32.mrf.mxu2  ;;  %2706 = vadd.xlane.f32.xlu2 %v2705_v51 }
 0x358   :  { %v2362_v56 = vadd.f32 %v2361_v14, %v6379_v29  ;;  %v2479_v24 = vpop.f32.mrf.mxu1  ;;  %v6475_v17 = vadd.f32 %v2535_v12, %v2477_v62 }
 0x35a   :  { %7605 = vst [vmem:[#allocation9_spill] sm:$0xff] %v6475_v17  ;;  %v2421_v25 = vadd.f32 %v2420_v15, %v2362_v56  ;;  %v2422_v61 = vpop.f32.mrf.mxu0  ;;  %v2588_v52 = vsel %vm2583_vm2, %v6475_v17, 0.0  ;;  %v2667_v40 = vmul.f32 %v6475_v17, %v6475_v17 }
 0x35b   :  { %2518 = vmatmul.bf16.gmra.mxu1 %v6131_v32  ;;  %v2589_v4 = vadd.f32 %v2588_v52, %v6129_v2  ;;  %v2668_v52 = vmul.f32 %v6145_v36, %v6145_v36 }
 0x35c   :  { %v2480_v63 = vadd.f32 %v2479_v24, %v2421_v25  ;;  %3808 = vmatmul.msk.bf16.gmra.mxu2 %vm1608_vm1, %v6134_v28  ;;  %v2708_v32 = vsel %vm2583_vm2, %v2667_v40, 0.0  ;;  %v2670_v40 = vmul.f32 %v6162_v10, %v6162_v10 }
 0x35d   :  { %2590 = vadd.xlane.f32.xlu0 %v2589_v4  ;;  %v2709_v22 = vadd.f32 %v2708_v32, %v2666_v26 }
 0x35f   :  { %v2363_v29 = vpop.f32.mrf.mxu3  ;;  %v2538_v31 = vpop.f32.mrf.mxu2 }
 0x360   :  { %v2364_v53 = vadd.f32 %v2363_v29, %v6383_v35  ;;  %v2481_v41 = vpop.f32.mrf.mxu1  ;;  %v6486_v8 = vadd.f32 %v2538_v31, %v2480_v63 }
 0x362   :  { %7606 = vst [vmem:[#allocation54_spill] sm:$0xff] %v6486_v8  ;;  %v2423_v15 = vadd.f32 %v2422_v61, %v2364_v53  ;;  %v2425_v11 = vpop.f32.mrf.mxu0  ;;  %v2592_v28 = vsel %vm2583_vm2, %v6486_v8, 0.0  ;;  %v2669_v35 = vmul.f32 %v6486_v8, %v6486_v8 }
 0x363   :  { %v2593_v33 = vadd.f32 %v2592_v28, %v6145_v36 }
 0x364   :  { %v2482_v62 = vadd.f32 %v2481_v41, %v2423_v15  ;;  %v2712_v24 = vsel %vm2583_vm2, %v2669_v35, 0.0 }
 0x365   :  { %2594 = vadd.xlane.f32.xlu1 %v2593_v33  ;;  %2710 = vadd.xlane.f32.xlu0 %v2709_v22  ;;  %v2713_v63 = vadd.f32 %v2712_v24, %v2668_v52 }
 0x367   :  { %v2366_v13 = vpop.f32.mrf.mxu3  ;;  %v2540_v51 = vpop.f32.mrf.mxu2 }
 0x368   :  { %v2367_v14 = vadd.f32 %v2366_v13, %v6388_v6  ;;  %v2484_v12 = vpop.f32.mrf.mxu1  ;;  %v6497_v56 = vadd.f32 %v2540_v51, %v2482_v62  ;;  %v2672_v13 = vmul.f32 %v6173_v47, %v6173_v47 }
 0x36a   :  { %7607 = vst [vmem:[#allocation10_spill] sm:$0xff] %v6497_v56  ;;  %v2426_v25 = vadd.f32 %v2425_v11, %v2367_v14  ;;  %v2427_v61 = vpop.f32.mrf.mxu0  ;;  %v2671_v4 = vmul.f32 %v6497_v56, %v6497_v56  ;;  %v2596_v26 = vsel %vm2583_vm2, %v6497_v56, 0.0 }
 0x36b   :  { %v2597_v35 = vadd.f32 %v2596_v26, %v6162_v10 }
 0x36c   :  { %v2485_v29 = vadd.f32 %v2484_v12, %v2426_v25  ;;  %v2716_v6 = vsel %vm2583_vm2, %v2671_v4, 0.0 }
 0x36d   :  { %2714 = vadd.xlane.f32.xlu1 %v2713_v63  ;;  %v2717_v31 = vadd.f32 %v2716_v6, %v2670_v40 }
 0x36f   :  { %v2368_v53 = vpop.f32.mrf.mxu3  ;;  %v2543_v41 = vpop.f32.mrf.mxu2  ;;  %2718 = vadd.xlane.f32.xlu2 %v2717_v31  ;;  %v2674_v31 = vmul.f32 %v6190_v37, %v6190_v37 }
 0x370   :  { %v2369_v32 = vadd.f32 %v2368_v53, %v6392_v59  ;;  %v2486_v15 = vpop.f32.mrf.mxu1  ;;  %v6508_v11 = vadd.f32 %v2543_v41, %v2485_v29 }
 0x372   :  { %7608 = vst [vmem:[#allocation11_spill] sm:$0xff] %v6508_v11  ;;  %v2428_v28 = vadd.f32 %v2427_v61, %v2369_v32  ;;  %v2430_v33 = vpop.f32.mrf.mxu0  ;;  %v2600_v22 = vsel %vm2583_vm2, %v6508_v11, 0.0  ;;  %v2673_v62 = vmul.f32 %v6508_v11, %v6508_v11 }
 0x373   :  { %v2601_v14 = vadd.f32 %v2600_v22, %v6173_v47 }
 0x374   :  { %v2487_v59 = vadd.f32 %v2486_v15, %v2428_v28  ;;  %v2720_v51 = vsel %vm2583_vm2, %v2673_v62, 0.0 }
 0x375   :  { %2598 = vadd.xlane.f32.xlu1 %v2597_v35  ;;  %v2721_v12 = vadd.f32 %v2720_v51, %v2672_v13 }
 0x377   :  { %v2371_v24 = vpop.f32.mrf.mxu3  ;;  %v2545_v25 = vpop.f32.mrf.mxu2  ;;  %2602 = vadd.xlane.f32.xlu2 %v2601_v14  ;;  %2722 = vadd.xlane.f32.xlu0 %v2721_v12  ;;  %v2676_v14 = vmul.f32 %v6201_v16, %v6201_v16 }
 0x378   :  { %v2372_v61 = vadd.f32 %v2371_v24, %v6397_v39  ;;  %v2489_v52 = vpop.f32.mrf.mxu1  ;;  %v6522_v4 = vadd.f32 %v2545_v25, %v2487_v59 }
 0x37a   :  { %7609 = vst [vmem:[#allocation12_spill] sm:$0xff] %v6522_v4  ;;  %v2431_v63 = vadd.f32 %v2430_v33, %v2372_v61  ;;  %v2432_v40 = vpop.f32.mrf.mxu0  ;;  %v2675_v29 = vmul.f32 %v6522_v4, %v6522_v4  ;;  %v2604_v6 = vsel %vm2583_vm2, %v6522_v4, 0.0 }
 0x37b   :  { %v2605_v39 = vadd.f32 %v2604_v6, %v6190_v37 }
 0x37c   :  { %v2490_v53 = vadd.f32 %v2489_v52, %v2431_v63  ;;  %v2724_v41 = vsel %vm2583_vm2, %v2675_v29, 0.0 }
 0x37d   :  { %v2725_v32 = vadd.f32 %v2724_v41, %v2674_v31 }
 0x37f   :  { %v2373_v15 = vpop.f32.mrf.mxu3  ;;  %v2548_v26 = vpop.f32.mrf.mxu2  ;;  %2726 = vadd.xlane.f32.xlu1 %v2725_v32  ;;  %2606 = vadd.xlane.f32.xlu2 %v2605_v39  ;;  %v2678_v32 = vmul.f32 %v6212_v19, %v6212_v19 }
 0x380   :  { %v2374_v28 = vadd.f32 %v2373_v15, %v6401_v5  ;;  %v2491_v33 = vpop.f32.mrf.mxu1  ;;  %v6533_v22 = vadd.f32 %v2548_v26, %v2490_v53 }
 0x382   :  { %7610 = vst [vmem:[#allocation13_spill] sm:$0xff] %v6533_v22  ;;  %v2433_v62 = vadd.f32 %v2432_v40, %v2374_v28  ;;  %v2435_v35 = vpop.f32.mrf.mxu0  ;;  %v2608_v13 = vsel %vm2583_vm2, %v6533_v22, 0.0  ;;  %v2677_v59 = vmul.f32 %v6533_v22, %v6533_v22 }
 0x383   :  { %v2609_v51 = vadd.f32 %v2608_v13, %v6201_v16 }
 0x384   :  { %v2492_v12 = vadd.f32 %v2491_v33, %v2433_v62  ;;  %v2728_v24 = vsel %vm2583_vm2, %v2677_v59, 0.0 }
 0x385   :  { %2610 = vadd.xlane.f32.xlu0 %v2609_v51  ;;  %v2729_v5 = vadd.f32 %v2728_v24, %v2676_v14  ;;  %v2680_v24 = vmul.f32 %v6229_v9, %v6229_v9 }
 0x387   :  { %v2376_v25 = vpop.f32.mrf.mxu3  ;;  %v2550_v61 = vpop.f32.mrf.mxu2  ;;  %2730 = vadd.xlane.f32.xlu2 %v2729_v5 }
 0x388   :  { %v2377_v52 = vadd.f32 %v2376_v25, %v6406_v45  ;;  %v2494_v63 = vpop.f32.mrf.mxu1  ;;  %v6544_v40 = vadd.f32 %v2550_v61, %v2492_v12 }
 0x38a   :  { %7611 = vst [vmem:[#allocation14_spill] sm:$0xff] %v6544_v40  ;;  %v2436_v29 = vadd.f32 %v2435_v35, %v2377_v52  ;;  %v2437_v6 = vpop.f32.mrf.mxu0  ;;  %v2612_v31 = vsel %vm2583_vm2, %v6544_v40, 0.0  ;;  %v2679_v53 = vmul.f32 %v6544_v40, %v6544_v40 }
 0x38b   :  { %v2613_v41 = vadd.f32 %v2612_v31, %v6212_v19 }
 0x38c   :  { %v2495_v39 = vadd.f32 %v2494_v63, %v2436_v29  ;;  %v2732_v15 = vsel %vm2583_vm2, %v2679_v53, 0.0 }
 0x38d   :  { %2614 = vadd.xlane.f32.xlu1 %v2613_v41  ;;  %v2733_v45 = vadd.f32 %v2732_v15, %v2678_v32  ;;  %v2682_v15 = vmul.f32 %v6240_v49, %v6240_v49 }
 0x38f   :  { %v2378_v26 = vpop.f32.mrf.mxu3  ;;  %v2553_v28 = vpop.f32.mrf.mxu2  ;;  %2734 = vadd.xlane.f32.xlu0 %v2733_v45 }
 0x390   :  { %v2379_v33 = vadd.f32 %v2378_v26, %v6410_v34  ;;  %v2496_v62 = vpop.f32.mrf.mxu1  ;;  %v6555_v35 = vadd.f32 %v2553_v28, %v2495_v39 }
 0x392   :  { %7612 = vst [vmem:[#allocation15_spill] sm:$0xff] %v6555_v35  ;;  %v2438_v13 = vadd.f32 %v2437_v6, %v2379_v33  ;;  %v2440_v59 = vpop.f32.mrf.mxu0  ;;  %v2616_v51 = vsel %vm2583_vm2, %v6555_v35, 0.0  ;;  %v2681_v14 = vmul.f32 %v6555_v35, %v6555_v35 }
 0x393   :  { %v2617_v12 = vadd.f32 %v2616_v51, %v6229_v9 }
 0x394   :  { %v2497_v5 = vadd.f32 %v2496_v62, %v2438_v13  ;;  %v2736_v25 = vsel %vm2583_vm2, %v2681_v14, 0.0 }
 0x395   :  { %2618 = vadd.xlane.f32.xlu2 %v2617_v12  ;;  %v2737_v34 = vadd.f32 %v2736_v25, %v2680_v24  ;;  %v2684_v25 = vmul.f32 %v6257_v23, %v6257_v23 }
 0x397   :  { %v2381_v61 = vpop.f32.mrf.mxu3  ;;  %v2555_v52 = vpop.f32.mrf.mxu2  ;;  %2738 = vadd.xlane.f32.xlu1 %v2737_v34 }
 0x398   :  { %v2382_v63 = vadd.f32 %v2381_v61, %v6415_v7  ;;  %v2499_v29 = vpop.f32.mrf.mxu1  ;;  %v6566_v6 = vadd.f32 %v2555_v52, %v2497_v5 }
 0x39a   :  { %7613 = vst [vmem:[#allocation16_spill] sm:$0xff] %v6566_v6  ;;  %v2441_v31 = vadd.f32 %v2440_v59, %v2382_v63  ;;  %v2442_v53 = vpop.f32.mrf.mxu0  ;;  %v2620_v41 = vsel %vm2583_vm2, %v6566_v6, 0.0  ;;  %v2683_v32 = vmul.f32 %v6566_v6, %v6566_v6 }
 0x39b   :  { %v2621_v39 = vadd.f32 %v2620_v41, %v6240_v49 }
 0x39c   :  { %v2500_v45 = vadd.f32 %v2499_v29, %v2441_v31  ;;  %v2740_v26 = vsel %vm2583_vm2, %v2683_v32, 0.0 }
 0x39d   :  { %2622 = vadd.xlane.f32.xlu0 %v2621_v39  ;;  %v2741_v7 = vadd.f32 %v2740_v26, %v2682_v15  ;;  %v2686_v26 = vmul.f32 %v6268_v38, %v6268_v38 }
 0x39f   :  { %v2383_v28 = vpop.f32.mrf.mxu3  ;;  %v2558_v33 = vpop.f32.mrf.mxu2  ;;  %2742 = vadd.xlane.f32.xlu2 %v2741_v7 }
 0x3a0   :  { %v2384_v62 = vadd.f32 %v2383_v28, %v6419_v21  ;;  %v2501_v13 = vpop.f32.mrf.mxu1  ;;  %v6577_v59 = vadd.f32 %v2558_v33, %v2500_v45 }
 0x3a2   :  { %7614 = vst [vmem:[#allocation17_spill] sm:$0xff] %v6577_v59  ;;  %v2443_v51 = vadd.f32 %v2442_v53, %v2384_v62  ;;  %v2445_v14 = vpop.f32.mrf.mxu0  ;;  %v2624_v12 = vsel %vm2583_vm2, %v6577_v59, 0.0  ;;  %v2685_v24 = vmul.f32 %v6577_v59, %v6577_v59 }
 0x3a3   :  { %v2625_v5 = vadd.f32 %v2624_v12, %v6257_v23 }
 0x3a4   :  { %v2502_v34 = vadd.f32 %v2501_v13, %v2443_v51  ;;  %v2744_v61 = vsel %vm2583_vm2, %v2685_v24, 0.0 }
 0x3a5   :  { %2626 = vadd.xlane.f32.xlu1 %v2625_v5  ;;  %v2745_v21 = vadd.f32 %v2744_v61, %v2684_v25  ;;  %v2688_v61 = vmul.f32 %v6279_v58, %v6279_v58 }
 0x3a7   :  { %v2386_v52 = vpop.f32.mrf.mxu3  ;;  %v2560_v63 = vpop.f32.mrf.mxu2  ;;  %2746 = vadd.xlane.f32.xlu0 %v2745_v21 }
 0x3a8   :  { %v2387_v29 = vadd.f32 %v2386_v52, %v6424_v46  ;;  %v2504_v31 = vpop.f32.mrf.mxu1  ;;  %v6588_v53 = vadd.f32 %v2560_v63, %v2502_v34 }
 0x3aa   :  { %7615 = vst [vmem:[#allocation18_spill] sm:$0xff] %v6588_v53  ;;  %v2446_v41 = vadd.f32 %v2445_v14, %v2387_v29  ;;  %v2447_v32 = vpop.f32.mrf.mxu0  ;;  %v2628_v39 = vsel %vm2583_vm2, %v6588_v53, 0.0  ;;  %v2687_v15 = vmul.f32 %v6588_v53, %v6588_v53 }
 0x3ab   :  { %v2629_v45 = vadd.f32 %v2628_v39, %v6268_v38 }
 0x3ac   :  { %v2505_v7 = vadd.f32 %v2504_v31, %v2446_v41  ;;  %v2748_v28 = vsel %vm2583_vm2, %v2687_v15, 0.0 }
 0x3ad   :  { %2630 = vadd.xlane.f32.xlu2 %v2629_v45  ;;  %v2749_v46 = vadd.f32 %v2748_v28, %v2686_v26  ;;  %v2690_v28 = vmul.f32 %v6296_v43, %v6296_v43 }
 0x3af   :  { %v2388_v33 = vpop.f32.mrf.mxu3  ;;  %v2563_v62 = vpop.f32.mrf.mxu2  ;;  %2750 = vadd.xlane.f32.xlu1 %v2749_v46 }
 0x3b0   :  { %v2389_v13 = vadd.f32 %v2388_v33, %v6428_v55  ;;  %v2506_v51 = vpop.f32.mrf.mxu1  ;;  %v6599_v14 = vadd.f32 %v2563_v62, %v2505_v7 }
 0x3b2   :  { %7616 = vst [vmem:[#allocation19_spill] sm:$0xff] %v6599_v14  ;;  %v2448_v12 = vadd.f32 %v2447_v32, %v2389_v13  ;;  %v2450_v24 = vpop.f32.mrf.mxu0  ;;  %v2632_v5 = vsel %vm2583_vm2, %v6599_v14, 0.0  ;;  %v2689_v25 = vmul.f32 %v6599_v14, %v6599_v14 }
 0x3b3   :  { %v2633_v34 = vadd.f32 %v2632_v5, %v6279_v58 }
 0x3b4   :  { %v2507_v21 = vadd.f32 %v2506_v51, %v2448_v12  ;;  %v2752_v52 = vsel %vm2583_vm2, %v2689_v25, 0.0 }
 0x3b5   :  { %2634 = vadd.xlane.f32.xlu0 %v2633_v34  ;;  %v2753_v55 = vadd.f32 %v2752_v52, %v2688_v61  ;;  %v2692_v52 = vmul.f32 %v6307_v57, %v6307_v57 }
 0x3b7   :  { %v2391_v63 = vpop.f32.mrf.mxu3  ;;  %v2565_v29 = vpop.f32.mrf.mxu2  ;;  %2754 = vadd.xlane.f32.xlu2 %v2753_v55 }
 0x3b8   :  { %v2392_v31 = vadd.f32 %v2391_v63, %v6433_v0  ;;  %v2509_v41 = vpop.f32.mrf.mxu1  ;;  %v6610_v32 = vadd.f32 %v2565_v29, %v2507_v21 }
 0x3ba   :  { %7617 = vst [vmem:[#allocation20_spill] sm:$0xff] %v6610_v32  ;;  %v2451_v39 = vadd.f32 %v2450_v24, %v2392_v31  ;;  %v2452_v15 = vpop.f32.mrf.mxu0  ;;  %v2636_v45 = vsel %vm2583_vm2, %v6610_v32, 0.0  ;;  %v2691_v26 = vmul.f32 %v6610_v32, %v6610_v32 }
 0x3bb   :  { %v2637_v7 = vadd.f32 %v2636_v45, %v6296_v43 }
 0x3bc   :  { %v2510_v46 = vadd.f32 %v2509_v41, %v2451_v39  ;;  %v2756_v33 = vsel %vm2583_vm2, %v2691_v26, 0.0 }
 0x3bd   :  { %2638 = vadd.xlane.f32.xlu1 %v2637_v7  ;;  %v2757_v0 = vadd.f32 %v2756_v33, %v2690_v28 }
 0x3bf   :  { %v2393_v62 = vpop.f32.mrf.mxu3  ;;  %v2568_v13 = vpop.f32.mrf.mxu2  ;;  %2758 = vadd.xlane.f32.xlu0 %v2757_v0 }
 0x3c0   :  { %v2394_v51 = vadd.f32 %v2393_v62, %v6437_v60  ;;  %v2511_v12 = vpop.f32.mrf.mxu1  ;;  %v6621_v24 = vadd.f32 %v2568_v13, %v2510_v46  ;;  %v2694_v46 = vmul.f32 %v6324_v18, %v6324_v18 }
 0x3c2   :  { %7618 = vst [vmem:[#allocation21_spill] sm:$0xff] %v6621_v24  ;;  %v2453_v5 = vadd.f32 %v2452_v15, %v2394_v51  ;;  %v2455_v25 = vpop.f32.mrf.mxu0  ;;  %v2640_v34 = vsel %vm2583_vm2, %v6621_v24, 0.0  ;;  %v2693_v61 = vmul.f32 %v6621_v24, %v6621_v24 }
 0x3c3   :  { %v2641_v21 = vadd.f32 %v2640_v34, %v6307_v57 }
 0x3c4   :  { %v2512_v55 = vadd.f32 %v2511_v12, %v2453_v5  ;;  %v2760_v63 = vsel %vm2583_vm2, %v2693_v61, 0.0 }
 0x3c5   :  { %2642 = vadd.xlane.f32.xlu2 %v2641_v21  ;;  %v2761_v60 = vadd.f32 %v2760_v63, %v2692_v52 }
 0x3c7   :  { %v2396_v29 = vpop.f32.mrf.mxu3  ;;  %v2570_v31 = vpop.f32.mrf.mxu2  ;;  %2762 = vadd.xlane.f32.xlu1 %v2761_v60 }
 0x3c8   :  { %v2397_v41 = vadd.f32 %v2396_v29, %v6442_v44  ;;  %v2514_v39 = vpop.f32.mrf.mxu1  ;;  %v6632_v15 = vadd.f32 %v2570_v31, %v2512_v55  ;;  %v2696_v55 = vmul.f32 %v6335_v20, %v6335_v20 }
 0x3ca   :  { %7619 = vst [vmem:[#allocation22_spill] sm:$0xff] %v6632_v15  ;;  %v2456_v45 = vadd.f32 %v2455_v25, %v2397_v41  ;;  %v2644_v26 = vsel %vm2583_vm2, %v6632_v15, 0.0  ;;  %v2695_v7 = vmul.f32 %v6632_v15, %v6632_v15  ;;  %v2457_v0 = vpop.f32.mrf.mxu0 }
 0x3cb   :  { %v2645_v28 = vadd.f32 %v2644_v26, %v6324_v18 }
 0x3cc   :  { %v2515_v33 = vadd.f32 %v2514_v39, %v2456_v45  ;;  %v2764_v62 = vsel %vm2583_vm2, %v2695_v7, 0.0 }
 0x3cd   :  { %2646 = vadd.xlane.f32.xlu0 %v2645_v28  ;;  %v2765_v44 = vadd.f32 %v2764_v62, %v2694_v46  ;;  %v6656_v46 = vpop.xlane.xlu2 %2706 }
 0x3cf   :  { %v2398_v13 = vpop.f32.mrf.mxu3  ;;  %v2573_v51 = vpop.f32.mrf.mxu2  ;;  %2766 = vadd.xlane.f32.xlu2 %v2765_v44  ;;  %v2698_v44 = vmul.f32 %v6346_v1, %v6346_v1 }
 0x3d0   :  { %v2399_v12 = vadd.f32 %v2398_v13, %v6446_v27  ;;  %v2516_v5 = vpop.f32.mrf.mxu1  ;;  %v6643_v25 = vadd.f32 %v2573_v51, %v2515_v33 }
 0x3d2   :  { %7620 = vst [vmem:[#allocation23_spill] sm:$0xff] %v6643_v25  ;;  %v2458_v34 = vadd.f32 %v2457_v0, %v2399_v12  ;;  %v2648_v61 = vsel %vm2583_vm2, %v6643_v25, 0.0  ;;  %v2697_v21 = vmul.f32 %v6643_v25, %v6643_v25  ;;  %v2460_v29 = vpop.f32.mrf.mxu0 }
 0x3d3   :  { %v2649_v52 = vadd.f32 %v2648_v61, %v6335_v20 }
 0x3d4   :  { %v2517_v63 = vadd.f32 %v2516_v5, %v2458_v34  ;;  %v2768_v60 = vsel %vm2583_vm2, %v2697_v21, 0.0  ;;  %v6668_v5 = vpop.xlane.xlu0 %2586 }
 0x3d5   :  { %2650 = vadd.xlane.f32.xlu1 %v2649_v52  ;;  %v2769_v27 = vadd.f32 %v2768_v60, %v2696_v55 }
 0x3d7   :  { %v2401_v31 = vpop.f32.mrf.mxu3  ;;  %v2575_v41 = vpop.f32.mrf.mxu2  ;;  %2770 = vadd.xlane.f32.xlu0 %v2769_v27 }
 0x3d8   :  { %v2402_v39 = vadd.f32 %v2401_v31, %v6451_v54  ;;  %v6654_v45 = vadd.f32 %v2575_v41, %v2517_v63  ;;  %v2595_v26 = vpop.xlane.xlu1 %2594  ;;  %v2519_v28 = vpop.f32.mrf.mxu1 }
 0x3d9   :  { %v6666_v51 = vmul.f32 0.0051020407, %v2595_v26 }
 0x3da   :  { %7621 = vst [vmem:[#allocation24_spill] sm:$0xff] %v6654_v45  ;;  %v2461_v7 = vadd.f32 %v2460_v29, %v2402_v39  ;;  %v2652_v33 = vsel %vm2583_vm2, %v6654_v45, 0.0  ;;  %v2699_v0 = vmul.f32 %v6654_v45, %v6654_v45  ;;  %v2462_v52 = vpop.f32.mrf.mxu0 }
 0x3db   :  { %v2653_v62 = vadd.f32 %v2652_v33, %v6346_v1  ;;  %v6675_v60 = vmul.f32 %v6666_v51, %v6666_v51 }
 0x3dc   :  { %v2520_v13 = vadd.f32 %v2519_v28, %v2461_v7  ;;  %v2772_v54 = vsel %vm2583_vm2, %v2699_v0, 0.0  ;;  %v2700_v28 = vmul.f32 %v6363_v48, %v6363_v48 }
 0x3dd   :  { %2654 = vadd.xlane.f32.xlu2 %v2653_v62  ;;  %v2773_v12 = vadd.f32 %v2772_v54, %v2698_v44 }
 0x3df   :  { %v2403_v34 = vpop.f32.mrf.mxu3  ;;  %v2578_v61 = vpop.f32.mrf.mxu2  ;;  %2774 = vadd.xlane.f32.xlu1 %v2773_v12 }
 0x3e0   :  { %v2404_v21 = vadd.f32 %v2403_v34, %v6456_v42  ;;  %v6671_v55 = vadd.f32 %v2578_v61, %v2520_v13  ;;  %v2715_v63 = vpop.xlane.xlu1 %2714  ;;  %v2521_v26 = vpop.f32.mrf.mxu1 }
 0x3e1   :  { %v6677_v27 = vmul.f32 0.0051020407, %v2715_v63  ;;  %v6691_v13 = vpop.xlane.xlu0 %2590 }
 0x3e2   :  { %7622 = vst [vmem:[#allocation25_spill] sm:$0xff] %v6671_v55  ;;  %v2463_v29 = vadd.f32 %v2462_v52, %v2404_v21  ;;  %v6679_v31 = vpop.xlane.xlu2 %2718  ;;  %v2656_v41 = vsel %vm2583_vm2, %v6671_v55, 0.0  ;;  %v2701_v39 = vmul.f32 %v6671_v55, %v6671_v55 }
 0x3e3   :  { %v2657_v7 = vadd.f32 %v2656_v41, %v6363_v48 }
 0x3e4   :  { %v2522_v33 = vadd.f32 %v2521_v26, %v2463_v29  ;;  %v2776_v0 = vsel %vm2583_vm2, %v2701_v39, 0.0  ;;  %v2884_v39 = vld [vmem:[%s7364_s5] sm:$0xf]  ;;  %s3925_s5 = smov 1  }
 0x3e5   :  { %2658 = vadd.xlane.f32.xlu0 %v2657_v7  ;;  %v2777_v62 = vadd.f32 %v2776_v0, %v2700_v28  ;;  %2886 = vst [vmem:[#allocation1] ss:$4 sm:$0xff] %v2884_v39 }
 0x3e7   :  { %v2580_v44 = vpop.f32.mrf.mxu2  ;;  %2778 = vadd.xlane.f32.xlu2 %v2777_v62 }
 0x3e8   :  { %v6693_v54 = vadd.f32 %v2580_v44, %v2522_v33  ;;  %v6702_v52 = vpop.xlane.xlu1 %2598 }
 0x3e9   :  { %v6700_v21 = vpop.xlane.xlu0 %2710 }
 0x3ea   :  { %v2660_v12 = vsel %vm2583_vm2, %v6693_v54, 0.0  ;;  %v6698_v61 = vpop.xlane.xlu2 %2602  ;;  %v2805_v30 = vmul.f32 0.0051020407, %v6700_v21 }
 0x3eb   :  { %v2661_v34 = vadd.f32 %v2660_v12, %v6367_v50 }
 0x3ec   :  { %v2888_v42 = vld.sshfl [vmem:[#allocation1 + $0x8] sm:$0xff pattern:$0x73625140] }
 0x3ed   :  { %2662 = vadd.xlane.f32.xlu1 %v2661_v34 }
 0x3f1   :  { %v6706_v29 = vpop.xlane.xlu0 %2722 }
 0x3f2   :  { %v6704_v63 = vpop.xlane.xlu2 %2606  ;;  %v6708_v41 = vpop.xlane.xlu1 %2726 }
 0x3f9   :  { %v6715_v7 = vpop.xlane.xlu0 %2610 }
 0x3fa   :  { %v6713_v26 = vpop.xlane.xlu2 %2730 }
 0x400   :  { %v6717_v28 = vpop.xlane.xlu1 %2614 }
 0x402   :  { %v6721_v62 = vpop.xlane.xlu0 %2734 }
 0x408   :  { %v2619_v33 = vpop.xlane.xlu2 %2618 }
 0x409   :  { %v6719_v0 = vmul.f32 0.0051020407, %v2619_v33 }
 0x40a   :  { %v2739_v44 = vpop.xlane.xlu1 %2738 }
 0x40b   :  { %v6725_v12 = vmul.f32 %v6719_v0, %v6719_v0  ;;  %v6727_v34 = vmul.f32 0.0051020407, %v2739_v44 }
 0x410   :  { %2923 = vxpose.xlu2.b32.start.end [1/1] (short) (narrow) %v2888_v42, 32  ;;  %v6731_v55 = vpop.xlane.xlu0 %2622  ;;  %v2887_v42 = vld.sshfl [vmem:[#allocation1] sm:$0xff pattern:$0x73625140] }
 0x412   :  { %v6735_v33 = vpop.xlane.xlu2 %2742 }
 0x418   :  { %v2627_v48 = vpop.xlane.xlu1 %2626 }
 0x419   :  { %v6733_v25 = vmul.f32 0.0051020407, %v2627_v48 }
 0x41a   :  { %v2747_v20 = vpop.xlane.xlu0 %2746 }
 0x41b   :  { %v6739_v15 = vmul.f32 %v6733_v25, %v6733_v25  ;;  %v6741_v45 = vmul.f32 0.0051020407, %v2747_v20 }
 0x420   :  { %v6745_v39 = vpop.xlane.xlu2 %2630 }
 0x422   :  { %v6749_v48 = vpop.xlane.xlu1 %2750 }
 0x427   :  { %2891 = vxpose.xlu1.b32.start.end [1/1] (short) %v2887_v42, 128 }
 0x428   :  { %v2635_v1 = vpop.xlane.xlu0 %2634 }
 0x429   :  { %v6747_v18 = vmul.f32 0.0051020407, %v2635_v1 }
 0x42a   :  { %v2755_v14 = vpop.xlane.xlu2 %2754 }
 0x42b   :  { %v6753_v24 = vmul.f32 %v6747_v18, %v6747_v18  ;;  %v6755_v57 = vmul.f32 0.0051020407, %v2755_v14  ;;  %v6780_v14 = vmul.f32 0.0051020407, %v6668_v5 }
 0x430   :  { %v6759_v44 = vpop.xlane.xlu1 %2638 }
 0x432   :  { %v6763_v42 = vpop.xlane.xlu0 %2758 }
 0x438   :  { %v2643_v58 = vpop.xlane.xlu2 %2642 }
 0x439   :  { %v6761_v32 = vmul.f32 0.0051020407, %v2643_v58 }
 0x43a   :  { %v2763_v1 = vpop.xlane.xlu1 %2762 }
 0x43b   :  { %v6767_v43 = vmul.f32 %v6761_v32, %v6761_v32  ;;  %v6769_v59 = vmul.f32 0.0051020407, %v2763_v1 }
 0x440   :  { %v6773_v23 = vpop.xlane.xlu0 %2646 }
 0x442   :  { %v6775_v38 = vpop.xlane.xlu2 %2766 }
 0x448   :  { %v2651_v20 = vpop.xlane.xlu1 %2650 }
 0x449   :  { %v2800_v40 = vmul.f32 0.0051020407, %v2651_v20  ;;  %v2824_v20 = vmul.f32 %v6780_v14, %v6780_v14 }
 0x44a   :  { %v2771_v19 = vpop.xlane.xlu0 %2770 }
 0x44b   :  { %v2840_v11 = vmul.f32 %v2800_v40, %v2800_v40  ;;  %v2820_v58 = vmul.f32 0.0051020407, %v2771_v19  ;;  %v2804_v19 = vmul.f32 0.0051020407, %v6656_v46 }
 0x44d   :  { %v2860_v47 = vsub.f32 %v2820_v58, %v2840_v11  ;;  %v6788_v58 = vmul.f32 0.0051020407, %v6691_v13 }
 0x44f   :  { %v2880_v6 = vmax.f32 %v2860_v47, 0.0  ;;  %v2825_v5 = vmul.f32 %v6788_v58, %v6788_v58 }
 0x450   :  { %v6777_v35 = vpop.xlane.xlu2 %2654 }
 0x451   :  { %v2971_v53 = vadd.f32 0.001, %v2880_v6  ;;  %v2844_v6 = vsub.f32 %v2804_v19, %v2824_v20  ;;  %v2845_v4 = vsub.f32 %v2805_v30, %v2825_v5  ;;  %v7450_v19 = vmov 0  }
 0x452   :  { %3816 = vset.pattern.permute.xlu0 %v7450_v19  ;;  %v7626_v30 = vsub.f32 %v6677_v27, %v6675_v60  ;;  %v6821_v27 = vmul.f32 0.0051020407, %v6704_v63 }
 0x453   :  { %3858 = vrsqrt.f32 %v2971_v53  ;;  %vm3141_vm4 = vweird.f32 %v2971_v53  ;;  %v2865_v20 = vmax.f32 %v2845_v4, 0.0 }
 0x459   :  { %v3859_v49 = vpop.eup %3858 }
 0x45a   :  { %v3136_v22 = vmul.f32 %v3859_v49, %v2971_v53  ;;  %v6785_v11 = vpop.xlane.xlu2 %2778  ;;  %vm3142_vm3 = vweird.f32 %v3859_v49  ;;  %v2956_v53 = vadd.f32 0.001, %v2865_v20 }
 0x45b   :  { %vm3143_vm5 = vmor %vm3141_vm4, %vm3142_vm3 }
 0x45c   :  { %v3137_v1 = vmul.f32 %v3859_v49, %v3136_v22  ;;  %v2864_v22 = vmax.f32 %v2844_v6, 0.0  ;;  %vm2991_vm10 = vweird.f32 %v2956_v53 }
 0x45e   :  { %v3138_v9 = vmul.f32 0.5, %v3137_v1  ;;  %v2955_v3 = vadd.f32 0.001, %v2864_v22 }
 0x460   :  { %v3139_v47 = vsub.f32 1.5, %v3138_v9  ;;  %3860 = vrsqrt.f32 %v2955_v3  ;;  %vm2981_vm7 = vweird.f32 %v2955_v3 }
 0x461   :  { %3862 = vrsqrt.f32 %v2956_v53 }
 0x462   :  { %v3140_v16 = vmul.f32 %v3859_v49, %v3139_v47  ;;  %v2807_v47 = vmul.f32 0.0051020407, %v6679_v31 }
 0x464   :  { %v3144_v46 = vsel %vm3143_vm5, %v3859_v49, %v3140_v16  ;;  %v6805_v16 = vmul.f32 0.0051020407, %v6702_v52 }
 0x466   :  { %v3861_v49 = vpop.eup %3860  ;;  %v2827_v4 = vmul.f32 %v6805_v16, %v6805_v16 }
 0x467   :  { %v2976_v21 = vmul.f32 %v3861_v49, %v2955_v3  ;;  %v3863_v52 = vpop.eup %3862  ;;  %vm2982_vm6 = vweird.f32 %v3861_v49 }
 0x468   :  { %v2847_v22 = vsub.f32 %v2807_v47, %v2827_v4  ;;  %v6826_v4 = vmul.f32 0.0051020407, %v6698_v61  ;;  %vm2983_vm8 = vmor %vm2981_vm7, %vm2982_vm6  ;;  %vm2992_vm9 = vweird.f32 %v3863_v52 }
 0x469   :  { %v2977_v5 = vmul.f32 %v3861_v49, %v2976_v21  ;;  %v2829_v21 = vmul.f32 %v6821_v27, %v6821_v27  ;;  %vm2993_vm11 = vmor %vm2991_vm10, %vm2992_vm9 }
 0x46a   :  { %v2867_v20 = vmax.f32 %v2847_v22, 0.0  ;;  %v2828_v63 = vmul.f32 %v6826_v4, %v6826_v4 }
 0x46c   :  { %v6818_v60 = vadd.f32 0.001, %v2867_v20 }
 0x46e   :  { %vm3011_vm0 = vweird.f32 %v6818_v60 }
 0x472   :  { %3817 = vset.pattern.permute.xlu2 %v7450_v19 }
 0x47a   :  { %3818 = vset.pattern.permute.xlu1 %v7450_v19  ;;  %v2986_v19 = vmul.f32 %v3863_v52, %v2956_v53 }
 0x4a9   :  { %v6793_v1 = vpop.trf.xlu2 }
 0x4aa   :  { %7623 = vst [vmem:[#allocation26_spill] sm:$0xff] %v6793_v1  ;;  %v6796_v9 = vmul.f32 %v3144_v46, %v6793_v1  ;;  %v6815_v46 = vpop.xlane.xlu1 %2774  ;;  %v2978_v1 = vmul.f32 0.5, %v2977_v5 }
 0x4ac   :  { %7624 = vst [vmem:[#allocation27_spill] sm:$0xff] %v6796_v9  ;;  %v6799_v13 = vmul.f32 %v6796_v9, %v2800_v40  ;;  %v2866_v40 = vmax.f32 %v7626_v30, 0.0  ;;  %v2987_v30 = vmul.f32 %v3863_v52, %v2986_v19  ;;  %v2979_v31 = vsub.f32 1.5, %v2978_v1 }
 0x4ad   :  { %v2809_v19 = vmul.f32 0.0051020407, %v6708_v41  ;;  %v2808_v1 = vmul.f32 0.0051020407, %v6706_v29 }
 0x4ae   :  { %7625 = vst [vmem:[#allocation28_spill] sm:$0xff] %v6799_v13  ;;  %v6813_v6 = vadd.f32 0.001, %v2866_v40  ;;  %v2980_v22 = vmul.f32 %v3861_v49, %v2979_v31  ;;  %v2988_v5 = vmul.f32 0.5, %v2987_v30 }
 0x4af   :  { %v2849_v61 = vsub.f32 %v2809_v19, %v2829_v21  ;;  %v2848_v56 = vsub.f32 %v2808_v1, %v2828_v63 }
 0x4b0   :  { %3864 = vrsqrt.f32 %v6813_v6  ;;  %v2984_v8 = vsel %vm2983_vm8, %v3861_v49, %v2980_v22  ;;  %v2989_v13 = vsub.f32 1.5, %v2988_v5  ;;  %v6843_v49 = vmul.f32 0.0051020407, %v6717_v28 }
 0x4b1   :  { %3866 = vrsqrt.f32 %v6818_v60  ;;  %v2869_v30 = vmax.f32 %v2849_v61, 0.0  ;;  %v2868_v41 = vmax.f32 %v2848_v56, 0.0  ;;  %v2811_v28 = vmul.f32 0.0051020407, %v6721_v62 }
 0x4b2   :  { %v6823_v37 = vpop.xlane.xlu1 %2662  ;;  %v2990_v17 = vmul.f32 %v3863_v52, %v2989_v13  ;;  %v2831_v56 = vmul.f32 %v6843_v49, %v6843_v49  ;;  %vm3001_vm13 = vweird.f32 %v6813_v6 }
 0x4b3   :  { %v6840_v29 = vadd.f32 0.001, %v2869_v30  ;;  %v6847_v5 = vadd.f32 0.001, %v2868_v41  ;;  %v6872_v41 = vmul.f32 0.0051020407, %v6731_v55  ;;  %v7627_v55 = vsub.f32 %v6727_v34, %v6725_v12 }
 0x4b4   :  { %v2994_v21 = vsel %vm2993_vm11, %v3863_v52, %v2990_v17 }
 0x4b5   :  { %3868 = vrsqrt.f32 %v6840_v29  ;;  %vm3031_vm5 = vweird.f32 %v6840_v29  ;;  %vm3021_vm7 = vweird.f32 %v6847_v5 }
 0x4b6   :  { %v3865_v40 = vpop.eup %3864  ;;  %3870 = vrsqrt.f32 %v6847_v5 }
 0x4b7   :  { %v2996_v47 = vmul.f32 %v3865_v40, %v6813_v6  ;;  %v3867_v9 = vpop.eup %3866  ;;  %vm3002_vm12 = vweird.f32 %v3865_v40 }
 0x4b8   :  { %v3006_v10 = vmul.f32 %v3867_v9, %v6818_v60  ;;  %vm3003_vm14 = vmor %vm3001_vm13, %vm3002_vm12  ;;  %vm3012_vm15 = vweird.f32 %v3867_v9  ;;  %v2872_v60 = vmax.f32 %v7627_v55, 0.0 }
 0x4b9   :  { %v2997_v20 = vmul.f32 %v3865_v40, %v2996_v47  ;;  %vm3013_vm1 = vmor %vm3011_vm0, %vm3012_vm15 }
 0x4bb   :  { %v2998_v3 = vmul.f32 0.5, %v2997_v20  ;;  %v3869_v1 = vpop.eup %3868 }
 0x4bc   :  { %v3871_v20 = vpop.eup %3870  ;;  %v3026_v6 = vmul.f32 %v3869_v1, %v6840_v29  ;;  %vm3032_vm3 = vweird.f32 %v3869_v1 }
 0x4bd   :  { %v2999_v22 = vsub.f32 1.5, %v2998_v3  ;;  %v3016_v3 = vmul.f32 %v3871_v20, %v6847_v5  ;;  %vm3022_vm4 = vweird.f32 %v3871_v20  ;;  %vm3033_vm6 = vmor %vm3031_vm5, %vm3032_vm3  ;;  %v2815_v5 = vmul.f32 0.0051020407, %v6749_v48 }
 0x4be   :  { %vm3023_vm8 = vmor %vm3021_vm7, %vm3022_vm4 }
 0x4bf   :  { %v3000_v17 = vmul.f32 %v3865_v40, %v2999_v22 }
 0x4c1   :  { %v3004_v53 = vsel %vm3003_vm14, %v3865_v40, %v3000_v17 }
 0x4cb   :  { %v6836_v36 = vpop.trf.xlu1 }
 0x4cc   :  { %v3175_v31 = vmul.f32 %v2984_v8, %v6836_v36  ;;  %v3007_v8 = vmul.f32 %v3867_v9, %v3006_v10 }
 0x4ce   :  { %3197 = vperm.xlu0 %3816, %v3175_v31   ;;  %v3335_v63 = vmul.f32 %v3175_v31, %v6780_v14  ;;  %v3008_v10 = vmul.f32 0.5, %v3007_v8  ;;  %v2851_v14 = vsub.f32 %v2811_v28, %v2831_v56  ;;  %v2813_v56 = vmul.f32 0.0051020407, %v6735_v33 }
 0x4d0   :  { %v3009_v19 = vsub.f32 1.5, %v3008_v10  ;;  %v2871_v31 = vmax.f32 %v2851_v14, 0.0  ;;  %v6892_v14 = vadd.f32 0.001, %v2872_v60 }
 0x4d2   :  { %v3010_v40 = vmul.f32 %v3867_v9, %v3009_v19  ;;  %vm3061_vm13 = vweird.f32 %v6892_v14 }
 0x4d3   :  { %v6845_v47 = vpop.trf.xlu1 }
 0x4d4   :  { %v3176_v13 = vmul.f32 %v2994_v21, %v6845_v47  ;;  %v3014_v21 = vsel %vm3013_vm1, %v3867_v9, %v3010_v40  ;;  %v6902_v40 = vmul.f32 0.0051020407, %v6745_v39  ;;  %v7628_v39 = vsub.f32 %v6741_v45, %v6739_v15 }
 0x4d6   :  { %3375 = vrot.lane.b32.xlu0 %v3335_v63, %s3925_s5  ;;  %3202 = vperm.xlu2 %3817, %v3176_v13   ;;  %v3336_v62 = vmul.f32 %v3176_v13, %v6788_v58  ;;  %v6875_v58 = vadd.f32 0.001, %v2871_v31  ;;  %v3017_v63 = vmul.f32 %v3871_v20, %v3016_v3  ;;  %v2833_v13 = vmul.f32 %v6872_v41, %v6872_v41 }
 0x4d7   :  { %v2874_v29 = vmax.f32 %v7628_v39, 0.0  ;;  %v2835_v55 = vmul.f32 %v6902_v40, %v6902_v40 }
 0x4d8   :  { %3872 = vrsqrt.f32 %v6875_v58  ;;  %v2853_v17 = vsub.f32 %v2813_v56, %v2833_v13  ;;  %v3018_v10 = vmul.f32 0.5, %v3017_v63  ;;  %vm3051_vm10 = vweird.f32 %v6875_v58 }
 0x4d9   :  { %3874 = vrsqrt.f32 %v6892_v14  ;;  %v6930_v15 = vadd.f32 0.001, %v2874_v29  ;;  %v2855_v45 = vsub.f32 %v2815_v5, %v2835_v55 }
 0x4da   :  { %v3019_v31 = vsub.f32 1.5, %v3018_v10 }
 0x4db   :  { %v6858_v52 = vpop.trf.xlu1  ;;  %vm3081_vm4 = vweird.f32 %v6930_v15 }
 0x4dc   :  { %v6862_v61 = vmul.f32 %v3004_v53, %v6858_v52 }
 0x4de   :  { %v6866_v30 = vmul.f32 %v6862_v61, %v6666_v51  ;;  %3377 = vrot.lane.b32.xlu2 %v3336_v62, %s3925_s5  ;;  %v3027_v51 = vmul.f32 %v3869_v1, %v3026_v6  ;;  %v3873_v33 = vpop.eup %3872  ;;  %v2873_v62 = vmax.f32 %v2853_v17, 0.0  ;;  %v3020_v6 = vmul.f32 %v3871_v20, %v3019_v31 }
 0x4df   :  { %v3046_v12 = vmul.f32 %v3873_v33, %v6875_v58  ;;  %v6907_v63 = vpop.eup %3874  ;;  %v2875_v31 = vmax.f32 %v2855_v45, 0.0  ;;  %vm3052_vm9 = vweird.f32 %v3873_v33  ;;  %v7629_v58 = vsub.f32 %v6755_v57, %v6753_v24 }
 0x4e0   :  { %v3028_v28 = vmul.f32 0.5, %v3027_v51  ;;  %v3024_v56 = vsel %vm3023_vm8, %v3871_v20, %v3020_v6  ;;  %v3056_v60 = vmul.f32 %v6907_v63, %v6892_v14  ;;  %v2703_v20 = vmul.f32 %v6693_v54, %v6693_v54  ;;  %vm3053_vm11 = vmor %vm3051_vm10, %vm3052_vm9 }
 0x4e1   :  { %v3047_v3 = vmul.f32 %v3873_v33, %v3046_v12  ;;  %vm3062_vm12 = vweird.f32 %v6907_v63 }
 0x4e2   :  { %v3029_v19 = vsub.f32 1.5, %v3028_v28  ;;  %v2780_v10 = vsel %vm2583_vm2, %v2703_v20, 0.0  ;;  %v2817_v20 = vmul.f32 0.0051020407, %v6763_v42  ;;  %vm3063_vm14 = vmor %vm3061_vm13, %vm3062_vm12 }
 0x4e3   :  { %v6877_v22 = vpop.trf.xlu1  ;;  %v3048_v28 = vmul.f32 0.5, %v3047_v3 }
 0x4e4   :  { %v6880_v8 = vmul.f32 %v3014_v21, %v6877_v22  ;;  %v3030_v34 = vmul.f32 %v3869_v1, %v3029_v19 }
 0x4e5   :  { %v3049_v19 = vsub.f32 1.5, %v3048_v28  ;;  %v2876_v28 = vmax.f32 %v7629_v58, 0.0 }
 0x4e6   :  { %v3338_v9 = vmul.f32 %v6880_v8, %v6805_v16  ;;  %v6898_v16 = vadd.f32 0.001, %v2873_v62  ;;  %v3034_v21 = vsel %vm3033_vm6, %v3869_v1, %v3030_v34  ;;  %v2702_v62 = vmul.f32 %v6367_v50, %v6367_v50 }
 0x4e7   :  { %v3050_v6 = vmul.f32 %v3873_v33, %v3049_v19  ;;  %v6971_v19 = vmul.f32 0.0051020407, %v6715_v7  ;;  %v6975_v57 = vadd.f32 0.001, %v2876_v28 }
 0x4e8   :  { %3381 = vrot.lane.b32.xlu2 %v3338_v9, %s3925_s5  ;;  %3876 = vrsqrt.f32 %v6898_v16  ;;  %v2781_v12 = vadd.f32 %v2780_v10, %v2702_v62  ;;  %vm3071_vm0 = vweird.f32 %v6898_v16 }
 0x4e9   :  { %3878 = vrsqrt.f32 %v6930_v15  ;;  %v3054_v29 = vsel %vm3053_vm11, %v3873_v33, %v3050_v6  ;;  %v2830_v7 = vmul.f32 %v6971_v19, %v6971_v19  ;;  %vm3101_vm10 = vweird.f32 %v6975_v57 }
 0x4eb   :  { %v6894_v53 = vpop.trf.xlu1 }
 0x4ec   :  { %v6924_v9 = vmul.f32 %v3024_v56, %v6894_v53  ;;  %v6947_v56 = vadd.f32 0.001, %v2875_v31 }
 0x4ee   :  { %v6932_v48 = vpop.eup %3876  ;;  %3880 = vrsqrt.f32 %v6947_v56  ;;  %vm3091_vm7 = vweird.f32 %v6947_v56 }
 0x4ef   :  { %v3066_v34 = vmul.f32 %v6932_v48, %v6898_v16  ;;  %3882 = vrsqrt.f32 %v6975_v57  ;;  %vm3072_vm15 = vweird.f32 %v6932_v48 }
 0x4f0   :  { %vm3073_vm1 = vmor %vm3071_vm0, %vm3072_vm15 }
 0x4f1   :  { %v3067_v39 = vmul.f32 %v6932_v48, %v3066_v34  ;;  %v2810_v34 = vmul.f32 0.0051020407, %v6713_v26 }
 0x4f3   :  { %v6905_v51 = vpop.trf.xlu1  ;;  %v3068_v10 = vmul.f32 0.5, %v3067_v39 }
 0x4f4   :  { %v6910_v13 = vmul.f32 %v3034_v21, %v6905_v51  ;;  %v6944_v21 = vmul.f32 0.0051020407, %v6759_v44 }
 0x4f5   :  { %v3069_v31 = vsub.f32 1.5, %v3068_v10 }
 0x4f6   :  { %v3340_v1 = vmul.f32 %v6910_v13, %v6821_v27  ;;  %v3057_v27 = vmul.f32 %v6907_v63, %v3056_v60  ;;  %v2837_v44 = vmul.f32 %v6944_v21, %v6944_v21 }
 0x4f7   :  { %v3070_v39 = vmul.f32 %v6932_v48, %v3069_v31 }
 0x4f8   :  { %3385 = vrot.lane.b32.xlu2 %v3340_v1, %s3925_s5  ;;  %v3058_v3 = vmul.f32 0.5, %v3057_v27  ;;  %v6952_v1 = vpop.eup %3878  ;;  %v2857_v42 = vsub.f32 %v2817_v20, %v2837_v44  ;;  %v7002_v44 = vmul.f32 0.0051020407, %v6773_v23  ;;  %v7630_v23 = vsub.f32 %v6769_v59, %v6767_v43 }
 0x4f9   :  { %3217 = vperm.xlu1 %3818, %v6924_v9   ;;  %v3076_v45 = vmul.f32 %v6952_v1, %v6930_v15  ;;  %v3074_v20 = vsel %vm3073_vm1, %v6932_v48, %v3070_v39  ;;  %vm3082_vm3 = vweird.f32 %v6952_v1 }
 0x4fa   :  { %v3059_v5 = vsub.f32 1.5, %v3058_v3  ;;  %v2877_v14 = vmax.f32 %v2857_v42, 0.0  ;;  %v2878_v16 = vmax.f32 %v7630_v23, 0.0  ;;  %v2839_v48 = vmul.f32 %v7002_v44, %v7002_v44  ;;  %vm3083_vm5 = vmor %vm3081_vm4, %vm3082_vm3 }
 0x4fb   :  { %v6935_v17 = vpop.trf.xlu1  ;;  %v3077_v24 = vmul.f32 %v6952_v1, %v3076_v45  ;;  %v2819_v42 = vmul.f32 0.0051020407, %v6775_v38 }
 0x4fc   :  { %v3060_v27 = vmul.f32 %v6907_v63, %v3059_v5  ;;  %v2850_v5 = vsub.f32 %v2810_v34, %v2830_v7  ;;  %v6998_v26 = vadd.f32 0.001, %v2877_v14  ;;  %v7033_v43 = vadd.f32 0.001, %v2878_v16 }
 0x4fd   :  { %v2859_v38 = vsub.f32 %v2819_v42, %v2839_v48 }
 0x4fe   :  { %v2870_v45 = vmax.f32 %v2850_v5, 0.0  ;;  %3884 = vrsqrt.f32 %v6998_v26  ;;  %vm3111_vm13 = vweird.f32 %v6998_v26  ;;  %vm3121_vm4 = vweird.f32 %v7033_v43 }
 0x4ff   :  { %v2879_v15 = vmax.f32 %v2859_v38, 0.0 }
 0x500   :  { %2782 = vadd.xlane.f32.xlu0 %v2781_v12  ;;  %v6981_v12 = vpop.eup %3880  ;;  %v7029_v7 = vadd.f32 0.001, %v2870_v45 }
 0x501   :  { %vm3092_vm6 = vweird.f32 %v6981_v12  ;;  %v7064_v45 = vadd.f32 0.001, %v2879_v15 }
 0x502   :  { %3886 = vrsqrt.f32 %v7029_v7  ;;  %vm3093_vm8 = vmor %vm3091_vm7, %vm3092_vm6  ;;  %vm3041_vm0 = vweird.f32 %v7029_v7 }
 0x503   :  { %v6950_v55 = vpop.trf.xlu1  ;;  %3888 = vrsqrt.f32 %v7033_v43  ;;  %vm3131_vm7 = vweird.f32 %v7064_v45 }
 0x504   :  { %v6955_v60 = vmul.f32 %v3054_v29, %v6950_v55  ;;  %v3078_v29 = vmul.f32 0.5, %v3077_v24  ;;  %3890 = vrsqrt.f32 %v7064_v45 }
 0x506   :  { %v3342_v33 = vmul.f32 %v6955_v60, %v6843_v49  ;;  %v3064_v49 = vsel %vm3063_vm14, %v6907_v63, %v3060_v27  ;;  %v3086_v63 = vmul.f32 %v6981_v12, %v6947_v56  ;;  %v3079_v28 = vsub.f32 1.5, %v3078_v29  ;;  %v7010_v27 = vpop.trf.xlu2 }
 0x508   :  { %3389 = vrot.lane.b32.xlu2 %v3342_v33, %s3925_s5  ;;  %v7008_v33 = vpop.eup %3882  ;;  %v3080_v31 = vmul.f32 %v6952_v1, %v3079_v28  ;;  %v7059_v28 = vmul.f32 0.0051020407, %v6777_v35 }
 0x509   :  { %v7035_v59 = vpop.eup %3884  ;;  %vm3102_vm9 = vweird.f32 %v7008_v33 }
 0x50a   :  { %v3084_v34 = vsel %vm3083_vm5, %v6952_v1, %v3080_v31  ;;  %v3106_v1 = vmul.f32 %v7035_v59, %v6998_v26  ;;  %v2841_v35 = vmul.f32 %v7059_v28, %v7059_v28  ;;  %vm3103_vm11 = vmor %vm3101_vm10, %vm3102_vm9  ;;  %vm3112_vm12 = vweird.f32 %v7035_v59 }
 0x50b   :  { %v6979_v62 = vpop.trf.xlu1  ;;  %vm3113_vm14 = vmor %vm3111_vm13, %vm3112_vm12 }
 0x50c   :  { %v6987_v6 = vmul.f32 %v3064_v49, %v6979_v62  ;;  %v3096_v49 = vmul.f32 %v7008_v33, %v6975_v57 }
 0x50e   :  { %v6992_v3 = vmul.f32 %v6987_v6, %v6719_v0  ;;  %v3087_v0 = vmul.f32 %v6981_v12, %v3086_v63  ;;  %v7048_v29 = vpop.trf.xlu2 }
 0x513   :  { %v7006_v58 = vpop.trf.xlu1 }
 0x514   :  { %v7013_v10 = vmul.f32 %v3074_v20, %v7006_v58  ;;  %3207 = vperm.xlu0 %3816, %v6862_v61   ;;  %v3088_v61 = vmul.f32 0.5, %v3087_v0 }
 0x516   :  { %v3344_v24 = vmul.f32 %v7013_v10, %v6872_v41  ;;  %v3097_v41 = vmul.f32 %v7008_v33, %v3096_v49  ;;  %v3089_v63 = vsub.f32 1.5, %v3088_v61  ;;  %v7084_v31 = vpop.trf.xlu2 }
 0x518   :  { %3393 = vrot.lane.b32.xlu2 %v3344_v24, %s3925_s5  ;;  %v3090_v0 = vmul.f32 %v6981_v12, %v3089_v63  ;;  %v3098_v20 = vmul.f32 0.5, %v3097_v41  ;;  %v2821_v24 = vmul.f32 0.0051020407, %v6815_v46  ;;  %v3926_v41 = vmov 1  }
 0x519   :  { %3824 = vset.pattern.permute.xlu1 %v3926_v41  ;;  %3821 = vset.pattern.permute.xlu2 %v3926_v41 }
 0x51a   :  { %v3094_v23 = vsel %vm3093_vm8, %v6981_v12, %v3090_v0  ;;  %v3099_v48 = vsub.f32 1.5, %v3098_v20 }
 0x51b   :  { %v7039_v14 = vpop.trf.xlu1 }
 0x51c   :  { %v7043_v39 = vmul.f32 %v3084_v34, %v7039_v14  ;;  %3379 = vrot.lane.b32.xlu0 %v6866_v30, %s3925_s5  ;;  %v7062_v30 = vpop.eup %3886  ;;  %v3100_v46 = vmul.f32 %v7008_v33, %v3099_v48  ;;  %v3339_v34 = vmul.f32 %v6924_v9, %v6826_v4 }
 0x51d   :  { %v7070_v42 = vpop.eup %3888  ;;  %v3036_v49 = vmul.f32 %v7062_v30, %v7029_v7  ;;  %vm3042_vm15 = vweird.f32 %v7062_v30 }
 0x51e   :  { %v7052_v5 = vmul.f32 %v7043_v39, %v6733_v25  ;;  %v3107_v25 = vmul.f32 %v7035_v59, %v3106_v1  ;;  %v3116_v61 = vmul.f32 %v7070_v42, %v7033_v43  ;;  %v3104_v15 = vsel %vm3103_vm11, %v7008_v33, %v3100_v46  ;;  %v3891_v20 = vpop.eup %3890  ;;  %vm3043_vm3 = vmor %vm3041_vm0, %vm3042_vm15 }
 0x51f   :  { %v3126_v4 = vmul.f32 %v3891_v20, %v7064_v45  ;;  %vm3122_vm1 = vweird.f32 %v7070_v42  ;;  %vm3132_vm6 = vweird.f32 %v3891_v20 }
 0x520   :  { %v3108_v38 = vmul.f32 0.5, %v3107_v25  ;;  %v3117_v63 = vmul.f32 %v7070_v42, %v3116_v61  ;;  %vm3123_vm5 = vmor %vm3121_vm4, %vm3122_vm1 }
 0x521   :  { %vm3133_vm8 = vmor %vm3131_vm7, %vm3132_vm6 }
 0x522   :  { %v3109_v0 = vsub.f32 1.5, %v3108_v38  ;;  %v3118_v33 = vmul.f32 0.5, %v3117_v63 }
 0x523   :  { %v7068_v16 = vpop.trf.xlu1 }
 0x524   :  { %v7076_v56 = vmul.f32 %v3094_v23, %v7068_v16  ;;  %3212 = vperm.xlu0 %3816, %v6880_v8   ;;  %v2861_v8 = vsub.f32 %v2821_v24, %v2841_v35  ;;  %v3110_v9 = vmul.f32 %v7035_v59, %v3109_v0 }
 0x526   :  { %v3346_v12 = vmul.f32 %v7076_v56, %v6902_v40  ;;  %v3037_v40 = vmul.f32 %v7062_v30, %v3036_v49  ;;  %v2881_v25 = vmax.f32 %v2861_v8, 0.0  ;;  %v3114_v61 = vsel %vm3113_vm14, %v7035_v59, %v3110_v9 }
 0x528   :  { %3397 = vrot.lane.b32.xlu2 %v3346_v12, %s3925_s5  ;;  %v3038_v48 = vmul.f32 0.5, %v3037_v40  ;;  %v2972_v35 = vadd.f32 0.001, %v2881_v25  ;;  %v3127_v12 = vmul.f32 %v3891_v20, %v3126_v4 }
 0x52a   :  { %v3039_v49 = vsub.f32 1.5, %v3038_v48  ;;  %3892 = vrsqrt.f32 %v2972_v35  ;;  %v3128_v40 = vmul.f32 0.5, %v3127_v12  ;;  %vm3151_vm10 = vweird.f32 %v2972_v35 }
 0x52b   :  { %v7099_v1 = vpop.trf.xlu1 }
 0x52c   :  { %v7102_v23 = vmul.f32 %v3104_v15, %v7099_v1  ;;  %3383 = vrot.lane.b32.xlu0 %v3339_v34, %s3925_s5  ;;  %v3040_v8 = vmul.f32 %v7062_v30, %v3039_v49  ;;  %v3129_v0 = vsub.f32 1.5, %v3128_v40 }
 0x52e   :  { %v7107_v57 = vmul.f32 %v7102_v23, %v6747_v18  ;;  %v3119_v18 = vsub.f32 1.5, %v3118_v33  ;;  %v3044_v34 = vsel %vm3043_vm3, %v7062_v30, %v3040_v8  ;;  %v3130_v43 = vmul.f32 %v3891_v20, %v3129_v0 }
 0x52f   :  { %v3181_v63 = vmul.f32 %v3044_v34, %v6935_v17 }
 0x530   :  { %v7112_v24 = vpop.permute.xlu2 %3202  ;;  %v3120_v59 = vmul.f32 %v7070_v42, %v3119_v18  ;;  %v3134_v49 = vsel %vm3133_vm8, %v3891_v20, %v3130_v43 }
 0x531   :  { %v3341_v9 = vmul.f32 %v3181_v63, %v6971_v19 }
 0x533   :  { %v7116_v46 = vpop.trf.xlu1 }
 0x534   :  { %v7119_v38 = vmul.f32 %v3114_v61, %v7116_v46  ;;  %3222 = vperm.xlu0 %3816, %v6910_v13   ;;  %v3893_v13 = vpop.eup %3892 }
 0x535   :  { %v3146_v48 = vmul.f32 %v3893_v13, %v2972_v35  ;;  %vm3152_vm9 = vweird.f32 %v3893_v13 }
 0x536   :  { %v3348_v26 = vmul.f32 %v7119_v38, %v6944_v21  ;;  %v3124_v21 = vsel %vm3123_vm5, %v7070_v42, %v3120_v59  ;;  %vm3153_vm11 = vmor %vm3151_vm10, %vm3152_vm9 }
 0x537   :  { %v3147_v4 = vmul.f32 %v3893_v13, %v3146_v48 }
 0x538   :  { %3401 = vrot.lane.b32.xlu2 %v3348_v26, %s3925_s5  ;;  %v3378_v15 = vpop.permute.xlu2 %3377  ;;  %v2659_v26 = vpop.xlane.xlu0 %2658 }
 0x53b   :  { %v7134_v7 = vpop.trf.xlu1 }
 0x53c   :  { %v7137_v25 = vmul.f32 %v3124_v21, %v7134_v7  ;;  %3227 = vperm.xlu0 %3816, %v3181_v63  }
 0x53e   :  { %v7141_v30 = vmul.f32 %v7137_v25, %v6761_v32  ;;  %v3148_v32 = vmul.f32 0.5, %v3147_v4 }
 0x540   :  { %v3149_v19 = vsub.f32 1.5, %v3148_v32 }
 0x542   :  { %v3382_v42 = vpop.permute.xlu2 %3381  ;;  %v3150_v45 = vmul.f32 %v3893_v13, %v3149_v19 }
 0x543   :  { %v3438_v33 = vsub.f32 %v6877_v22, %v3382_v42  ;;  %v7146_v12 = vpop.trf.xlu1  ;;  %v3436_v22 = vsub.f32 %v6845_v47, %v3378_v15  ;;  %v7167_v47 = vpop.permute.xlu0 %3197 }
 0x544   :  { %v7149_v61 = vmul.f32 %v3134_v49, %v7146_v12  ;;  %3387 = vrot.lane.b32.xlu0 %v3341_v9, %s3925_s5  ;;  %v3154_v20 = vsel %vm3153_vm11, %v3893_v13, %v3150_v45  ;;  %v2822_v45 = vmul.f32 0.0051020407, %v6785_v11 }
 0x545   :  { %3472 = vperm.xlu1 %3824, %v3438_v33   ;;  %v7158_v8 = vmul.f32 %v3154_v20, %v7010_v27 }
 0x546   :  { %v3350_v18 = vmul.f32 %v7149_v61, %v7002_v44 }
 0x547   :  { %v3352_v44 = vmul.f32 %v7158_v8, %v7059_v28 }
 0x548   :  { %3405 = vrot.lane.b32.xlu2 %v3350_v18, %s3925_s5  ;;  %v2802_v18 = vmul.f32 0.0051020407, %v2659_v26 }
 0x54b   :  { %v3376_v35 = vpop.permute.xlu0 %3375 }
 0x54c   :  { %3232 = vperm.xlu0 %3816, %v6955_v60   ;;  %v7631_v60 = vmov 0  }
 0x550   :  { %3462 = vperm.xlu2 %3821, %v3436_v22  }
 0x552   :  { %v3386_v63 = vpop.permute.xlu2 %3385 }
 0x553   :  { %v3440_v22 = vsub.f32 %v6905_v51, %v3386_v63 }
 0x554   :  { %3237 = vperm.xlu0 %3816, %v6987_v6   ;;  %v2803_v6 = vmul.f32 0.0051020407, %v6823_v37 }
 0x556   :  { %v2843_v40 = vmul.f32 %v2803_v6, %v2803_v6 }
 0x558   :  { %3409 = vrot.lane.b32.xlu2 %v3352_v44, %s3925_s5  ;;  %v7632_v44 = vld [vmem:[#allocation9_spill] sm:$0xff] }
 0x559   :  { %3822 = vset.pattern.permute.xlu2 %v7631_v60  ;;  %v3298_v26 = vmul.f32 %v7112_v24, %v7632_v44 }
 0x55c   :  { %3391 = vrot.lane.b32.xlu0 %v6992_v3, %s3925_s5 }
 0x564   :  { %3242 = vperm.xlu0 %3816, %v7013_v10   ;;  %v7175_v10 = vpop.permute.xlu2 %3389 }
 0x56c   :  { %3247 = vperm.xlu0 %3816, %v7043_v39  }
 0x573   :  { %v2783_v59 = vpop.xlane.xlu0 %2782 }
 0x574   :  { %v2823_v28 = vmul.f32 0.0051020407, %v2783_v59  ;;  %3395 = vrot.lane.b32.xlu0 %v7052_v5, %s3925_s5  ;;  %v3394_v5 = vpop.permute.xlu2 %3393 }
 0x576   :  { %v2863_v34 = vsub.f32 %v2823_v28, %v2843_v40  ;;  %v7211_v28 = vpop.permute.xlu1 %3217 }
 0x578   :  { %v2883_v13 = vmax.f32 %v2863_v34, 0.0 }
 0x57a   :  { %v2974_v15 = vadd.f32 0.001, %v2883_v13 }
 0x57c   :  { %3894 = vrsqrt.f32 %v2974_v15  ;;  %3252 = vperm.xlu0 %3816, %v7076_v56   ;;  %vm3171_vm13 = vweird.f32 %v2974_v15 }
 0x582   :  { %v3895_v3 = vpop.eup %3894  ;;  %v7183_v42 = vpop.permute.xlu2 %3397 }
 0x583   :  { %v3166_v21 = vmul.f32 %v3895_v3, %v2974_v15  ;;  %vm3172_vm12 = vweird.f32 %v3895_v3 }
 0x584   :  { %3257 = vperm.xlu0 %3816, %v7102_v23   ;;  %vm3173_vm14 = vmor %vm3171_vm13, %vm3172_vm12 }
 0x585   :  { %v3167_v37 = vmul.f32 %v3895_v3, %v3166_v21 }
 0x586   :  { %v7178_v39 = vpop.permute.xlu0 %3207 }
 0x587   :  { %v3168_v0 = vmul.f32 0.5, %v3167_v37 }
 0x589   :  { %v3169_v48 = vsub.f32 1.5, %v3168_v0  ;;  %v7635_v0 = vld [vmem:[#allocation27_spill] sm:$0xff] }
 0x58b   :  { %v3170_v43 = vmul.f32 %v3895_v3, %v3169_v48 }
 0x58c   :  { %3399 = vrot.lane.b32.xlu0 %v7107_v57, %s3925_s5 }
 0x58d   :  { %v3174_v56 = vsel %vm3173_vm14, %v3895_v3, %v3170_v43 }
 0x58e   :  { %v3380_v4 = vpop.permute.xlu0 %3379  ;;  %v3194_v9 = vmul.f32 %v3174_v56, %v7084_v31  ;;  %v7636_v56 = vld [vmem:[#allocation28_spill] sm:$0xff] }
 0x58f   :  { %v3437_v57 = vsub.f32 %v6858_v52, %v3380_v4 }
 0x590   :  { %3292 = vperm.xlu2 %3822, %v3194_v9   ;;  %v3354_v33 = vmul.f32 %v3194_v9, %v2803_v6  ;;  %v3435_v6 = vsub.f32 %v6836_v36, %v3376_v35 }
 0x592   :  { %v7188_v49 = vpop.permute.xlu2 %3401 }
 0x594   :  { %3262 = vperm.xlu0 %3816, %v7119_v38   ;;  %v2842_v38 = vmul.f32 %v2802_v18, %v2802_v18 }
 0x596   :  { %v3213_v23 = vpop.permute.xlu0 %3212  ;;  %v2862_v52 = vsub.f32 %v2822_v45, %v2842_v38  ;;  %v3446_v45 = vsub.f32 %v7068_v16, %v7183_v42 }
 0x598   :  { %3413 = vrot.lane.b32.xlu2 %v3354_v33, %s3925_s5  ;;  %v2882_v11 = vmax.f32 %v2862_v52, 0.0 }
 0x599   :  { %3823 = vset.pattern.permute.xlu2 %v3926_v41 }
 0x59a   :  { %v2973_v34 = vadd.f32 0.001, %v2882_v11 }
 0x59c   :  { %3267 = vperm.xlu0 %3816, %v7137_v25   ;;  %v3297_v25 = vmul.f32 %v7112_v24, %v6129_v2  ;;  %3896 = vrsqrt.f32 %v2973_v34  ;;  %v7633_v2 = vld [vmem:[#allocation63_spill] sm:$0xff]  ;;  %v7634_v24 = vld [vmem:[#allocation10_spill] sm:$0xff]  ;;  %vm3161_vm0 = vweird.f32 %v2973_v34 }
 0x59d   :  { %v3301_v36 = vmul.f32 %v3213_v23, %v7633_v2  ;;  %v3302_v35 = vmul.f32 %v3213_v23, %v7634_v24 }
 0x59e   :  { %v7192_v32 = vpop.permute.xlu0 %3383 }
 0x59f   :  { %v3439_v52 = vsub.f32 %v6894_v53, %v7192_v32  ;;  %v7638_v53 = vld [vmem:[#allocation54_spill] sm:$0xff] }
 0x5a0   :  { %3467 = vperm.xlu2 %3823, %v3437_v57   ;;  %v3300_v32 = vmul.f32 %v7178_v39, %v7638_v53 }
 0x5a2   :  { %v7194_v19 = vpop.permute.xlu2 %3405  ;;  %v3897_v37 = vpop.eup %3896 }
 0x5a3   :  { %vm3162_vm15 = vweird.f32 %v3897_v37 }
 0x5a4   :  { %3403 = vrot.lane.b32.xlu0 %v7141_v30, %s3925_s5  ;;  %vm3163_vm1 = vmor %vm3161_vm0, %vm3162_vm15 }
 0x5a5   :  { %3819 = vset.pattern.permute.xlu0 %v3926_v41 }
 0x5a6   :  { %v7201_v20 = vpop.permute.xlu0 %3222 }
 0x5a8   :  { %3482 = vperm.xlu2 %3823, %v3440_v22  }
 0x5aa   :  { %v3463_v30 = vpop.permute.xlu2 %3462 }
 0x5ab   :  { %v3557_v59 = vadd.f32 %v3463_v30, %v3297_v25  ;;  %v3558_v40 = vadd.f32 %v3463_v30, %v3298_v26  ;;  %v3442_v26 = vsub.f32 %v6950_v55, %v7175_v10 }
 0x5ac   :  { %3457 = vperm.xlu0 %3819, %v3435_v6  }
 0x5ad   :  { %3597 = vst [vmem:[#allocation2 + $0x10] sm:$0xff] %v3557_v59 }
 0x5ae   :  { %3598 = vst.msk [vmem:[#allocation2 + $0x18] sm:$0xff] %vm2583_vm2, %v3558_v40  ;;  %v7209_v51 = vpop.permute.xlu0 %3227  ;;  %v3448_v40 = vsub.f32 %v7116_v46, %v7188_v49  ;;  %v3450_v49 = vsub.f32 %v7146_v12, %v7194_v19  ;;  %v7643_v19 = vld [vmem:[#allocation66_spill] sm:$0xff] }
 0x5b4   :  { %3820 = vset.pattern.permute.xlu0 %v7631_v60  ;;  %v3156_v60 = vmul.f32 %v3897_v37, %v2973_v34  ;;  %v7639_v34 = vld [vmem:[#allocation65_spill] sm:$0xff] }
 0x5b5   :  { %3272 = vperm.xlu0 %3820, %v7149_v61   ;;  %v3444_v61 = vsub.f32 %v7006_v58, %v3394_v5  ;;  %v3305_v2 = vmul.f32 %v7201_v20, %v7639_v34 }
 0x5b6   :  { %v3388_v13 = vpop.permute.xlu0 %3387  ;;  %v3157_v43 = vmul.f32 %v3897_v37, %v3156_v60 }
 0x5b7   :  { %v3441_v63 = vsub.f32 %v6935_v17, %v3388_v13  ;;  %v3473_v15 = vpop.permute.xlu1 %3472 }
 0x5b8   :  { %v3561_v3 = vadd.f32 %v3473_v15, %v3301_v36  ;;  %v3562_v21 = vadd.f32 %v3473_v15, %v3302_v35  ;;  %v3158_v17 = vmul.f32 0.5, %v3157_v43  ;;  %v7640_v36 = vld [vmem:[#allocation12_spill] sm:$0xff] }
 0x5b9   :  { %3487 = vperm.xlu1 %3824, %v3441_v63   ;;  %v3306_v24 = vmul.f32 %v7201_v20, %v7640_v36  ;;  %v7641_v20 = vld [vmem:[#allocation61_spill] sm:$0xff] }
 0x5ba   :  { %3601 = vst [vmem:[#allocation2 + $0x30] sm:$0xff] %v3561_v3  ;;  %v3159_v9 = vsub.f32 1.5, %v3158_v17  ;;  %v3295_v3 = vmul.f32 %v7167_v47, %v7641_v20 }
 0x5bb   :  { %3602 = vst.msk [vmem:[#allocation2 + $0x38] sm:$0xff] %vm2583_vm2, %v3562_v21  ;;  %v7642_v21 = vld [vmem:[#allocation8_spill] sm:$0xff] }
 0x5bc   :  { %v3160_v23 = vmul.f32 %v3897_v37, %v3159_v9  ;;  %v7645_v9 = vld [vmem:[#allocation15_spill] sm:$0xff] }
 0x5bd   :  { %3277 = vperm.xlu0 %3820, %v7635_v0  }
 0x5be   :  { %v7220_v48 = vpop.permute.xlu0 %3232  ;;  %v3164_v58 = vsel %vm3163_vm1, %v3897_v37, %v3160_v23  ;;  %v3296_v37 = vmul.f32 %v7167_v47, %v7642_v21  ;;  %v7646_v23 = vld [vmem:[#allocation13_spill] sm:$0xff] }
 0x5bf   :  { %v3193_v5 = vmul.f32 %v3164_v58, %v7048_v29 }
 0x5c1   :  { %3502 = vperm.xlu1 %3824, %v3444_v61   ;;  %v3353_v22 = vmul.f32 %v3193_v5, %v2802_v18 }
 0x5c5   :  { %3407 = vrot.lane.b32.xlu0 %v7636_v56, %s3925_s5  ;;  %v7644_v56 = vld [vmem:[#allocation68_spill] sm:$0xff] }
 0x5c6   :  { %v7225_v4 = vpop.permute.xlu0 %3237 }
 0x5c7   :  { %v3311_v17 = vmul.f32 %v7225_v4, %v7644_v56  ;;  %v3312_v47 = vmul.f32 %v7225_v4, %v7645_v9  ;;  %v7659_v9 = vld [vmem:[#allocation20_spill] sm:$0xff] }
 0x5cd   :  { %3282 = vperm.xlu0 %3820, %v7158_v8  }
 0x5ce   :  { %v3392_v33 = vpop.permute.xlu0 %3391 }
 0x5cf   :  { %v3443_v57 = vsub.f32 %v6979_v62, %v3392_v33  ;;  %v3410_v62 = vpop.permute.xlu2 %3409 }
 0x5d0   :  { %v3452_v60 = vsub.f32 %v7010_v27, %v3410_v62  ;;  %v3308_v27 = vmul.f32 %v7209_v51, %v7646_v23 }
 0x5d1   :  { %3497 = vperm.xlu2 %3823, %v3443_v57  }
 0x5d5   :  { %3287 = vperm.xlu0 %3820, %v3193_v5  }
 0x5d6   :  { %v7230_v38 = vpop.permute.xlu0 %3242 }
 0x5d9   :  { %3512 = vperm.xlu2 %3823, %v3446_v45  }
 0x5dd   :  { %3411 = vrot.lane.b32.xlu0 %v3353_v22, %s3925_s5 }
 0x5de   :  { %v7235_v8 = vpop.permute.xlu0 %3247  ;;  %3825 = vset.pattern.permute.xlu0 %v3926_v41  ;;  %v7637_v41 = vld [vmem:[#allocation62_spill] sm:$0xff] }
 0x5df   :  { %v3299_v30 = vmul.f32 %v7178_v39, %v7637_v41  ;;  %v7650_v41 = vld [vmem:[#allocation16_spill] sm:$0xff] }
 0x5e5   :  { %3477 = vperm.xlu0 %3825, %v3439_v52   ;;  %v7647_v52 = vld [vmem:[#allocation69_spill] sm:$0xff] }
 0x5e6   :  { %v3396_v25 = vpop.permute.xlu0 %3395  ;;  %v3313_v4 = vmul.f32 %v7230_v38, %v7647_v52  ;;  %v7663_v52 = vld [vmem:[#allocation19_spill] sm:$0xff] }
 0x5e7   :  { %v3445_v18 = vsub.f32 %v7039_v14, %v3396_v25  ;;  %v7648_v25 = vld [vmem:[#allocation71_spill] sm:$0xff] }
 0x5ea   :  { %v7240_v44 = vpop.permute.xlu2 %3292 }
 0x5ed   :  { %3492 = vperm.xlu0 %3825, %v3442_v26  }
 0x5ee   :  { %v3253_v16 = vpop.permute.xlu0 %3252 }
 0x5ef   :  { %v3317_v26 = vmul.f32 %v3253_v16, %v7648_v25 }
 0x5f2   :  { %v7244_v42 = vpop.permute.xlu2 %3413 }
 0x5f5   :  { %3507 = vperm.xlu0 %3825, %v3445_v18  }
 0x5f6   :  { %v7247_v6 = vpop.permute.xlu0 %3257 }
 0x5fa   :  { %v3468_v59 = vpop.permute.xlu2 %3467 }
 0x5fb   :  { %v3559_v55 = vadd.f32 %v3468_v59, %v3299_v30  ;;  %v3560_v10 = vadd.f32 %v3468_v59, %v3300_v32  ;;  %v3314_v30 = vmul.f32 %v7230_v38, %v7650_v41  ;;  %v3454_v38 = vsub.f32 %v7084_v31, %v7244_v42  ;;  %v7654_v31 = vld [vmem:[#allocation67_spill] sm:$0xff] }
 0x5fc   :  { %v3309_v42 = vmul.f32 %v7220_v48, %v7654_v31 }
 0x5fd   :  { %3599 = vst [vmem:[#allocation2 + $0x20] sm:$0xff] %v3559_v55  ;;  %3522 = vperm.xlu0 %3825, %v3448_v40  }
 0x5fe   :  { %3600 = vst.msk [vmem:[#allocation2 + $0x28] sm:$0xff] %vm2583_vm2, %v3560_v10  ;;  %v3400_v14 = vpop.permute.xlu0 %3399 }
 0x5ff   :  { %v3447_v11 = vsub.f32 %v7099_v1, %v3400_v14 }
 0x601   :  { %3517 = vperm.xlu1 %3824, %v3447_v11   ;;  %v7651_v11 = vld [vmem:[#allocation26_spill] sm:$0xff] }
 0x602   :  { %v3483_v39 = vpop.permute.xlu2 %3482 }
 0x603   :  { %v3565_v35 = vadd.f32 %v3483_v39, %v3305_v2  ;;  %v3566_v13 = vadd.f32 %v3483_v39, %v3306_v24  ;;  %v7652_v39 = vld [vmem:[#allocation64_spill] sm:$0xff] }
 0x605   :  { %3605 = vst [vmem:[#allocation2 + $0x50] sm:$0xff] %v3565_v35  ;;  %v3303_v35 = vmul.f32 %v7211_v28, %v7652_v39 }
 0x606   :  { %3606 = vst.msk [vmem:[#allocation2 + $0x58] sm:$0xff] %vm2583_vm2, %v3566_v13  ;;  %v7262_v46 = vpop.permute.xlu0 %3262  ;;  %v7653_v13 = vld [vmem:[#allocation11_spill] sm:$0xff] }
 0x609   :  { %3532 = vperm.xlu1 %3824, %v3450_v49   ;;  %v3304_v49 = vmul.f32 %v7211_v28, %v7653_v13 }
 0x60e   :  { %v7266_v1 = vpop.permute.xlu0 %3267 }
 0x616   :  { %v3404_v63 = vpop.permute.xlu0 %3403 }
 0x617   :  { %v3449_v15 = vsub.f32 %v7134_v7, %v3404_v63  ;;  %v3307_v7 = vmul.f32 %v7209_v51, %v7643_v19  ;;  %v7649_v51 = vld [vmem:[#allocation18_spill] sm:$0xff] }
 0x618   :  { %v3318_v18 = vmul.f32 %v3253_v16, %v7649_v51 }
 0x619   :  { %3527 = vperm.xlu2 %3823, %v3449_v15  }
 0x61e   :  { %v3458_v0 = vpop.permute.xlu0 %3457 }
 0x61f   :  { %v3555_v61 = vadd.f32 %v3458_v0, %v3295_v3  ;;  %v3556_v43 = vadd.f32 %v3458_v0, %v3296_v37  ;;  %v7655_v3 = vld [vmem:[#allocation14_spill] sm:$0xff] }
 0x620   :  { %v3310_v21 = vmul.f32 %v7220_v48, %v7655_v3 }
 0x621   :  { %3595 = vst [vmem:[#allocation2] sm:$0xff] %v3555_v61  ;;  %3542 = vperm.xlu2 %3823, %v3452_v60   ;;  %v7656_v60 = vld [vmem:[#allocation70_spill] sm:$0xff]  ;;  %v7657_v61 = vld [vmem:[#allocation17_spill] sm:$0xff] }
 0x622   :  { %3596 = vst.msk [vmem:[#allocation2 + $0x8] sm:$0xff] %vm2583_vm2, %v3556_v43  ;;  %v3315_v28 = vmul.f32 %v7235_v8, %v7656_v60  ;;  %v3316_v43 = vmul.f32 %v7235_v8, %v7657_v61 }
 0x627   :  { %v7275_v12 = vpop.permute.xlu0 %3272 }
 0x62b   :  { %v3498_v33 = vpop.permute.xlu2 %3497  ;;  %v3488_v57 = vpop.permute.xlu1 %3487 }
 0x62c   :  { %v3571_v58 = vadd.f32 %v3498_v33, %v3311_v17  ;;  %v3572_v5 = vadd.f32 %v3498_v33, %v3312_v47  ;;  %v3567_v45 = vadd.f32 %v3488_v57, %v3307_v7  ;;  %v3568_v22 = vadd.f32 %v3488_v57, %v3308_v27  ;;  %v7658_v17 = vld [vmem:[#allocation73_spill] sm:$0xff]  ;;  %v7660_v57 = vld [vmem:[#allocation72_spill] sm:$0xff] }
 0x62d   :  { %v3321_v48 = vmul.f32 %v7262_v46, %v7658_v17  ;;  %v3322_v47 = vmul.f32 %v7262_v46, %v7659_v9 }
 0x62e   :  { %3611 = vst [vmem:[#allocation2 + $0x80] sm:$0xff] %v3571_v58  ;;  %v3319_v58 = vmul.f32 %v7247_v6, %v7660_v57 }
 0x62f   :  { %3612 = vst.msk [vmem:[#allocation2 + $0x88] sm:$0xff] %vm2583_vm2, %v3572_v5  ;;  %v7286_v62 = vpop.permute.xlu0 %3277  ;;  %v7661_v5 = vld [vmem:[#allocation5_spill] sm:$0xff] }
 0x630   :  { %3607 = vst [vmem:[#allocation2 + $0x60] sm:$0xff] %v3567_v45  ;;  %v3323_v8 = vmul.f32 %v7266_v1, %v7661_v5  ;;  %v7662_v45 = vld [vmem:[#allocation21_spill] sm:$0xff] }
 0x631   :  { %3608 = vst.msk [vmem:[#allocation2 + $0x68] sm:$0xff] %vm2583_vm2, %v3568_v22  ;;  %v3324_v22 = vmul.f32 %v7266_v1, %v7662_v45 }
 0x633   :  { %v3513_v53 = vpop.permute.xlu2 %3512  ;;  %v3503_v32 = vpop.permute.xlu1 %3502 }
 0x634   :  { %v3577_v59 = vadd.f32 %v3513_v53, %v3317_v26  ;;  %v3578_v40 = vadd.f32 %v3513_v53, %v3318_v18  ;;  %v3573_v55 = vadd.f32 %v3503_v32, %v3313_v4  ;;  %v3574_v10 = vadd.f32 %v3503_v32, %v3314_v30  ;;  %v7664_v30 = vld [vmem:[#allocation48_spill] sm:$0xff]  ;;  %v7665_v53 = vld [vmem:[#allocation7_spill] sm:$0xff] }
 0x635   :  { %v3320_v4 = vmul.f32 %v7247_v6, %v7663_v52  ;;  %v3325_v1 = vmul.f32 %v7275_v12, %v7664_v30  ;;  %v7666_v6 = vld [vmem:[#allocation24_spill] sm:$0xff] }
 0x636   :  { %3617 = vst [vmem:[#allocation2 + $0xb0] sm:$0xff] %v3577_v59 }
 0x637   :  { %3618 = vst.msk [vmem:[#allocation2 + $0xb8] sm:$0xff] %vm2583_vm2, %v3578_v40  ;;  %v3408_v14 = vpop.permute.xlu0 %3407  ;;  %v7667_v40 = vld [vmem:[#allocation22_spill] sm:$0xff] }
 0x638   :  { %3613 = vst [vmem:[#allocation2 + $0x90] sm:$0xff] %v3573_v55  ;;  %v3451_v34 = vsub.f32 %v7651_v11, %v3408_v14  ;;  %v3326_v55 = vmul.f32 %v7275_v12, %v7667_v40 }
 0x639   :  { %3614 = vst.msk [vmem:[#allocation2 + $0x98] sm:$0xff] %vm2583_vm2, %v3574_v10 }
 0x63a   :  { %3537 = vperm.xlu0 %3825, %v3451_v34  }
 0x63f   :  { %v3283_v16 = vpop.permute.xlu0 %3282 }
 0x640   :  { %v3329_v32 = vmul.f32 %v3283_v16, %v7665_v53  ;;  %v3330_v59 = vmul.f32 %v3283_v16, %v7666_v6 }
 0x642   :  { %3552 = vperm.xlu0 %3825, %v3454_v38  }
 0x647   :  { %v7300_v2 = vpop.permute.xlu0 %3287 }
 0x64f   :  { %v3412_v36 = vpop.permute.xlu0 %3411 }
 0x650   :  { %v3453_v24 = vsub.f32 %v7048_v29, %v3412_v36 }
 0x652   :  { %3547 = vperm.xlu1 %3824, %v3453_v24   ;;  %v7668_v24 = vld [vmem:[#allocation6_spill] sm:$0xff] }
 0x653   :  { %v3327_v39 = vmul.f32 %v7286_v62, %v7668_v24 }
 0x657   :  { %v3478_v63 = vpop.permute.xlu0 %3477 }
 0x658   :  { %v3563_v15 = vadd.f32 %v3478_v63, %v3303_v35  ;;  %v3564_v20 = vadd.f32 %v3478_v63, %v3304_v49  ;;  %v7669_v35 = vld [vmem:[#allocation23_spill] sm:$0xff]  ;;  %v3333_v63 = vmul.f32 %v7240_v44, %v6367_v50 }
 0x659   :  { %v3328_v16 = vmul.f32 %v7286_v62, %v7669_v35  ;;  %v7670_v62 = vld [vmem:[#allocation51_spill] sm:$0xff] }
 0x65a   :  { %3603 = vst [vmem:[#allocation2 + $0x40] sm:$0xff] %v3563_v15  ;;  %v3334_v15 = vmul.f32 %v7240_v44, %v6693_v54  ;;  %v3331_v3 = vmul.f32 %v7300_v2, %v7670_v62 }
 0x65b   :  { %3604 = vst.msk [vmem:[#allocation2 + $0x48] sm:$0xff] %vm2583_vm2, %v3564_v20 }
 0x65f   :  { %v3493_v29 = vpop.permute.xlu0 %3492 }
 0x660   :  { %v3569_v37 = vadd.f32 %v3493_v29, %v3309_v42  ;;  %v3570_v0 = vadd.f32 %v3493_v29, %v3310_v21  ;;  %v7671_v21 = vld [vmem:[#allocation25_spill] sm:$0xff] }
 0x661   :  { %v3332_v50 = vmul.f32 %v7300_v2, %v7671_v21 }
 0x662   :  { %3609 = vst [vmem:[#allocation2 + $0x70] sm:$0xff] %v3569_v37 }
 0x663   :  { %3610 = vst.msk [vmem:[#allocation2 + $0x78] sm:$0xff] %vm2583_vm2, %v3570_v0 }
 0x667   :  { %v3508_v19 = vpop.permute.xlu0 %3507 }
 0x668   :  { %v3575_v7 = vadd.f32 %v3508_v19, %v3315_v28  ;;  %v3576_v56 = vadd.f32 %v3508_v19, %v3316_v43 }
 0x66a   :  { %3615 = vst [vmem:[#allocation2 + $0xa0] sm:$0xff] %v3575_v7 }
 0x66b   :  { %3616 = vst.msk [vmem:[#allocation2 + $0xa8] sm:$0xff] %vm2583_vm2, %v3576_v56 }
 0x66f   :  { %v3523_v23 = vpop.permute.xlu0 %3522 }
 0x670   :  { %v3581_v27 = vadd.f32 %v3523_v23, %v3321_v48  ;;  %v3582_v33 = vadd.f32 %v3523_v23, %v3322_v47 }
 0x672   :  { %3621 = vst [vmem:[#allocation2 + $0xd0] sm:$0xff] %v3581_v27 }
 0x673   :  { %3622 = vst.msk [vmem:[#allocation2 + $0xd8] sm:$0xff] %vm2583_vm2, %v3582_v33  ;;  %v3528_v25 = vpop.permute.xlu2 %3527  ;;  %v3518_v46 = vpop.permute.xlu1 %3517 }
 0x674   :  { %v3583_v26 = vadd.f32 %v3528_v25, %v3323_v8  ;;  %v3584_v51 = vadd.f32 %v3528_v25, %v3324_v22  ;;  %v3579_v18 = vadd.f32 %v3518_v46, %v3319_v58  ;;  %v3580_v41 = vadd.f32 %v3518_v46, %v3320_v4 }
 0x676   :  { %3623 = vst [vmem:[#allocation2 + $0xe0] sm:$0xff] %v3583_v26 }
 0x677   :  { %3624 = vst.msk [vmem:[#allocation2 + $0xe8] sm:$0xff] %vm2583_vm2, %v3584_v51 }
 0x678   :  { %3619 = vst [vmem:[#allocation2 + $0xc0] sm:$0xff] %v3579_v18 }
 0x679   :  { %3620 = vst.msk [vmem:[#allocation2 + $0xc8] sm:$0xff] %vm2583_vm2, %v3580_v41 }
 0x67b   :  { %v3543_v10 = vpop.permute.xlu2 %3542  ;;  %v3533_v14 = vpop.permute.xlu1 %3532 }
 0x67c   :  { %v3589_v11 = vadd.f32 %v3543_v10, %v3329_v32  ;;  %v3590_v34 = vadd.f32 %v3543_v10, %v3330_v59  ;;  %v3585_v38 = vadd.f32 %v3533_v14, %v3325_v1  ;;  %v3586_v36 = vadd.f32 %v3533_v14, %v3326_v55 }
 0x67e   :  { %3629 = vst [vmem:[#allocation2 + $0x110] sm:$0xff] %v3589_v11 }
 0x67f   :  { %3630 = vst.msk [vmem:[#allocation2 + $0x118] sm:$0xff] %vm2583_vm2, %v3590_v34 }
 0x680   :  { %3625 = vst [vmem:[#allocation2 + $0xf0] sm:$0xff] %v3585_v38 }
 0x681   :  { %3626 = vst.msk [vmem:[#allocation2 + $0xf8] sm:$0xff] %vm2583_vm2, %v3586_v36 }
 0x6ac   :  { %v3538_v13 = vpop.permute.xlu0 %3537 }
 0x6ad   :  { %v3587_v12 = vadd.f32 %v3538_v13, %v3327_v39  ;;  %v3588_v49 = vadd.f32 %v3538_v13, %v3328_v16 }
 0x6af   :  { %3627 = vst [vmem:[#allocation2 + $0x100] sm:$0xff] %v3587_v12 }
 0x6b0   :  { %3628 = vst.msk [vmem:[#allocation2 + $0x108] sm:$0xff] %vm2583_vm2, %v3588_v49 }
 0x6b4   :  { %v3553_v20 = vpop.permute.xlu0 %3552 }
 0x6b5   :  { %v3593_v31 = vadd.f32 %v3553_v20, %v3333_v63  ;;  %v3594_v42 = vadd.f32 %v3553_v20, %v3334_v15 }
 0x6b7   :  { %3633 = vst [vmem:[#allocation2 + $0x130] sm:$0xff] %v3593_v31 }
 0x6b8   :  { %3634 = vst.msk [vmem:[#allocation2 + $0x138] sm:$0xff] %vm2583_vm2, %v3594_v42 }
 0x6c4   :  { %v3548_v29 = vpop.permute.xlu1 %3547 }
 0x6c5   :  { %v3591_v54 = vadd.f32 %v3548_v29, %v3331_v3  ;;  %v3592_v44 = vadd.f32 %v3548_v29, %v3332_v50 }
 0x6c7   :  { %3631 = vst [vmem:[#allocation2 + $0x120] sm:$0xff] %v3591_v54 }
 0x6c8   :  { %3632 = vst.msk [vmem:[#allocation2 + $0x128] sm:$0xff] %vm2583_vm2, %v3592_v44 }
 0x6c9   :  { %3647 = dma.vmem_to_hbm [thread:$0]  %s3640_s13, 5120, %s3642_s15, [#allocation3], %s3928_s16, %s3928_s16, %s3929_s17  }
 0x6ca   :  { %3922 = dma.done.wait [#allocation3], 5120  }
 0x6cb   :  { %3923 = vsyncadd [#allocation3], 4294962176 }
 0x6cc   :  { %3652 = vsyncpa [#allocation3], 1 }

</bundles_post_ra>
